<compile_context>
chip_gen: v7x
topology: tpu7x:2x2x1
jax: 0.10.0
libtpu: 0.0.40
codegen_flags: <defaults>
</compile_context>

<pallas_src>
import functools

import numpy as np
import jax
import jax.numpy as jnp
from jax.experimental import pallas as pl
from jax.experimental.pallas import tpu as pltpu


# Matmul operand dtype (weights + activation scratches).  Accumulation and all
# elementwise work (BN scale/bias, ReLU, SE sigmoid/scale) remain float32.
MATMUL_DTYPE = jnp.bfloat16


# ----------------------------------------------------------------------------
# Fused Pallas kernel: (concat-free) TripleConv (+BN fold, ReLU) + SE block
# ----------------------------------------------------------------------------
def _se_up_kernel(x2_ref, x1_ref,
                  t1a_ref, t1b_ref, sb1_ref,
                  t2_ref, sb2_ref,
                  t3_ref, sb3_ref,
                  sw1_ref, sw2_ref,
                  o_ref,
                  p1a_ref, p1b_ref, p2_ref, p3_ref,
                  *, H, W, Cout):
    """Per-image fused SE_Up body.

    x2_ref / x1_ref : (1, H, W*C) lane-dense skip / upsampled features
    t*_ref          : (3, W*Cin, W*Cout') per-kh banded conv weights
                      (kw shift + width zero-padding folded in host-side)
    sb*_ref         : (2, W*Cout') row0 = folded BN scale, row1 = folded bias
    sw1/sw2_ref     : SE FC weights, GAP scale and lane tiling pre-folded
    p*_ref          : VMEM scratches, row-padded only (no width padding)
    """

    def conv(p_ref, t_ref, sb_ref, d):
        # p_ref: (H + 2d, W*Cin) with the top/bottom d rows zero.
        acc = jnp.dot(p_ref[0:H, :], t_ref[0],
                      preferred_element_type=jnp.float32)
        acc += jnp.dot(p_ref[d:d + H, :], t_ref[1],
                       preferred_element_type=jnp.float32)
        acc += jnp.dot(p_ref[2 * d:2 * d + H, :], t_ref[2],
                       preferred_element_type=jnp.float32)
        y = acc * sb_ref[0:1, :] + sb_ref[1:2, :]      # folded eval-mode BN
        return jnp.maximum(y, 0.0)                     # ReLU (f32)

    # Re-zero ONLY the d-row top/bottom borders; interiors are fully rewritten
    # below.  Cheap (lane-dense row stores) and correct under megacore splits.
    for p_ref, d in ((p1a_ref, 1), (p1b_ref, 1), (p2_ref, 2), (p3_ref, 3)):
        z = jnp.zeros((d, p_ref.shape[1]), p_ref.dtype)
        p_ref[0:d, :] = z
        p_ref[d + H:2 * d + H, :] = z

    # ---- stage 1: 3x3, pad 1.  concat([x2, x1]) replaced by split weights --
    p1a_ref[1:1 + H, :] = x2_ref[0].astype(p1a_ref.dtype)
    p1b_ref[1:1 + H, :] = x1_ref[0].astype(p1b_ref.dtype)
    acc = jnp.dot(p1a_ref[0:H, :], t1a_ref[0], preferred_element_type=jnp.float32)
    acc += jnp.dot(p1a_ref[1:1 + H, :], t1a_ref[1], preferred_element_type=jnp.float32)
    acc += jnp.dot(p1a_ref[2:2 + H, :], t1a_ref[2], preferred_element_type=jnp.float32)
    acc += jnp.dot(p1b_ref[0:H, :], t1b_ref[0], preferred_element_type=jnp.float32)
    acc += jnp.dot(p1b_ref[1:1 + H, :], t1b_ref[1], preferred_element_type=jnp.float32)
    acc += jnp.dot(p1b_ref[2:2 + H, :], t1b_ref[2], preferred_element_type=jnp.float32)
    y1 = jnp.maximum(acc * sb1_ref[0:1, :] + sb1_ref[1:2, :], 0.0)

    # ---- stage 2: 3x3, dilation 2, pad 2 -----------------------------------
    p2_ref[2:2 + H, :] = y1.astype(p2_ref.dtype)
    y2 = conv(p2_ref, t2_ref, sb2_ref, 2)

    # ---- stage 3: 3x3, dilation 3, pad 3 -----------------------------------
    p3_ref[3:3 + H, :] = y2.astype(p3_ref.dtype)
    y3 = conv(p3_ref, t3_ref, sb3_ref, 3)              # (H, W*Cout) f32

    # ---- fused SE: GAP -> FC -> ReLU -> FC -> sigmoid -> channel scale -----
    # GAP's 1/(H*W) and the lane tiling are folded into sw1/sw2 host-side, so
    # this stays lane-dense with no in-kernel reshape across the lane dim.
    rowsum = jnp.sum(y3, axis=0, keepdims=True)        # (1, W*Cout)
    hdn = jnp.maximum(jnp.dot(rowsum, sw1_ref[...],
                              preferred_element_type=jnp.float32), 0.0)
    gate = jax.nn.sigmoid(jnp.dot(hdn, sw2_ref[...],
                                  preferred_element_type=jnp.float32))
    o_ref[...] = (y3 * gate).reshape(1, H, W * Cout)


# ----------------------------------------------------------------------------
# Host-side weight preparation
# ----------------------------------------------------------------------------
def _toeplitz(w, W, d, dtype):
    """Conv weight (kh, kw, cin, cout) -> (3, W*cin, W*cout) banded per-kh
    matmul weights; the kw shift and the width zero-padding are folded in.

    NOTE: assumes (kh, kw, cin, cout) layout; a port from PyTorch's
    (cout, cin, kh, kw) weights needs w.transpose(2, 3, 1, 0) first.
    """
    assert w.shape[0] == 3 and w.shape[1] == 3, w.shape
    cin, cout = int(w.shape[2]), int(w.shape[3])
    S = np.zeros((3, W, W), np.float32)                # S[kw, w_in, w_out]
    for kw in range(3):
        for wo in range(W):
            wi = wo + (kw - 1) * d
            if 0 <= wi < W:
                S[kw, wi, wo] = 1.0
    T = jnp.einsum('kab,hkio->haibo', jnp.asarray(S), w)
    return T.reshape(3, W * cin, W * cout).astype(dtype)


def se_up_pallas(x2, x1u, P):
    """x2: (N,H,W,C2) skip.  x1u: (N,H,W,C1) upsampled+padded deep features."""
    N, H, W, C2 = x2.shape
    C1 = x1u.shape[-1]

    w1, w2, w3 = P['c1']['w'], P['c2']['w'], P['c3']['w']   # (kh,kw,cin,cout)
    Cmid = int(w1.shape[-1])
    Cout = int(w3.shape[-1])
    hid = int(P['se']['w1'].shape[1])
    cdt = MATMUL_DTYPE

    # torch.cat([x2, x1], dim=1): first C2 input channels of conv1 see x2, the
    # remaining C1 see x1 -> split the weight instead of concatenating data.
    t1a = _toeplitz(w1[:, :, :C2, :], W, 1, cdt)
    t1b = _toeplitz(w1[:, :, C2:, :], W, 1, cdt)
    t2 = _toeplitz(w2, W, 2, cdt)
    t3 = _toeplitz(w3, W, 3, cdt)

    def sb(p):  # folded BN scale/bias, tiled across the W lane groups (f32)
        return jnp.stack([jnp.tile(p['scale'], W),
                          jnp.tile(p['bias'], W)], 0).astype(jnp.float32)
    sb1, sb2, sb3 = sb(P['c1']), sb(P['c2']), sb(P['c3'])

    # SE FC weights with the GAP 1/(H*W) and lane tiling baked in (kept f32).
    sw1 = (jnp.tile(P['se']['w1'], (W, 1)) * (1.0 / (H * W))).astype(jnp.float32)
    sw2 = jnp.tile(P['se']['w2'], (1, W)).astype(jnp.float32)

    # Lane-dense HBM presentation: (N, H, W*C).
    x2f = x2.reshape(N, H, W * C2).astype(cdt)
    x1f = x1u.reshape(N, H, W * C1).astype(cdt)

    kernel = functools.partial(_se_up_kernel, H=H, W=W, Cout=Cout)
    out = pl.pallas_call(
        kernel,
        out_shape=jax.ShapeDtypeStruct((N, H, W * Cout), jnp.float32),
        grid=(N,),
        in_specs=[
            pl.BlockSpec((1, H, W * C2), lambda n: (n, 0, 0)),
            pl.BlockSpec((1, H, W * C1), lambda n: (n, 0, 0)),
            pl.BlockSpec((3, W * C2, W * Cmid), lambda n: (0, 0, 0)),
            pl.BlockSpec((3, W * C1, W * Cmid), lambda n: (0, 0, 0)),
            pl.BlockSpec((2, W * Cmid), lambda n: (0, 0)),
            pl.BlockSpec((3, W * Cmid, W * Cmid), lambda n: (0, 0, 0)),
            pl.BlockSpec((2, W * Cmid), lambda n: (0, 0)),
            pl.BlockSpec((3, W * Cmid, W * Cout), lambda n: (0, 0, 0)),
            pl.BlockSpec((2, W * Cout), lambda n: (0, 0)),
            pl.BlockSpec((W * Cout, hid), lambda n: (0, 0)),
            pl.BlockSpec((hid, W * Cout), lambda n: (0, 0)),
        ],
        out_specs=pl.BlockSpec((1, H, W * Cout), lambda n: (n, 0, 0)),
        scratch_shapes=[
            pltpu.VMEM((H + 2, W * C2), cdt),    # conv1 (x2 half), pad 1 rows
            pltpu.VMEM((H + 2, W * C1), cdt),    # conv1 (x1 half), pad 1 rows
            pltpu.VMEM((H + 4, W * Cmid), cdt),  # conv2, pad 2 rows
            pltpu.VMEM((H + 6, W * Cmid), cdt),  # conv3, pad 3 rows
        ],
        compiler_params=pltpu.CompilerParams(
            dimension_semantics=("parallel",),
            vmem_limit_bytes=32 * 1024 * 1024),
    )(x2f, x1f, t1a, t1b, sb1, t2, sb2, t3, sb3, sw1, sw2)
    return out.reshape(N, H, W, Cout)


# ----------------------------------------------------------------------------
# XLA glue: bilinear upsample (align_corners=True) and size-matching pad
# ----------------------------------------------------------------------------
def _interp_matrix(h_in, h_out):
    src = np.arange(h_out, dtype=np.float64) * (h_in - 1) / max(h_out - 1, 1)
    lo = np.clip(np.floor(src).astype(np.int64), 0, h_in - 1)
    hi = np.clip(lo + 1, 0, h_in - 1)
    frac = src - lo
    M = np.zeros((h_out, h_in), np.float32)
    M[np.arange(h_out), lo] += (1.0 - frac)
    M[np.arange(h_out), hi] += frac
    return jnp.asarray(M)


def bilinear_resize(x, out_h, out_w):
    N, H, W, C = x.shape
    Mh = _interp_matrix(H, out_h)
    Mw = _interp_matrix(W, out_w)
    x = jnp.einsum('oh,nhwc->nowc', Mh, x)
    x = jnp.einsum('pw,nowc->nopc', Mw, x)
    return x


# ----------------------------------------------------------------------------
# Parameter initialization (deterministic, synthetic; BN folded in eval mode)
# ----------------------------------------------------------------------------
_BN_EPS = 1e-5


def make_convbn(key, cin, cout, k=3):
    k1, k2, k3, k4 = jax.random.split(key, 4)
    # Weight layout is (kh, kw, cin, cout); a PyTorch (cout, cin, kh, kw)
    # weight must be transposed to this layout before use.
    w = jax.random.normal(k1, (k, k, cin, cout), jnp.float32) / np.sqrt(k * k * cin)
    b = 0.05 * jax.random.normal(k2, (cout,), jnp.float32)
    gamma = 1.0 + 0.1 * jax.random.normal(k3, (cout,), jnp.float32)
    beta = 0.05 * jax.random.normal(k4, (cout,), jnp.float32)
    # eval-mode BN (running_mean=0, running_var=1) folded with the conv bias.
    scale = gamma / jnp.sqrt(1.0 + _BN_EPS)
    bias = scale * b + beta
    return {'w': w, 'scale': scale, 'bias': bias}


def make_se(key, c, ratio):
    hid = c // ratio
    k1, k2 = jax.random.split(key)
    # SE_Block uses nn.Linear(..., bias=False) -> no FC biases by spec.
    w1 = jax.random.normal(k1, (c, hid), jnp.float32) / np.sqrt(c)
    w2 = jax.random.normal(k2, (hid, c), jnp.float32) / np.sqrt(hid)
    return {'w1': w1, 'w2': w2}


def init_se_up_params(key, in_channels, out_channels):
    mid = in_channels // 2                       # TripleConv mid_channels
    k1, k2, k3, k4 = jax.random.split(key, 4)
    return {
        'c1': make_convbn(k1, in_channels, mid),       # 3x3, pad 1
        'c2': make_convbn(k2, mid, mid),               # 3x3, pad 2, dil 2
        'c3': make_convbn(k3, mid, out_channels),      # 3x3, pad 3, dil 3
        'se': make_se(k4, out_channels, int(0.25 * out_channels)),
    }


# ----------------------------------------------------------------------------
# SE_Up forward (NCHW in / NCHW out, like the PyTorch module)
# ----------------------------------------------------------------------------
def se_up_forward(x1_nchw, x2_nchw, P):
    x1 = jnp.transpose(x1_nchw, (0, 2, 3, 1)).astype(jnp.float32)
    x2 = jnp.transpose(x2_nchw, (0, 2, 3, 1)).astype(jnp.float32)

    # nn.Upsample(scale_factor=2, mode='bilinear', align_corners=True)
    x1u = bilinear_resize(x1, 2 * x1.shape[1], 2 * x1.shape[2])

    # F.pad to match the skip connection (zero pad; usually a size-0 no-op)
    diffY = x2.shape[1] - x1u.shape[1]
    diffX = x2.shape[2] - x1u.shape[2]
    x1u = jnp.pad(x1u, ((0, 0),
                        (diffY // 2, diffY - diffY // 2),
                        (diffX // 2, diffX - diffX // 2),
                        (0, 0)))

    # fused: concat-free TripleConv(+BN+ReLU) -> SE, one pallas_call
    y = se_up_pallas(x2, x1u, P)
    return jnp.transpose(y, (0, 3, 1, 2))


# ----------------------------------------------------------------------------
if __name__ == "__main__":
    IN_CH, OUT_CH = 32, 16            # SE_Up(in_channels=32, out_channels=16)
    N, H1, W1 = 2, 8, 8               # x1: deep features; x2 skip is 2x spatial

    key = jax.random.PRNGKey(0)
    kx1, kx2, kp = jax.random.split(key, 3)
    x1 = jax.random.normal(kx1, (N, IN_CH // 2, H1, W1), jnp.float32)        # NCHW
    x2 = jax.random.normal(kx2, (N, IN_CH // 2, 2 * H1, 2 * W1), jnp.float32)
    params = init_se_up_params(kp, IN_CH, OUT_CH)

    fwd = jax.jit(se_up_forward)
    out = fwd(x1, x2, params)
    out = jax.block_until_ready(out)

    assert out.shape == (N, OUT_CH, 2 * H1, 2 * W1), out.shape
    assert bool(jnp.all(jnp.isfinite(out)))
    print("KERNEL_OK")
</pallas_src>

<mosaic_0001>
module attributes {stable_mosaic.version = 11 : i64} {
  func.func @_se_up_kernel(%arg0: i32, %arg1: memref<1x16x256xbf16, #tpu.memory_space<vmem>>, %arg2: memref<1x16x256xbf16, #tpu.memory_space<vmem>>, %arg3: memref<3x256x256xbf16, #tpu.memory_space<vmem>>, %arg4: memref<3x256x256xbf16, #tpu.memory_space<vmem>>, %arg5: memref<2x256xf32, #tpu.memory_space<vmem>>, %arg6: memref<3x256x256xbf16, #tpu.memory_space<vmem>>, %arg7: memref<2x256xf32, #tpu.memory_space<vmem>>, %arg8: memref<3x256x256xbf16, #tpu.memory_space<vmem>>, %arg9: memref<2x256xf32, #tpu.memory_space<vmem>>, %arg10: memref<256x4xf32, #tpu.memory_space<vmem>>, %arg11: memref<4x256xf32, #tpu.memory_space<vmem>>, %arg12: memref<1x16x256xf32, #tpu.memory_space<vmem>>, %arg13: memref<18x256xbf16, #tpu.memory_space<vmem>>, %arg14: memref<18x256xbf16, #tpu.memory_space<vmem>>, %arg15: memref<20x256xbf16, #tpu.memory_space<vmem>>, %arg16: memref<22x256xbf16, #tpu.memory_space<vmem>>) attributes {dimension_semantics = [#tpu.dimension_semantics<parallel>], iteration_bounds = array<i64: 2>, scalar_prefetch = 0 : i64, scratch_operands = 4 : i64, tpu.core_type = #tpu.core_type<tc>, window_params = [{transform_indices = @transform_0, window_bounds = array<i64: 1, 16, 256>}, {transform_indices = @transform_1, window_bounds = array<i64: 1, 16, 256>}, {pipeline_mode = #tpu.pipeline_mode<synchronous>, transform_indices = @transform_2, window_bounds = array<i64: 3, 256, 256>}, {pipeline_mode = #tpu.pipeline_mode<synchronous>, transform_indices = @transform_3, window_bounds = array<i64: 3, 256, 256>}, {pipeline_mode = #tpu.pipeline_mode<synchronous>, transform_indices = @transform_4, window_bounds = array<i64: 2, 256>}, {pipeline_mode = #tpu.pipeline_mode<synchronous>, transform_indices = @transform_5, window_bounds = array<i64: 3, 256, 256>}, {pipeline_mode = #tpu.pipeline_mode<synchronous>, transform_indices = @transform_6, window_bounds = array<i64: 2, 256>}, {pipeline_mode = #tpu.pipeline_mode<synchronous>, transform_indices = @transform_7, window_bounds = array<i64: 3, 256, 256>}, {pipeline_mode = #tpu.pipeline_mode<synchronous>, transform_indices = @transform_8, window_bounds = array<i64: 2, 256>}, {pipeline_mode = #tpu.pipeline_mode<synchronous>, transform_indices = @transform_9, window_bounds = array<i64: 256, 4>}, {pipeline_mode = #tpu.pipeline_mode<synchronous>, transform_indices = @transform_10, window_bounds = array<i64: 4, 256>}, {transform_indices = @transform_11, window_bounds = array<i64: 1, 16, 256>}]} {
    %cst = arith.constant 0.000000e+00 : bf16
    %0 = vector.broadcast %cst : bf16 to vector<1x256xbf16>
    %c0 = arith.constant 0 : index
    %c0_0 = arith.constant 0 : index
    %1 = vector.load %arg13[%c0, %c0_0] : memref<18x256xbf16, #tpu.memory_space<vmem>>, vector<1x256xbf16>
    tpu.vector_store %arg13[%c0, %c0_0], %0 {strides = array<i32>} : memref<18x256xbf16, #tpu.memory_space<vmem>>, vector<1x256xbf16>,
    %c17 = arith.constant 17 : index
    %c0_1 = arith.constant 0 : index
    %2 = vector.load %arg13[%c17, %c0_1] : memref<18x256xbf16, #tpu.memory_space<vmem>>, vector<1x256xbf16>
    tpu.vector_store %arg13[%c17, %c0_1], %0 {strides = array<i32>} : memref<18x256xbf16, #tpu.memory_space<vmem>>, vector<1x256xbf16>,
    %cst_2 = arith.constant 0.000000e+00 : bf16
    %3 = vector.broadcast %cst_2 : bf16 to vector<1x256xbf16>
    %c0_3 = arith.constant 0 : index
    %c0_4 = arith.constant 0 : index
    %4 = vector.load %arg14[%c0_3, %c0_4] : memref<18x256xbf16, #tpu.memory_space<vmem>>, vector<1x256xbf16>
    tpu.vector_store %arg14[%c0_3, %c0_4], %3 {strides = array<i32>} : memref<18x256xbf16, #tpu.memory_space<vmem>>, vector<1x256xbf16>,
    %c17_5 = arith.constant 17 : index
    %c0_6 = arith.constant 0 : index
    %5 = vector.load %arg14[%c17_5, %c0_6] : memref<18x256xbf16, #tpu.memory_space<vmem>>, vector<1x256xbf16>
    tpu.vector_store %arg14[%c17_5, %c0_6], %3 {strides = array<i32>} : memref<18x256xbf16, #tpu.memory_space<vmem>>, vector<1x256xbf16>,
    %cst_7 = arith.constant 0.000000e+00 : bf16
    %6 = vector.broadcast %cst_7 : bf16 to vector<2x256xbf16>
    %c0_8 = arith.constant 0 : index
    %c0_9 = arith.constant 0 : index
    %7 = vector.load %arg15[%c0_8, %c0_9] : memref<20x256xbf16, #tpu.memory_space<vmem>>, vector<2x256xbf16>
    tpu.vector_store %arg15[%c0_8, %c0_9], %6 {strides = array<i32>} : memref<20x256xbf16, #tpu.memory_space<vmem>>, vector<2x256xbf16>,
    %c18 = arith.constant 18 : index
    %c0_10 = arith.constant 0 : index
    %8 = vector.load %arg15[%c18, %c0_10] : memref<20x256xbf16, #tpu.memory_space<vmem>>, vector<2x256xbf16>
    tpu.vector_store %arg15[%c18, %c0_10], %6 {strides = array<i32>} : memref<20x256xbf16, #tpu.memory_space<vmem>>, vector<2x256xbf16>,
    %cst_11 = arith.constant 0.000000e+00 : bf16
    %9 = vector.broadcast %cst_11 : bf16 to vector<3x256xbf16>
    %c0_12 = arith.constant 0 : index
    %c0_13 = arith.constant 0 : index
    %10 = vector.load %arg16[%c0_12, %c0_13] : memref<22x256xbf16, #tpu.memory_space<vmem>>, vector<3x256xbf16>
    tpu.vector_store %arg16[%c0_12, %c0_13], %9 {strides = array<i32>} : memref<22x256xbf16, #tpu.memory_space<vmem>>, vector<3x256xbf16>,
    %c19 = arith.constant 19 : index
    %c0_14 = arith.constant 0 : index
    %11 = vector.load %arg16[%c19, %c0_14] : memref<22x256xbf16, #tpu.memory_space<vmem>>, vector<3x256xbf16>
    tpu.vector_store %arg16[%c19, %c0_14], %9 {strides = array<i32>} : memref<22x256xbf16, #tpu.memory_space<vmem>>, vector<3x256xbf16>,
    %c0_15 = arith.constant 0 : index
    %c0_16 = arith.constant 0 : index
    %c0_17 = arith.constant 0 : index
    %12 = vector.load %arg1[%c0_15, %c0_16, %c0_17] : memref<1x16x256xbf16, #tpu.memory_space<vmem>>, vector<1x16x256xbf16>
    %13 = vector.shape_cast %12 : vector<1x16x256xbf16> to vector<16x256xbf16>
    %c1 = arith.constant 1 : index
    %c0_18 = arith.constant 0 : index
    %14 = vector.load %arg13[%c1, %c0_18] : memref<18x256xbf16, #tpu.memory_space<vmem>>, vector<16x256xbf16>
    tpu.vector_store %arg13[%c1, %c0_18], %13 {strides = array<i32>} : memref<18x256xbf16, #tpu.memory_space<vmem>>, vector<16x256xbf16>,
    %c0_19 = arith.constant 0 : index
    %c0_20 = arith.constant 0 : index
    %c0_21 = arith.constant 0 : index
    %15 = vector.load %arg2[%c0_19, %c0_20, %c0_21] : memref<1x16x256xbf16, #tpu.memory_space<vmem>>, vector<1x16x256xbf16>
    %16 = vector.shape_cast %15 : vector<1x16x256xbf16> to vector<16x256xbf16>
    %c1_22 = arith.constant 1 : index
    %c0_23 = arith.constant 0 : index
    %17 = vector.load %arg14[%c1_22, %c0_23] : memref<18x256xbf16, #tpu.memory_space<vmem>>, vector<16x256xbf16>
    tpu.vector_store %arg14[%c1_22, %c0_23], %16 {strides = array<i32>} : memref<18x256xbf16, #tpu.memory_space<vmem>>, vector<16x256xbf16>,
    %c0_24 = arith.constant 0 : index
    %c0_25 = arith.constant 0 : index
    %18 = vector.load %arg13[%c0_24, %c0_25] : memref<18x256xbf16, #tpu.memory_space<vmem>>, vector<16x256xbf16>
    %c0_26 = arith.constant 0 : index
    %c0_27 = arith.constant 0 : index
    %c0_28 = arith.constant 0 : index
    %19 = vector.load %arg3[%c0_26, %c0_27, %c0_28] : memref<3x256x256xbf16, #tpu.memory_space<vmem>>, vector<1x256x256xbf16>
    %20 = vector.shape_cast %19 : vector<1x256x256xbf16> to vector<256x256xbf16>
    %cst_29 = arith.constant dense<0.000000e+00> : vector<16x256xf32>
    %21 = tpu.matmul %18, %20, %cst_29 {dimension_numbers = #tpu.dot_dimension_numbers<[1], [0], [0], [1], [0, 0, 1, 1], [], []>} : vector<16x256xbf16>, vector<256x256xbf16>, vector<16x256xf32> -> vector<16x256xf32>
    %c1_30 = arith.constant 1 : index
    %c0_31 = arith.constant 0 : index
    %22 = vector.load %arg13[%c1_30, %c0_31] : memref<18x256xbf16, #tpu.memory_space<vmem>>, vector<16x256xbf16>
    %c1_32 = arith.constant 1 : index
    %c0_33 = arith.constant 0 : index
    %c0_34 = arith.constant 0 : index
    %23 = vector.load %arg3[%c1_32, %c0_33, %c0_34] : memref<3x256x256xbf16, #tpu.memory_space<vmem>>, vector<1x256x256xbf16>
    %24 = vector.shape_cast %23 : vector<1x256x256xbf16> to vector<256x256xbf16>
    %cst_35 = arith.constant dense<0.000000e+00> : vector<16x256xf32>
    %25 = tpu.matmul %22, %24, %cst_35 {dimension_numbers = #tpu.dot_dimension_numbers<[1], [0], [0], [1], [0, 0, 1, 1], [], []>} : vector<16x256xbf16>, vector<256x256xbf16>, vector<16x256xf32> -> vector<16x256xf32>
    %26 = arith.addf %21, %25 : vector<16x256xf32>
    %c2 = arith.constant 2 : index
    %c0_36 = arith.constant 0 : index
    %27 = vector.load %arg13[%c2, %c0_36] : memref<18x256xbf16, #tpu.memory_space<vmem>>, vector<16x256xbf16>
    %c2_37 = arith.constant 2 : index
    %c0_38 = arith.constant 0 : index
    %c0_39 = arith.constant 0 : index
    %28 = vector.load %arg3[%c2_37, %c0_38, %c0_39] : memref<3x256x256xbf16, #tpu.memory_space<vmem>>, vector<1x256x256xbf16>
    %29 = vector.shape_cast %28 : vector<1x256x256xbf16> to vector<256x256xbf16>
    %cst_40 = arith.constant dense<0.000000e+00> : vector<16x256xf32>
    %30 = tpu.matmul %27, %29, %cst_40 {dimension_numbers = #tpu.dot_dimension_numbers<[1], [0], [0], [1], [0, 0, 1, 1], [], []>} : vector<16x256xbf16>, vector<256x256xbf16>, vector<16x256xf32> -> vector<16x256xf32>
    %31 = arith.addf %26, %30 : vector<16x256xf32>
    %c0_41 = arith.constant 0 : index
    %c0_42 = arith.constant 0 : index
    %32 = vector.load %arg14[%c0_41, %c0_42] : memref<18x256xbf16, #tpu.memory_space<vmem>>, vector<16x256xbf16>
    %c0_43 = arith.constant 0 : index
    %c0_44 = arith.constant 0 : index
    %c0_45 = arith.constant 0 : index
    %33 = vector.load %arg4[%c0_43, %c0_44, %c0_45] : memref<3x256x256xbf16, #tpu.memory_space<vmem>>, vector<1x256x256xbf16>
    %34 = vector.shape_cast %33 : vector<1x256x256xbf16> to vector<256x256xbf16>
    %cst_46 = arith.constant dense<0.000000e+00> : vector<16x256xf32>
    %35 = tpu.matmul %32, %34, %cst_46 {dimension_numbers = #tpu.dot_dimension_numbers<[1], [0], [0], [1], [0, 0, 1, 1], [], []>} : vector<16x256xbf16>, vector<256x256xbf16>, vector<16x256xf32> -> vector<16x256xf32>
    %36 = arith.addf %31, %35 : vector<16x256xf32>
    %c1_47 = arith.constant 1 : index
    %c0_48 = arith.constant 0 : index
    %37 = vector.load %arg14[%c1_47, %c0_48] : memref<18x256xbf16, #tpu.memory_space<vmem>>, vector<16x256xbf16>
    %c1_49 = arith.constant 1 : index
    %c0_50 = arith.constant 0 : index
    %c0_51 = arith.constant 0 : index
    %38 = vector.load %arg4[%c1_49, %c0_50, %c0_51] : memref<3x256x256xbf16, #tpu.memory_space<vmem>>, vector<1x256x256xbf16>
    %39 = vector.shape_cast %38 : vector<1x256x256xbf16> to vector<256x256xbf16>
    %cst_52 = arith.constant dense<0.000000e+00> : vector<16x256xf32>
    %40 = tpu.matmul %37, %39, %cst_52 {dimension_numbers = #tpu.dot_dimension_numbers<[1], [0], [0], [1], [0, 0, 1, 1], [], []>} : vector<16x256xbf16>, vector<256x256xbf16>, vector<16x256xf32> -> vector<16x256xf32>
    %41 = arith.addf %36, %40 : vector<16x256xf32>
    %c2_53 = arith.constant 2 : index
    %c0_54 = arith.constant 0 : index
    %42 = vector.load %arg14[%c2_53, %c0_54] : memref<18x256xbf16, #tpu.memory_space<vmem>>, vector<16x256xbf16>
    %c2_55 = arith.constant 2 : index
    %c0_56 = arith.constant 0 : index
    %c0_57 = arith.constant 0 : index
    %43 = vector.load %arg4[%c2_55, %c0_56, %c0_57] : memref<3x256x256xbf16, #tpu.memory_space<vmem>>, vector<1x256x256xbf16>
    %44 = vector.shape_cast %43 : vector<1x256x256xbf16> to vector<256x256xbf16>
    %cst_58 = arith.constant dense<0.000000e+00> : vector<16x256xf32>
    %45 = tpu.matmul %42, %44, %cst_58 {dimension_numbers = #tpu.dot_dimension_numbers<[1], [0], [0], [1], [0, 0, 1, 1], [], []>} : vector<16x256xbf16>, vector<256x256xbf16>, vector<16x256xf32> -> vector<16x256xf32>
    %46 = arith.addf %41, %45 : vector<16x256xf32>
    %c0_59 = arith.constant 0 : index
    %c0_60 = arith.constant 0 : index
    %47 = vector.load %arg5[%c0_59, %c0_60] : memref<2x256xf32, #tpu.memory_space<vmem>>, vector<1x256xf32>
    %48 = vector.broadcast %47 : vector<1x256xf32> to vector<16x256xf32>
    %49 = arith.mulf %46, %48 : vector<16x256xf32>
    %c1_61 = arith.constant 1 : index
    %c0_62 = arith.constant 0 : index
    %50 = vector.load %arg5[%c1_61, %c0_62] : memref<2x256xf32, #tpu.memory_space<vmem>>, vector<1x256xf32>
    %51 = vector.broadcast %50 : vector<1x256xf32> to vector<16x256xf32>
    %52 = arith.addf %49, %51 : vector<16x256xf32>
    %cst_63 = arith.constant 0.000000e+00 : f32
    %53 = vector.broadcast %cst_63 : f32 to vector<16x256xf32>
    %54 = arith.maximumf %52, %53 : vector<16x256xf32>
    %55 = arith.truncf %54 : vector<16x256xf32> to vector<16x256xbf16>
    %c2_64 = arith.constant 2 : index
    %c0_65 = arith.constant 0 : index
    %56 = vector.load %arg15[%c2_64, %c0_65] : memref<20x256xbf16, #tpu.memory_space<vmem>>, vector<16x256xbf16>
    tpu.vector_store %arg15[%c2_64, %c0_65], %55 {strides = array<i32>} : memref<20x256xbf16, #tpu.memory_space<vmem>>, vector<16x256xbf16>,
    %c0_66 = arith.constant 0 : index
    %c0_67 = arith.constant 0 : index
    %57 = vector.load %arg15[%c0_66, %c0_67] : memref<20x256xbf16, #tpu.memory_space<vmem>>, vector<16x256xbf16>
    %c0_68 = arith.constant 0 : index
    %c0_69 = arith.constant 0 : index
    %c0_70 = arith.constant 0 : index
    %58 = vector.load %arg6[%c0_68, %c0_69, %c0_70] : memref<3x256x256xbf16, #tpu.memory_space<vmem>>, vector<1x256x256xbf16>
    %59 = vector.shape_cast %58 : vector<1x256x256xbf16> to vector<256x256xbf16>
    %cst_71 = arith.constant dense<0.000000e+00> : vector<16x256xf32>
    %60 = tpu.matmul %57, %59, %cst_71 {dimension_numbers = #tpu.dot_dimension_numbers<[1], [0], [0], [1], [0, 0, 1, 1], [], []>} : vector<16x256xbf16>, vector<256x256xbf16>, vector<16x256xf32> -> vector<16x256xf32>
    %c2_72 = arith.constant 2 : index
    %c0_73 = arith.constant 0 : index
    %61 = vector.load %arg15[%c2_72, %c0_73] : memref<20x256xbf16, #tpu.memory_space<vmem>>, vector<16x256xbf16>
    %c1_74 = arith.constant 1 : index
    %c0_75 = arith.constant 0 : index
    %c0_76 = arith.constant 0 : index
    %62 = vector.load %arg6[%c1_74, %c0_75, %c0_76] : memref<3x256x256xbf16, #tpu.memory_space<vmem>>, vector<1x256x256xbf16>
    %63 = vector.shape_cast %62 : vector<1x256x256xbf16> to vector<256x256xbf16>
    %cst_77 = arith.constant dense<0.000000e+00> : vector<16x256xf32>
    %64 = tpu.matmul %61, %63, %cst_77 {dimension_numbers = #tpu.dot_dimension_numbers<[1], [0], [0], [1], [0, 0, 1, 1], [], []>} : vector<16x256xbf16>, vector<256x256xbf16>, vector<16x256xf32> -> vector<16x256xf32>
    %65 = arith.addf %60, %64 : vector<16x256xf32>
    %c4 = arith.constant 4 : index
    %c0_78 = arith.constant 0 : index
    %66 = vector.load %arg15[%c4, %c0_78] : memref<20x256xbf16, #tpu.memory_space<vmem>>, vector<16x256xbf16>
    %c2_79 = arith.constant 2 : index
    %c0_80 = arith.constant 0 : index
    %c0_81 = arith.constant 0 : index
    %67 = vector.load %arg6[%c2_79, %c0_80, %c0_81] : memref<3x256x256xbf16, #tpu.memory_space<vmem>>, vector<1x256x256xbf16>
    %68 = vector.shape_cast %67 : vector<1x256x256xbf16> to vector<256x256xbf16>
    %cst_82 = arith.constant dense<0.000000e+00> : vector<16x256xf32>
    %69 = tpu.matmul %66, %68, %cst_82 {dimension_numbers = #tpu.dot_dimension_numbers<[1], [0], [0], [1], [0, 0, 1, 1], [], []>} : vector<16x256xbf16>, vector<256x256xbf16>, vector<16x256xf32> -> vector<16x256xf32>
    %70 = arith.addf %65, %69 : vector<16x256xf32>
    %c0_83 = arith.constant 0 : index
    %c0_84 = arith.constant 0 : index
    %71 = vector.load %arg7[%c0_83, %c0_84] : memref<2x256xf32, #tpu.memory_space<vmem>>, vector<1x256xf32>
    %72 = vector.broadcast %71 : vector<1x256xf32> to vector<16x256xf32>
    %73 = arith.mulf %70, %72 : vector<16x256xf32>
    %c1_85 = arith.constant 1 : index
    %c0_86 = arith.constant 0 : index
    %74 = vector.load %arg7[%c1_85, %c0_86] : memref<2x256xf32, #tpu.memory_space<vmem>>, vector<1x256xf32>
    %75 = vector.broadcast %74 : vector<1x256xf32> to vector<16x256xf32>
    %76 = arith.addf %73, %75 : vector<16x256xf32>
    %cst_87 = arith.constant 0.000000e+00 : f32
    %77 = vector.broadcast %cst_87 : f32 to vector<16x256xf32>
    %78 = arith.maximumf %76, %77 : vector<16x256xf32>
    %79 = arith.truncf %78 : vector<16x256xf32> to vector<16x256xbf16>
    %c3 = arith.constant 3 : index
    %c0_88 = arith.constant 0 : index
    %80 = vector.load %arg16[%c3, %c0_88] : memref<22x256xbf16, #tpu.memory_space<vmem>>, vector<16x256xbf16>
    tpu.vector_store %arg16[%c3, %c0_88], %79 {strides = array<i32>} : memref<22x256xbf16, #tpu.memory_space<vmem>>, vector<16x256xbf16>,
    %c0_89 = arith.constant 0 : index
    %c0_90 = arith.constant 0 : index
    %81 = vector.load %arg16[%c0_89, %c0_90] : memref<22x256xbf16, #tpu.memory_space<vmem>>, vector<16x256xbf16>
    %c0_91 = arith.constant 0 : index
    %c0_92 = arith.constant 0 : index
    %c0_93 = arith.constant 0 : index
    %82 = vector.load %arg8[%c0_91, %c0_92, %c0_93] : memref<3x256x256xbf16, #tpu.memory_space<vmem>>, vector<1x256x256xbf16>
    %83 = vector.shape_cast %82 : vector<1x256x256xbf16> to vector<256x256xbf16>
    %cst_94 = arith.constant dense<0.000000e+00> : vector<16x256xf32>
    %84 = tpu.matmul %81, %83, %cst_94 {dimension_numbers = #tpu.dot_dimension_numbers<[1], [0], [0], [1], [0, 0, 1, 1], [], []>} : vector<16x256xbf16>, vector<256x256xbf16>, vector<16x256xf32> -> vector<16x256xf32>
    %c3_95 = arith.constant 3 : index
    %c0_96 = arith.constant 0 : index
    %85 = vector.load %arg16[%c3_95, %c0_96] : memref<22x256xbf16, #tpu.memory_space<vmem>>, vector<16x256xbf16>
    %c1_97 = arith.constant 1 : index
    %c0_98 = arith.constant 0 : index
    %c0_99 = arith.constant 0 : index
    %86 = vector.load %arg8[%c1_97, %c0_98, %c0_99] : memref<3x256x256xbf16, #tpu.memory_space<vmem>>, vector<1x256x256xbf16>
    %87 = vector.shape_cast %86 : vector<1x256x256xbf16> to vector<256x256xbf16>
    %cst_100 = arith.constant dense<0.000000e+00> : vector<16x256xf32>
    %88 = tpu.matmul %85, %87, %cst_100 {dimension_numbers = #tpu.dot_dimension_numbers<[1], [0], [0], [1], [0, 0, 1, 1], [], []>} : vector<16x256xbf16>, vector<256x256xbf16>, vector<16x256xf32> -> vector<16x256xf32>
    %89 = arith.addf %84, %88 : vector<16x256xf32>
    %c6 = arith.constant 6 : index
    %c0_101 = arith.constant 0 : index
    %90 = vector.load %arg16[%c6, %c0_101] : memref<22x256xbf16, #tpu.memory_space<vmem>>, vector<16x256xbf16>
    %c2_102 = arith.constant 2 : index
    %c0_103 = arith.constant 0 : index
    %c0_104 = arith.constant 0 : index
    %91 = vector.load %arg8[%c2_102, %c0_103, %c0_104] : memref<3x256x256xbf16, #tpu.memory_space<vmem>>, vector<1x256x256xbf16>
    %92 = vector.shape_cast %91 : vector<1x256x256xbf16> to vector<256x256xbf16>
    %cst_105 = arith.constant dense<0.000000e+00> : vector<16x256xf32>
    %93 = tpu.matmul %90, %92, %cst_105 {dimension_numbers = #tpu.dot_dimension_numbers<[1], [0], [0], [1], [0, 0, 1, 1], [], []>} : vector<16x256xbf16>, vector<256x256xbf16>, vector<16x256xf32> -> vector<16x256xf32>
    %94 = arith.addf %89, %93 : vector<16x256xf32>
    %c0_106 = arith.constant 0 : index
    %c0_107 = arith.constant 0 : index
    %95 = vector.load %arg9[%c0_106, %c0_107] : memref<2x256xf32, #tpu.memory_space<vmem>>, vector<1x256xf32>
    %96 = vector.broadcast %95 : vector<1x256xf32> to vector<16x256xf32>
    %97 = arith.mulf %94, %96 : vector<16x256xf32>
    %c1_108 = arith.constant 1 : index
    %c0_109 = arith.constant 0 : index
    %98 = vector.load %arg9[%c1_108, %c0_109] : memref<2x256xf32, #tpu.memory_space<vmem>>, vector<1x256xf32>
    %99 = vector.broadcast %98 : vector<1x256xf32> to vector<16x256xf32>
    %100 = arith.addf %97, %99 : vector<16x256xf32>
    %cst_110 = arith.constant 0.000000e+00 : f32
    %101 = vector.broadcast %cst_110 : f32 to vector<16x256xf32>
    %102 = arith.maximumf %100, %101 : vector<16x256xf32>
    %cst_111 = arith.constant dense<0.000000e+00> : vector<256xf32>
    %103 = vector.multi_reduction <add>, %102, %cst_111 [0] : vector<16x256xf32> to vector<256xf32>
    %104 = vector.shape_cast %103 : vector<256xf32> to vector<1x256xf32>
    %c0_112 = arith.constant 0 : index
    %c0_113 = arith.constant 0 : index
    %105 = vector.load %arg10[%c0_112, %c0_113] : memref<256x4xf32, #tpu.memory_space<vmem>>, vector<256x4xf32>
    %cst_114 = arith.constant dense<0.000000e+00> : vector<1x4xf32>
    %106 = tpu.matmul %104, %105, %cst_114 {dimension_numbers = #tpu.dot_dimension_numbers<[1], [0], [0], [1], [0, 0, 1, 1], [], []>} : vector<1x256xf32>, vector<256x4xf32>, vector<1x4xf32> -> vector<1x4xf32>
    %cst_115 = arith.constant 0.000000e+00 : f32
    %107 = vector.broadcast %cst_115 : f32 to vector<1x4xf32>
    %108 = arith.maximumf %106, %107 : vector<1x4xf32>
    %c0_116 = arith.constant 0 : index
    %c0_117 = arith.constant 0 : index
    %109 = vector.load %arg11[%c0_116, %c0_117] : memref<4x256xf32, #tpu.memory_space<vmem>>, vector<4x256xf32>
    %cst_118 = arith.constant dense<0.000000e+00> : vector<1x256xf32>
    %110 = tpu.matmul %108, %109, %cst_118 {dimension_numbers = #tpu.dot_dimension_numbers<[1], [0], [0], [1], [0, 0, 1, 1], [], []>} : vector<1x4xf32>, vector<4x256xf32>, vector<1x256xf32> -> vector<1x256xf32>
    %111 = arith.negf %110 : vector<1x256xf32>
    %112 = math.exp %111 : vector<1x256xf32>
    %cst_119 = arith.constant 1.000000e+00 : f32
    %113 = vector.broadcast %cst_119 : f32 to vector<1x256xf32>
    %114 = arith.addf %113, %112 : vector<1x256xf32>
    %115 = arith.divf %113, %114 : vector<1x256xf32>
    %116 = vector.broadcast %115 : vector<1x256xf32> to vector<16x256xf32>
    %117 = arith.mulf %102, %116 : vector<16x256xf32>
    %118 = vector.shape_cast %117 : vector<16x256xf32> to vector<1x16x256xf32>
    %c0_120 = arith.constant 0 : index
    %c0_121 = arith.constant 0 : index
    %c0_122 = arith.constant 0 : index
    %119 = vector.load %arg12[%c0_120, %c0_121, %c0_122] : memref<1x16x256xf32, #tpu.memory_space<vmem>>, vector<1x16x256xf32>
    tpu.vector_store %arg12[%c0_120, %c0_121, %c0_122], %118 {strides = array<i32>} : memref<1x16x256xf32, #tpu.memory_space<vmem>>, vector<1x16x256xf32>,
    return
  }
  func.func @transform_0(%arg0: i32) -> (i32, i32, i32) {
    %c0_i32 = arith.constant 0 : i32
    %c0_i32_0 = arith.constant 0 : i32
    %c0_i32_1 = arith.constant 0 : i32
    return %arg0, %c0_i32, %c0_i32_0 : i32, i32, i32
  }
  func.func @transform_1(%arg0: i32) -> (i32, i32, i32) {
    %c0_i32 = arith.constant 0 : i32
    %c0_i32_0 = arith.constant 0 : i32
    %c0_i32_1 = arith.constant 0 : i32
    return %arg0, %c0_i32, %c0_i32_0 : i32, i32, i32
  }
  func.func @transform_2(%arg0: i32) -> (i32, i32, i32) {
    %c0_i32 = arith.constant 0 : i32
    %c0_i32_0 = arith.constant 0 : i32
    %c0_i32_1 = arith.constant 0 : i32
    %c0_i32_2 = arith.constant 0 : i32
    return %c0_i32, %c0_i32_0, %c0_i32_1 : i32, i32, i32
  }
  func.func @transform_3(%arg0: i32) -> (i32, i32, i32) {
    %c0_i32 = arith.constant 0 : i32
    %c0_i32_0 = arith.constant 0 : i32
    %c0_i32_1 = arith.constant 0 : i32
    %c0_i32_2 = arith.constant 0 : i32
    return %c0_i32, %c0_i32_0, %c0_i32_1 : i32, i32, i32
  }
  func.func @transform_4(%arg0: i32) -> (i32, i32) {
    %c0_i32 = arith.constant 0 : i32
    %c0_i32_0 = arith.constant 0 : i32
    %c0_i32_1 = arith.constant 0 : i32
    return %c0_i32, %c0_i32_0 : i32, i32
  }
  func.func @transform_5(%arg0: i32) -> (i32, i32, i32) {
    %c0_i32 = arith.constant 0 : i32
    %c0_i32_0 = arith.constant 0 : i32
    %c0_i32_1 = arith.constant 0 : i32
    %c0_i32_2 = arith.constant 0 : i32
    return %c0_i32, %c0_i32_0, %c0_i32_1 : i32, i32, i32
  }
  func.func @transform_6(%arg0: i32) -> (i32, i32) {
    %c0_i32 = arith.constant 0 : i32
    %c0_i32_0 = arith.constant 0 : i32
    %c0_i32_1 = arith.constant 0 : i32
    return %c0_i32, %c0_i32_0 : i32, i32
  }
  func.func @transform_7(%arg0: i32) -> (i32, i32, i32) {
    %c0_i32 = arith.constant 0 : i32
    %c0_i32_0 = arith.constant 0 : i32
    %c0_i32_1 = arith.constant 0 : i32
    %c0_i32_2 = arith.constant 0 : i32
    return %c0_i32, %c0_i32_0, %c0_i32_1 : i32, i32, i32
  }
  func.func @transform_8(%arg0: i32) -> (i32, i32) {
    %c0_i32 = arith.constant 0 : i32
    %c0_i32_0 = arith.constant 0 : i32
    %c0_i32_1 = arith.constant 0 : i32
    return %c0_i32, %c0_i32_0 : i32, i32
  }
  func.func @transform_9(%arg0: i32) -> (i32, i32) {
    %c0_i32 = arith.constant 0 : i32
    %c0_i32_0 = arith.constant 0 : i32
    %c0_i32_1 = arith.constant 0 : i32
    return %c0_i32, %c0_i32_0 : i32, i32
  }
  func.func @transform_10(%arg0: i32) -> (i32, i32) {
    %c0_i32 = arith.constant 0 : i32
    %c0_i32_0 = arith.constant 0 : i32
    %c0_i32_1 = arith.constant 0 : i32
    return %c0_i32, %c0_i32_0 : i32, i32
  }
  func.func @transform_11(%arg0: i32) -> (i32, i32, i32) {
    %c0_i32 = arith.constant 0 : i32
    %c0_i32_0 = arith.constant 0 : i32
    %c0_i32_1 = arith.constant 0 : i32
    return %arg0, %c0_i32, %c0_i32_0 : i32, i32, i32
  }
}

</mosaic_0001>

<bundles_post_ra>
// kernel: tile.43
= control target key start
LH: loop header
LB: loop body
LE: loop exit
PB: predicated region body
PF: predicated region fallthrough
CT: control target
= control target key end

     0   :  { %s28_s0 = inlined_call_operand.vmem [shape: f32[16], index: 0, kind: input, shape index: {}]   ;;  %s29_s1 = inlined_call_operand.vmem [shape: f32[16,16], index: 1, kind: output, shape index: {}]  }
   0x1   :  { %v4_v0 = vld [vmem:[%s28_s0] ss:$0 sm:$0xff] }
   0x2   :  { %5 = vst [vmem:[%s29_s1] sm:$0xff] %v4_v0  ;;  %8 = vst [vmem:[%s29_s1 + $0x8] sm:$0xff] %v4_v0 }

// kernel: tile.48
= control target key start
LH: loop header
LB: loop body
LE: loop exit
PB: predicated region body
PF: predicated region fallthrough
CT: control target
= control target key end

     0   :  { %s7_s6 = smov 3  ;;  %s21_s9 = smov 3  ;;  %vm4_vm0 = vcmask 130048   ;;  %vm11_vm1 = vcmask 1048448   ;;  %vm18_vm2 = vcmask 917248   ;;  %vm25_vm3 = vcmask 786048   ;;  %s128_s0 = inlined_call_operand.vmem [shape: f32[16,16], index: 0, kind: input, shape index: {}]   ;;  %s129_s1 = inlined_call_operand.vmem [shape: f32[1,256], index: 1, kind: output, shape index: {}]  }
   0x1   :  { %v66_v0 = vld [vmem:[%s128_s0 + $0x7] ss:$8 sm:%s7_s6]   ;;  %s81_s10 = smov 112   ;;  %v68_v1 = vld [vmem:[%s128_s0 + $0x5] ss:$8 sm:%s21_s9]   ;;  %s14_s13 = smov 3 }
   0x2   :  { %9 = vrot.lane.b32.xlu0 %v66_v0, %s81_s10  ;;  %s82_s14 = smov 80   ;;  %v67_v2 = vld [vmem:[%s128_s0 + $0x6] ss:$8 sm:%s14_s13]   ;;  %s28_s17 = smov 3  ;;  %vm32_vm4 = vcmask 654848   ;;  %vm39_vm5 = vcmask 523648  }
   0x3   :  { %23 = vrot.lane.b32.xlu1 %v68_v1, %s82_s14  ;;  %v69_v3 = vld [vmem:[%s128_s0 + $0x4] ss:$8 sm:%s28_s17]   ;;  %s35_s20 = smov 3  ;;  %s42_s21 = smov 3  ;;  %vm46_vm6 = vcmask 392448   ;;  %vm53_vm7 = vcmask 261248  }
   0x4   :  { %s83_s22 = smov 96   ;;  %s84_s23 = smov 64   ;;  %v70_v4 = vld [vmem:[%s128_s0 + $0x3] ss:$8 sm:%s35_s20]   ;;  %v71_v5 = vld [vmem:[%s128_s0 + $0x2] ss:$8 sm:%s42_s21]  }
   0x5   :  { %s2_s26 = smov 3  ;;  %s49_s29 = smov 3 }
   0x6   :  { %16 = vrot.lane.b32.xlu0 %v67_v2, %s83_s22  ;;  %v3_v6 = vld [vmem:[%s128_s0] ss:$8 sm:%s2_s26]   ;;  %s85_s3 = smov 48   ;;  %s86_s4 = smov 32  }
   0x7   :  { %30 = vrot.lane.b32.xlu1 %v69_v3, %s84_s23  ;;  %5 = vst.msk [vmem:[#allocation0] ss:$8 sm:$0x3] %vm4_vm0, %v3_v6   ;;  %v72_v7 = vld [vmem:[%s128_s0 + $0x1] ss:$8 sm:%s49_s29]   ;;  %s87_s0 = smov 16  }
   0xa   :  { %37 = vrot.lane.b32.xlu0 %v70_v4, %s85_s3 }
   0xb   :  { %44 = vrot.lane.b32.xlu1 %v71_v5, %s86_s4 }
   0xe   :  { %51 = vrot.lane.b32.xlu0 %v72_v7, %s87_s0 }
  0x74   :  { %v10_v8 = vpop.permute.xlu0 %9  }
  0x75   :  { %12 = vst.msk [vmem:[#allocation0] ss:$8 sm:$0x3] %vm11_vm1, %v10_v8   ;;  %v24_v9 = vpop.permute.xlu1 %23  }
  0x78   :  { %v17_v10 = vpop.permute.xlu0 %16  }
  0x79   :  { %19 = vst.msk [vmem:[#allocation0] ss:$8 sm:$0x3] %vm18_vm2, %v17_v10   ;;  %v31_v11 = vpop.permute.xlu1 %30  }
  0x7a   :  { %26 = vst.msk [vmem:[#allocation0] ss:$8 sm:$0x3] %vm25_vm3, %v24_v9  }
  0x7b   :  { %33 = vst.msk [vmem:[#allocation0] ss:$8 sm:$0x3] %vm32_vm4, %v31_v11  }
  0x7c   :  { %v38_v12 = vpop.permute.xlu0 %37  }
  0x7d   :  { %40 = vst.msk [vmem:[#allocation0] ss:$8 sm:$0x3] %vm39_vm5, %v38_v12   ;;  %v45_v13 = vpop.permute.xlu1 %44  }
  0x7e   :  { %47 = vst.msk [vmem:[#allocation0] ss:$8 sm:$0x3] %vm46_vm6, %v45_v13  }
  0x80   :  { %v52_v14 = vpop.permute.xlu0 %51  }
  0x81   :  { %54 = vst.msk [vmem:[#allocation0] ss:$8 sm:$0x3] %vm53_vm7, %v52_v14  }
  0x88   :  { %v58_v15 = vld [vmem:[#allocation0] sm:$0x1]  ;;  %v62_v16 = vld [vmem:[#allocation0 + $0x8] sm:$0x1] }
  0x89   :  { %60 = vst [vmem:[%s129_s1] sm:$0x1] %v58_v15  ;;  %73 = vst [vmem:[%s129_s1 + $0x1] sm:$0x1] %v62_v16 }

// kernel: tile.79
= control target key start
LH: loop header
LB: loop body
LE: loop exit
PB: predicated region body
PF: predicated region fallthrough
CT: control target
= control target key end

     0   :  { %s15_s6 = smov 3  ;;  %s18_s7 = smov 12  ;;  %vm20_vm0 = vcmask 1043458   ;;  %vm25_vm1 = vcmask 1045508   ;;  %vm30_vm2 = vcmask 1047558   ;;  %vm4_vm3 = vcmask 1047556   ;;  %s364_s0 = inlined_call_operand.vmem [shape: f32[4,16,16], index: 0, kind: input, shape index: {}]   ;;  %s365_s1 = inlined_call_operand.vmem [shape: f32[4,256], index: 1, kind: output, shape index: {}]  }
   0x1   :  { %v193_v0 = vld [vmem:[%s364_s0 + $0x7] ss:$16 sm:%s15_s6]   ;;  %s23_s12 = smov 48  ;;  %s28_s13 = smov 192  ;;  %vm6_vm4 = vcmask 130048   ;;  %vm34_vm5 = vcmask 1048448  }
   0x2   :  { %v194_v1 = vld [vmem:[%s364_s0 + $0x7] ss:$16 sm:%s18_s7]   ;;  %v195_v3 = vld [vmem:[%s364_s0 - $0x31] ss:$16 sm:%s23_s12]   ;;  %s63_s18 = smov 3  ;;  %s66_s21 = smov 12 }
   0x3   :  { %v21_v2 = vsel %vm20_vm0, %v194_v1, %v193_v0  ;;  %v196_v4 = vld [vmem:[%s364_s0 - $0x31] ss:$16 sm:%s28_s13]   ;;  %v201_v6 = vld [vmem:[%s364_s0 + $0x5] ss:$16 sm:%s63_s18]   ;;  %s71_s22 = smov 48  ;;  %s76_s27 = smov 192 }
   0x4   :  { %v26_v5 = vsel %vm25_vm1, %v195_v3, %v21_v2  ;;  %v202_v8 = vld [vmem:[%s364_s0 + $0x5] ss:$16 sm:%s66_s21]   ;;  %v203_v9 = vld [vmem:[%s364_s0 - $0x33] ss:$16 sm:%s71_s22]   ;;  %s229_s28 = smov 112   ;;  %s39_s2 = smov 3 }
   0x5   :  { %v31_v7 = vsel %vm30_vm2, %v196_v4, %v26_v5  ;;  %v69_v10 = vsel %vm20_vm0, %v202_v8, %v201_v6  ;;  %v204_v11 = vld [vmem:[%s364_s0 - $0x33] ss:$16 sm:%s76_s27]   ;;  %s42_s3 = smov 12  ;;  %v197_v13 = vld [vmem:[%s364_s0 + $0x6] ss:$16 sm:%s39_s2]   ;;  %s47_s8 = smov 48 }
   0x6   :  { %32 = vrot.lane.b32.xlu0 %v31_v7, %s229_s28  ;;  %v74_v12 = vsel %vm25_vm1, %v203_v9, %v69_v10  ;;  %v198_v14 = vld [vmem:[%s364_s0 + $0x6] ss:$16 sm:%s42_s3]   ;;  %s52_s9 = smov 192  ;;  %s87_s14 = smov 3  ;;  %vm58_vm6 = vcmask 917248   ;;  %vm82_vm7 = vcmask 786048  }
   0x7   :  { %v79_v15 = vsel %vm30_vm2, %v204_v11, %v74_v12  ;;  %v45_v16 = vsel %vm20_vm0, %v198_v14, %v197_v13  ;;  %v199_v17 = vld [vmem:[%s364_s0 - $0x32] ss:$16 sm:%s47_s8]   ;;  %s230_s15 = smov 80   ;;  %v205_v20 = vld [vmem:[%s364_s0 + $0x4] ss:$16 sm:%s87_s14]   ;;  %s90_s18 = smov 12 }
   0x8   :  { %v200_v18 = vld [vmem:[%s364_s0 - $0x32] ss:$16 sm:%s52_s9]   ;;  %80 = vrot.lane.b32.xlu1 %v79_v15, %s230_s15  ;;  %v50_v19 = vsel %vm25_vm1, %v199_v17, %v45_v16  ;;  %s95_s19 = smov 48  ;;  %s100_s24 = smov 192  ;;  %vm106_vm8 = vcmask 654848   ;;  %vm130_vm9 = vcmask 523648  }
   0x9   :  { %v55_v21 = vsel %vm30_vm2, %v200_v18, %v50_v19  ;;  %v206_v22 = vld [vmem:[%s364_s0 + $0x4] ss:$16 sm:%s90_s18]   ;;  %v207_v23 = vld [vmem:[%s364_s0 - $0x34] ss:$16 sm:%s95_s19]   ;;  %s231_s25 = smov 96   ;;  %s111_s28 = smov 3 }
   0xa   :  { %56 = vrot.lane.b32.xlu0 %v55_v21, %s231_s25  ;;  %v93_v24 = vsel %vm20_vm0, %v206_v22, %v205_v20  ;;  %v208_v25 = vld [vmem:[%s364_s0 - $0x34] ss:$16 sm:%s100_s24]   ;;  %s114_s29 = smov 12  ;;  %s119_s5 = smov 48  ;;  %vm154_vm10 = vcmask 392448   ;;  %vm178_vm11 = vcmask 261248  }
   0xb   :  { %v98_v26 = vsel %vm25_vm1, %v207_v23, %v93_v24  ;;  %v209_v27 = vld [vmem:[%s364_s0 + $0x3] ss:$16 sm:%s111_s28]   ;;  %s124_s6 = smov 192  ;;  %v211_v31 = vld [vmem:[%s364_s0 - $0x35] ss:$16 sm:%s119_s5]   ;;  %s135_s11 = smov 3 }
   0xc   :  { %v210_v28 = vld [vmem:[%s364_s0 + $0x3] ss:$16 sm:%s114_s29]   ;;  %v103_v29 = vsel %vm30_vm2, %v208_v25, %v98_v26  ;;  %v212_v32 = vld [vmem:[%s364_s0 - $0x35] ss:$16 sm:%s124_s6]   ;;  %s232_s12 = smov 64   ;;  %s138_s15 = smov 12 }
   0xd   :  { %v117_v30 = vsel %vm20_vm0, %v210_v28, %v209_v27  ;;  %104 = vrot.lane.b32.xlu1 %v103_v29, %s232_s12  ;;  %v213_v34 = vld [vmem:[%s364_s0 + $0x2] ss:$16 sm:%s135_s11]   ;;  %s143_s16 = smov 48  ;;  %s148_s21 = smov 192 }
   0xe   :  { %v122_v33 = vsel %vm25_vm1, %v211_v31, %v117_v30  ;;  %v214_v36 = vld [vmem:[%s364_s0 + $0x2] ss:$16 sm:%s138_s15]   ;;  %v215_v37 = vld [vmem:[%s364_s0 - $0x36] ss:$16 sm:%s143_s16]   ;;  %s233_s22 = smov 48   ;;  %s159_s25 = smov 3 }
   0xf   :  { %v127_v35 = vsel %vm30_vm2, %v212_v32, %v122_v33  ;;  %v141_v38 = vsel %vm20_vm0, %v214_v36, %v213_v34  ;;  %v216_v39 = vld [vmem:[%s364_s0 - $0x36] ss:$16 sm:%s148_s21]   ;;  %s162_s26 = smov 12  ;;  %v217_v41 = vld [vmem:[%s364_s0 + $0x1] ss:$16 sm:%s159_s25]   ;;  %s167_s2 = smov 48 }
  0x10   :  { %128 = vrot.lane.b32.xlu0 %v127_v35, %s233_s22  ;;  %v146_v40 = vsel %vm25_vm1, %v215_v37, %v141_v38  ;;  %v218_v42 = vld [vmem:[%s364_s0 + $0x1] ss:$16 sm:%s162_s26]   ;;  %s172_s3 = smov 192  ;;  %s234_s8 = smov 32  }
  0x11   :  { %v151_v43 = vsel %vm30_vm2, %v216_v39, %v146_v40  ;;  %v165_v44 = vsel %vm20_vm0, %v218_v42, %v217_v41  ;;  %v219_v45 = vld [vmem:[%s364_s0 - $0x37] ss:$16 sm:%s167_s2]   ;;  %v2_v48 = vld [vmem:[%s364_s0] ss:$8 sm:$0xf]  }
  0x12   :  { %v220_v46 = vld [vmem:[%s364_s0 - $0x37] ss:$16 sm:%s172_s3]   ;;  %152 = vrot.lane.b32.xlu1 %v151_v43, %s234_s8  ;;  %v170_v47 = vsel %vm25_vm1, %v219_v45, %v165_v44  ;;  %v3_v49 = vld [vmem:[%s364_s0] ss:$8 sm:$0xf0]   ;;  %s235_s0 = smov 16  }
  0x13   :  { %v175_v50 = vsel %vm30_vm2, %v220_v46, %v170_v47  ;;  %v5_v51 = vsel %vm4_vm3, %v3_v49, %v2_v48 }
  0x14   :  { %176 = vrot.lane.b32.xlu0 %v175_v50, %s235_s0  ;;  %7 = vst.msk [vmem:[#allocation0] ss:$8 sm:$0x3] %vm6_vm4, %v5_v51   ;;  %9 = vst.msk [vmem:[#allocation0 - $0xf] ss:$8 sm:$0xc] %vm6_vm4, %v5_v51  }
  0x15   :  { %11 = vst.msk [vmem:[#allocation0 - $0x1e] ss:$8 sm:$0x30] %vm6_vm4, %v5_v51   ;;  %13 = vst.msk [vmem:[#allocation0 - $0x2d] ss:$8 sm:$0xc0] %vm6_vm4, %v5_v51  }
  0x78   :  { %v33_v52 = vpop.permute.xlu0 %32  }
  0x79   :  { %35 = vst.msk [vmem:[#allocation0] sm:$0xf] %vm34_vm5, %v33_v52   ;;  %37 = vst.msk [vmem:[#allocation0 + $0x4] sm:$0xf0] %vm34_vm5, %v33_v52  }
  0x7a   :  { %v81_v53 = vpop.permute.xlu1 %80  }
  0x7c   :  { %v57_v54 = vpop.permute.xlu0 %56  }
  0x7d   :  { %59 = vst.msk [vmem:[#allocation0] sm:$0xf] %vm58_vm6, %v57_v54   ;;  %61 = vst.msk [vmem:[#allocation0 + $0x4] sm:$0xf0] %vm58_vm6, %v57_v54  }
  0x7e   :  { %83 = vst.msk [vmem:[#allocation0] sm:$0xf] %vm82_vm7, %v81_v53   ;;  %85 = vst.msk [vmem:[#allocation0 + $0x4] sm:$0xf0] %vm82_vm7, %v81_v53  }
  0x7f   :  { %v105_v55 = vpop.permute.xlu1 %104  }
  0x80   :  { %107 = vst.msk [vmem:[#allocation0] sm:$0xf] %vm106_vm8, %v105_v55   ;;  %109 = vst.msk [vmem:[#allocation0 + $0x4] sm:$0xf0] %vm106_vm8, %v105_v55  }
  0x82   :  { %v129_v56 = vpop.permute.xlu0 %128  }
  0x83   :  { %131 = vst.msk [vmem:[#allocation0] sm:$0xf] %vm130_vm9, %v129_v56   ;;  %133 = vst.msk [vmem:[#allocation0 + $0x4] sm:$0xf0] %vm130_vm9, %v129_v56  }
  0x84   :  { %v153_v57 = vpop.permute.xlu1 %152  }
  0x85   :  { %155 = vst.msk [vmem:[#allocation0] sm:$0xf] %vm154_vm10, %v153_v57   ;;  %157 = vst.msk [vmem:[#allocation0 + $0x4] sm:$0xf0] %vm154_vm10, %v153_v57  }
  0x86   :  { %v177_v58 = vpop.permute.xlu0 %176  }
  0x87   :  { %179 = vst.msk [vmem:[#allocation0] sm:$0xf] %vm178_vm11, %v177_v58   ;;  %181 = vst.msk [vmem:[#allocation0 + $0x4] sm:$0xf0] %vm178_vm11, %v177_v58  }
  0x8e   :  { %v185_v59 = vld [vmem:[#allocation0] sm:$0xf]  ;;  %v189_v60 = vld [vmem:[#allocation0 + $0x8] sm:$0xf] }
  0x8f   :  { %187 = vst [vmem:[%s365_s1] sm:$0xf] %v185_v59  ;;  %221 = vst [vmem:[%s365_s1 + $0x4] sm:$0xf] %v189_v60 }

// kernel: se_up_forward.1
= control target key start
LH: loop header
LB: loop body
LE: loop exit
PB: predicated region body
PF: predicated region fallthrough
CT: control target
= control target key end

     0   :  { %s5594_s17 = smov 0   ;;  %s7152_s0 = inlined_call_operand.vmem [shape: bf16[2,16,256], index: 0, kind: input, shape index: {}]   ;;  %s7153_s1 = inlined_call_operand.vmem [shape: bf16[2,16,256], index: 1, kind: input, shape index: {}]   ;;  %s7154_s2 = inlined_call_operand.vmem [shape: bf16[3,256,256], index: 2, kind: input, shape index: {}]   ;;  %s7155_s3 = inlined_call_operand.vmem [shape: bf16[3,256,256], index: 3, kind: input, shape index: {}]   ;;  %s7156_s4 = inlined_call_operand.vmem [shape: f32[2,256], index: 4, kind: input, shape index: {}]   ;;  %s7157_s5 = inlined_call_operand.vmem [shape: bf16[3,256,256], index: 5, kind: input, shape index: {}]   ;;  %s7158_s6 = inlined_call_operand.vmem [shape: f32[2,256], index: 6, kind: input, shape index: {}]   ;;  %s7159_s7 = inlined_call_operand.vmem [shape: bf16[3,256,256], index: 7, kind: input, shape index: {}]   ;;  %s7160_s8 = inlined_call_operand.vmem [shape: f32[2,256], index: 8, kind: input, shape index: {}]   ;;  %s7161_s9 = inlined_call_operand.vmem [shape: f32[256,4], index: 9, kind: input, shape index: {}]   ;;  %s7162_s10 = inlined_call_operand.vmem [shape: f32[4,256], index: 10, kind: input, shape index: {}]   ;;  %s7163_s11 = inlined_call_operand.vmem [shape: f32[2,16,256], index: 11, kind: output, shape index: {}]  }
   0x1 LB: > { %s4108_s18 = sadd.s32 4294967295, %s5530_s17   ;;  %p4112_p0 = scmp.ge.s32.totalorder %s5530_s17, 1  ;;  %s5530_s17 = sphi %s5594_s17, %s21_s17  }
   0x2   : > { %p347_p1 = scmp.lt.s32.totalorder %s5530_s17, 3 }
   0x4   : > { %p348_p2 = pnand %p4112_p0, %p347_p1 }
   0x5   : > { %v4927_v0 = vld [vmem:[%s7154_s2 + $0x104] ss:$8 sps:$4 sm:$0xff] (!%p348_p2)   ;;  %v4929_v1 = vld [vmem:[%s7154_s2 + $0x100] ss:$8 sps:$4 sm:$0xff] (!%p348_p2)   ;;  %v4930_v2 = vld [vmem:[%s7154_s2 + $0x114] ss:$8 sps:$4 sm:$0xff] (!%p348_p2)  }
   0x6   : > { %351 = sbr.rel (%p348_p2) target bundleno = 1834 (0x72a), region = 64  ;;  %787 = vmatprep.subr.bf16.mxu0 (!%p348_p2), %v4927_v0  ;;  %v4932_v3 = vld [vmem:[%s7154_s2 + $0x110] ss:$8 sps:$4 sm:$0xff] (!%p348_p2)   ;;  %v4933_v4 = vld [vmem:[%s7154_s2 + $0x124] ss:$8 sps:$4 sm:$0xff] (!%p348_p2)   ;;  %p392_p3 = scmp.lt.s32.totalorder (!%p348_p2), %s4108_s18, 1 }
   0x7   : > { %788 = vmatpush1.bf16.msra.mxu0 (!%p348_p2), %v4929_v1  ;;  %v4935_v5 = vld [vmem:[%s7154_s2 + $0x120] ss:$8 sps:$4 sm:$0xff] (!%p348_p2)   ;;  %v4936_v6 = vld [vmem:[%s7154_s2 + $0x134] ss:$8 sps:$4 sm:$0xff] (!%p348_p2)   ;;  %v4938_v7 = vld [vmem:[%s7154_s2 + $0x130] ss:$8 sps:$4 sm:$0xff] (!%p348_p2)  }
   0x8   : > { %789 = vmatprep.subr.bf16.mxu0 (!%p348_p2), %v4930_v2  ;;  %v4939_v8 = vld [vmem:[%s7154_s2 + $0x144] ss:$8 sps:$4 sm:$0xff] (!%p348_p2)   ;;  %v4941_v9 = vld [vmem:[%s7154_s2 + $0x140] ss:$8 sps:$4 sm:$0xff] (!%p348_p2)   ;;  %v4942_v10 = vld [vmem:[%s7154_s2 + $0x154] ss:$8 sps:$4 sm:$0xff] (!%p348_p2)  }
   0x9   : > { %vm409_vm0 = vsmask.f32 (!%p348_p2), 256  ;;  %v4944_v11 = vld [vmem:[%s7154_s2 + $0x150] ss:$8 sps:$4 sm:$0xff] (!%p348_p2)   ;;  %vm412_vm1 = vsmask.f32 (!%p348_p2), 4352 }
   0xa   : > { %v4945_v12 = vld [vmem:[%s7154_s2 + $0x164] ss:$8 sps:$4 sm:$0xff] (!%p348_p2)   ;;  %vm408_vm2 = vcmask (!%p348_p2), 1040384   ;;  %vm411_vm3 = vcmask (!%p348_p2), 1044484   ;;  %v4947_v13 = vld [vmem:[%s7154_s2 + $0x160] ss:$8 sps:$4 sm:$0xff] (!%p348_p2)  }
   0xb   : > { %790 = vmatpush1.bf16.msra.mxu0 (!%p348_p2), %v4932_v3  ;;  %vm410_vm4 = vmand (!%p348_p2), %vm408_vm2, %vm409_vm0  ;;  %v415_v14 = vld [vmem:[#allocation2] sm:$0x11] (!%p348_p2)  ;;  %vm418_vm5 = vsmask.f32 (!%p348_p2), 7938  ;;  %v4948_v15 = vld [vmem:[%s7154_s2 + $0x174] ss:$8 sps:$4 sm:$0xff] (!%p348_p2)  }
   0xc   : > { %791 = vmatprep.subr.bf16.mxu0 (!%p348_p2), %v4933_v4  ;;  %vm413_vm6 = vmand (!%p348_p2), %vm411_vm3, %vm412_vm1  ;;  %vm420_vm7 = vsmask.f32 (!%p348_p2), 7954  ;;  %vm456_vm9 = vsmask.f32 (!%p348_p2), 4368  ;;  %v423_v22 = vld [vmem:[#allocation2 + $0x10] sm:$0x11] (!%p348_p2) }
   0xd   : > { %s7185_s18 = smov (!%p392_p3, %s4108_s18), 1  ;;  %vm5658_vm8 = vmor %vm413_vm6, %vm410_vm4  ;;  %vm478_vm12 = vcmask 1043456   ;;  %vm480_vm14 = vcmask 1047556   ;;  %v4950_v29 = vld [vmem:[%s7154_s2 + $0x170] ss:$8 sps:$4 sm:$0xff]   ;;  %vm1074_vm6 = vcmask 1046528  }
   0xe   : > { %s4807_s24 = sshll.u32 %s7185_s18, 4  ;;  %v416_v20 = vsel %vm5658_vm8, 0, %v415_v14  ;;  %vm5666_vm10 = vmand %vm408_vm2, %vm418_vm5  ;;  %v4951_v33 = vld [vmem:[%s7154_s2 + $0x184] ss:$8 sps:$4 sm:$0xff]   ;;  %v4953_v39 = vld [vmem:[%s7154_s2 + $0x180] ss:$8 sps:$4 sm:$0xff]  }
   0xf   : > { %792 = vmatpush1.bf16.msra.mxu0 %v4935_v5  ;;  %s396_s12 = scalar_lea.vmem %s7152_s0, %s4807_s24  ;;  %417 = vst [vmem:[#allocation2] sm:$0x11] %v416_v20  ;;  %vm5672_vm11 = vmand %vm411_vm3, %vm420_vm7  ;;  %v4954_v40 = vld [vmem:[%s7154_s2 + $0x194] ss:$8 sps:$4 sm:$0xff]   ;;  %v4956_v44 = vld [vmem:[%s7154_s2 + $0x190] ss:$8 sps:$4 sm:$0xff]   ;;  %s401_s21 = scalar_lea.vmem %s7153_s1, %s4807_s24 }
  0x10   : > { %793 = vmatprep.subr.bf16.mxu0 %v4936_v6  ;;  %v454_v16 = vld [vmem:[%s396_s12] sm:$0xff]  ;;  %v455_v18 = vld [vmem:[%s396_s12 + $0x8] sm:$0xff]  ;;  %vm422_vm13 = vmor %vm5672_vm11, %vm5666_vm10  ;;  %vm438_vm10 = vsmask.f32 5376  ;;  %s4809_s28 = sshll.u32 %s7185_s18, 5 }
  0x11   : > { %v459_v19 = vshrl.u32 %v454_v16, 16  ;;  %v467_v23 = vshrl.u32 %v455_v18, 16  ;;  %v470_v24 = vshll.u32 %v455_v18, 16  ;;  %v462_v27 = vshll.u32 %v454_v16, 16  ;;  %vm5690_vm15 = vmor %vm409_vm0, %vm456_vm9  ;;  %v4957_v45 = vld [vmem:[%s7154_s2 + $0x1a4] ss:$8 sps:$4 sm:$0xff]   ;;  %s406_s12 = scalar_lea.vmem %s7163_s11, %s4809_s28 }
  0x12   : > { %v424_v30 = vsel %vm422_vm13, 0, %v423_v22  ;;  %vm5699_vm1 = vmand %vm478_vm12, %vm418_vm5  ;;  %v4959_v49 = vld [vmem:[%s7154_s2 + $0x1a0] ss:$8 sps:$4 sm:$0xff]   ;;  %v4960_v51 = vld [vmem:[%s7154_s2 + $0x1b4] ss:$8 sps:$4 sm:$0xff]   ;;  %vm437_vm9 = vcmask 1045508  }
  0x13   : > { %794 = vmatpush1.bf16.msra.mxu0 %v4938_v7  ;;  %v461_v26 = vrot.slane %v459_v19, 7  ;;  %v469_v28 = vrot.slane %v467_v23, 7  ;;  %425 = vst [vmem:[#allocation2 + $0x10] sm:$0x11] %v424_v30  ;;  %vm5704_vm0 = vmand %vm480_vm14, %vm420_vm7  ;;  %v4962_v52 = vld [vmem:[%s7154_s2 + $0x1b0] ss:$8 sps:$4 sm:$0xff]  }
  0x14   : > { %795 = vmatprep.subr.bf16.mxu0 %v4939_v8  ;;  %vm482_vm4 = vmor %vm5704_vm0, %vm5699_vm1  ;;  %v4963_v53 = vld [vmem:[%s7154_s2 + $0x1c4] ss:$8 sps:$4 sm:$0xff]   ;;  %v4965_v58 = vld [vmem:[%s7154_s2 + $0x1c0] ss:$8 sps:$4 sm:$0xff]   ;;  %vm600_vm5 = vsmask.f32 7424 }
  0x15   : > { %v465_v32 = vrot.slane %v461_v26, 4  ;;  %v472_v34 = vor.u32 %v470_v24, %v469_v28  ;;  %v464_v36 = vor.u32 %v462_v27, %v461_v26  ;;  %v474_v41 = vrot.slane %v469_v28, 4  ;;  %v4966_v62 = vld [vmem:[%s7154_s2 + $0x1d4] ss:$8 sps:$4 sm:$0xff]   ;;  %v4968_v0 = vld [vmem:[%s7154_s2 + $0x1d0] ss:$8 sps:$4 sm:$0xff]   ;;  %vm2124_vm7 = vmor %vm408_vm2, %vm411_vm3 }
  0x16   : > { %v483_v42 = vld [vmem:[#allocation2] sm:$0xff]  ;;  %v4982_v16 = vld [vmem:[%s7154_s2 + $0x14] ss:$8 sps:$4 sm:$0xff]   ;;  %v4980_v18 = vld [vmem:[%s7154_s2 + $0x10] ss:$8 sps:$4 sm:$0xff]   ;;  %vm2684_vm2 = vcmask 1045504  }
  0x17   : > { %796 = vmatpush1.bf16.msra.mxu0 %v4941_v9  ;;  %v5710_v38 = vsel %vm5690_vm15, %v465_v32, %v472_v34  ;;  %v484_v43 = vsel %vm482_vm4, %v464_v36, %v483_v42  ;;  %v4969_v4 = vld [vmem:[%s7154_s2 + $0x1e4] ss:$8 sps:$4 sm:$0xff]   ;;  %v4971_v5 = vld [vmem:[%s7154_s2 + $0x1e0] ss:$8 sps:$4 sm:$0xff]   ;;  %v4972_v9 = vld [vmem:[%s7154_s2 + $0x1f4] ss:$8 sps:$4 sm:$0xff]  }
  0x18   : > { %797 = vmatprep.subr.bf16.mxu0 %v4942_v10  ;;  %485 = vst [vmem:[#allocation2] sm:$0xff] %v484_v43  ;;  %v4152_v47 = vcombine.high %v484_v43, %v5710_v38  ;;  %v5752_v61 = vcombine.low %v484_v43, %v5710_v38  ;;  %v4974_v10 = vld [vmem:[%s7154_s2 + $0x1f0] ss:$8 sps:$4 sm:$0xff]   ;;  %v4976_v14 = vld [vmem:[%s7154_s2] ss:$8 sps:$4 sm:$0xff]   ;;  %vm434_vm3 = vcmask 1041408  }
  0x19   : > { %v4985_v19 = vld [vmem:[%s7154_s2 + $0x24] ss:$8 sps:$4 sm:$0xff]   ;;  %v4983_v22 = vld [vmem:[%s7154_s2 + $0x20] ss:$8 sps:$4 sm:$0xff]   ;;  %v4988_v28 = vld [vmem:[%s7154_s2 + $0x34] ss:$8 sps:$4 sm:$0xff]  }
  0x1a   : > { %v487_v46 = vld [vmem:[#allocation2 + $0x10] sm:$0x11]  ;;  %v616_v50 = vshll.u32 %v4152_v47, 16  ;;  %v614_v54 = vshrl.u32 %v4152_v47, 16  ;;  %v604_v3 = vshll.u32 %v5752_v61, 16  ;;  %v602_v6 = vshrl.u32 %v5752_v61, 16 }
  0x1b   : > { %798 = vmatpush1.bf16.msra.mxu0 %v4944_v11  ;;  %v488_v48 = vsel %vm5658_vm8, %v474_v41, %v487_v46  ;;  %v4986_v32 = vld [vmem:[%s7154_s2 + $0x30] ss:$8 sps:$4 sm:$0xff]   ;;  %v4997_v41 = vld [vmem:[%s7154_s2 + $0x64] ss:$8 sps:$4 sm:$0xff]   ;;  %v4995_v42 = vld [vmem:[%s7154_s2 + $0x60] ss:$8 sps:$4 sm:$0xff]  }
  0x1c   : > { %799 = vmatprep.subr.bf16.mxu0 %v4945_v12  ;;  %489 = vst [vmem:[#allocation2 + $0x10] sm:$0x11] %v488_v48  ;;  %v618_v55 = vrot.slane %v616_v50, 1  ;;  %v606_v7 = vrot.slane %v604_v3, 1  ;;  %v5000_v43 = vld [vmem:[%s7154_s2 + $0x74] ss:$8 sps:$4 sm:$0xff]  }
  0x1d   : > { %v5001_v46 = vld [vmem:[%s7154_s2 + $0x80] ss:$8 sps:$4 sm:$0xff]   ;;  %v5004_v48 = vld [vmem:[%s7154_s2 + $0x90] ss:$8 sps:$4 sm:$0xff]   ;;  %v5033_v35 = vld [vmem:[%s7154_s2 + $0x224] ss:$8 sps:$4 sm:$0xff]  }
  0x1e   : > { %v619_v59 = vor.u32 %v618_v55, %v614_v54  ;;  %v607_v11 = vor.u32 %v606_v7, %v602_v6  ;;  %v5007_v50 = vld [vmem:[%s7154_s2 + $0xa0] ss:$8 sps:$4 sm:$0xff]   ;;  %v5018_v55 = vld [vmem:[%s7154_s2 + $0xd4] ss:$8 sps:$4 sm:$0xff]   ;;  %v5022_v3 = vld [vmem:[%s7154_s2 + $0xf0] ss:$8 sps:$4 sm:$0xff]  }
  0x1f   : > { %800 = vmatpush1.bf16.msra.mxu0 %v4947_v13  ;;  %v4978_v13 = vld [vmem:[%s7154_s2 + $0x4] ss:$8 sps:$4 sm:$0xff]   ;;  %v5013_v54 = vld [vmem:[%s7154_s2 + $0xc0] ss:$8 sps:$4 sm:$0xff]   ;;  %v5036_v37 = vld [vmem:[%s7154_s2 + $0x234] ss:$8 sps:$4 sm:$0xff]  }
  0x20   : > { %801 = vmatprep.subr.bf16.mxu0 %v4948_v15  ;;  %v1035_v20 = vld [vmem:[#allocation2] sm:$0xee]  ;;  %v5066_v25 = vld [vmem:[%s7154_s2 + $0x2d4] ss:$8 sps:$4 sm:$0xff]   ;;  %vm445_vm14 = vsmask.f32 7942 }
  0x21   : > { %v4252_v23 = vcombine.high %v1035_v20, %v5710_v38  ;;  %v4251_v26 = vcombine.low %v1035_v20, %v5710_v38  ;;  %v4989_v38 = vld [vmem:[%s7154_s2 + $0x40] ss:$8 sps:$4 sm:$0xff]   ;;  %v5072_v17 = vld [vmem:[%s7154_s2 + $0x2f4] ss:$8 sps:$4 sm:$0xff]   ;;  %vm447_vm1 = vcmask 1046533  }
  0x22   : > { %v5031_v31 = vld [vmem:[%s7154_s2 + $0x220] ss:$8 sps:$4 sm:$0xff]   ;;  %vm448_vm0 = vsmask.f32 7958 }
  0x23   : > { %802 = vmatpush1.bf16.msra.mxu0 %v4950_v29  ;;  %v553_v56 = vld [vmem:[#allocation2 + $0x10] sm:$0x11]  ;;  %v1078_v29 = vrot.slane %v4252_v23, 1  ;;  %v1075_v30 = vrot.slane %v4251_v26, 1  ;;  %v5037_v20 = vld [vmem:[%s7154_s2 + $0x240] ss:$8 sps:$4 sm:$0xff]  }
  0x24   : > { %803 = vmatprep.subr.bf16.mxu0 %v4951_v33  ;;  %v4154_v57 = vcombine.high %v553_v56, %v553_v56  ;;  %v4153_v2 = vcombine.low %v553_v56, %v553_v56  ;;  %v4991_v33 = vld [vmem:[%s7154_s2 + $0x44] ss:$8 sps:$4 sm:$0xff]   ;;  %v5016_v56 = vld [vmem:[%s7154_s2 + $0xd0] ss:$8 sps:$4 sm:$0xff]   ;;  %v5043_v26 = vld [vmem:[%s7154_s2 + $0x260] ss:$8 sps:$4 sm:$0xff]  }
  0x25   : > { %v5040_v23 = vld [vmem:[%s7154_s2 + $0x250] ss:$8 sps:$4 sm:$0xff]   ;;  %v5061_v21 = vld [vmem:[%s7154_s2 + $0x2c0] ss:$8 sps:$4 sm:$0xff]  }
  0x26   : > { %v621_v60 = vshll.u32 %v4154_v57, 16  ;;  %v609_v8 = vshll.u32 %v4153_v2, 16  ;;  %v1079_v24 = vrot.slane %v4154_v57, 1  ;;  %v1076_v27 = vrot.slane %v4153_v2, 1  ;;  %v5021_v57 = vld [vmem:[%s7154_s2 + $0xe4] ss:$8 sps:$4 sm:$0xff]  }
  0x27   : > { %804 = vmatpush1.bf16.msra.mxu0 %v4953_v39  ;;  %v4994_v39 = vld [vmem:[%s7154_s2 + $0x54] ss:$8 sps:$4 sm:$0xff]  }
  0x28   : > { %805 = vmatprep.subr.bf16.mxu0 %v4954_v40  ;;  %v623_v63 = vrot.slane %v621_v60, 1  ;;  %v611_v12 = vrot.slane %v609_v8, 1  ;;  %v5806_v34 = vsel %vm1074_vm6, %v1078_v29, %v1079_v24  ;;  %v5809_v36 = vsel %vm1074_vm6, %v1075_v30, %v1076_v27  ;;  %v4992_v40 = vld [vmem:[%s7154_s2 + $0x50] ss:$8 sps:$4 sm:$0xff]   ;;  %v5019_v60 = vld [vmem:[%s7154_s2 + $0xe0] ss:$8 sps:$4 sm:$0xff]  }
  0x29   : > { %v5045_v24 = vld [vmem:[%s7154_s2 + $0x264] ss:$8 sps:$4 sm:$0xff]   ;;  %v5048_v27 = vld [vmem:[%s7154_s2 + $0x274] ss:$8 sps:$4 sm:$0xff]   ;;  %v5049_v30 = vld [vmem:[%s7154_s2 + $0x280] ss:$8 sps:$4 sm:$0xff]  }
  0x2a   : > { %v624_v1 = vsel %vm600_vm5, %v619_v59, %v623_v63  ;;  %v612_v15 = vsel %vm600_vm5, %v607_v11, %v611_v12  ;;  %v490_v63 = vld [vmem:[%s401_s21] sm:$0xff] }
  0x2b   : > { %806 = vmatpush1.bf16.msra.mxu0 %v4956_v44  ;;  %819 = vmatprep.mubr.bf16.mxu0 %v624_v1  ;;  %v4998_v44 = vld [vmem:[%s7154_s2 + $0x70] ss:$8 sps:$4 sm:$0xff]   ;;  %v493_v1 = vshrl.u32 %v490_v63, 16  ;;  %v496_v6 = vshll.u32 %v490_v63, 16  ;;  %v5051_v29 = vld [vmem:[%s7154_s2 + $0x284] ss:$8 sps:$4 sm:$0xff]  }
  0x2c   : > { %807 = vmatprep.subr.bf16.mxu0 %v4957_v45  ;;  %v5003_v45 = vld [vmem:[%s7154_s2 + $0x84] ss:$8 sps:$4 sm:$0xff]   ;;  %v5088_v63 = vld [vmem:[%s7155_s3 + $0x50] ss:$8 sps:$4 sm:$0xff]  }
  0x2f   : > { %808 = vmatpush1.bf16.msra.mxu0 %v4959_v49  ;;  %v5009_v49 = vld [vmem:[%s7154_s2 + $0xa4] ss:$8 sps:$4 sm:$0xff]  }
  0x30   : > { %809 = vmatprep.subr.bf16.mxu0 %v4960_v51  ;;  %v5012_v51 = vld [vmem:[%s7154_s2 + $0xb4] ss:$8 sps:$4 sm:$0xff]  }
  0x33   : > { %810 = vmatpush1.bf16.msra.mxu0 %v4962_v52  ;;  %v5010_v52 = vld [vmem:[%s7154_s2 + $0xb0] ss:$8 sps:$4 sm:$0xff]  }
  0x34   : > { %811 = vmatprep.subr.bf16.mxu0 %v4963_v53  ;;  %v5015_v53 = vld [vmem:[%s7154_s2 + $0xc4] ss:$8 sps:$4 sm:$0xff]  }
  0x37   : > { %812 = vmatpush1.bf16.msra.mxu0 %v4965_v58  ;;  %v426_v58 = vld [vmem:[#allocation3] sm:$0x11] }
  0x38   : > { %813 = vmatprep.subr.bf16.mxu0 %v4966_v62  ;;  %v427_v59 = vsel %vm5658_vm8, 0, %v426_v58  ;;  %v5024_v62 = vld [vmem:[%s7154_s2 + $0xf4] ss:$8 sps:$4 sm:$0xff]   ;;  %v5082_v58 = vld [vmem:[%s7155_s3 + $0x30] ss:$8 sps:$4 sm:$0xff]  }
  0x39   : > { %428 = vst [vmem:[#allocation3] sm:$0x11] %v427_v59  ;;  %v5087_v59 = vld [vmem:[%s7155_s3 + $0x44] ss:$8 sps:$4 sm:$0xff]  }
  0x3b   : > { %814 = vmatpush1.bf16.msra.mxu0 %v4968_v0  ;;  %v491_v0 = vld [vmem:[%s401_s21 + $0x8] sm:$0xff] }
  0x3c   : > { %815 = vmatprep.subr.bf16.mxu0 %v4969_v4  ;;  %v501_v2 = vshrl.u32 %v491_v0, 16  ;;  %v5027_v4 = vld [vmem:[%s7154_s2 + $0x204] ss:$8 sps:$4 sm:$0xff]   ;;  %v504_v8 = vshll.u32 %v491_v0, 16 }
  0x3d   : > { %v5093_v0 = vld [vmem:[%s7155_s3 + $0x64] ss:$8 sps:$4 sm:$0xff]  }
  0x3e   : > { %v5890_v7 = vrot.slane %v501_v2, 7  ;;  %v5096_v2 = vld [vmem:[%s7155_s3 + $0x74] ss:$8 sps:$4 sm:$0xff]  }
  0x3f   : > { %816 = vmatpush1.bf16.msra.mxu0 %v4971_v5  ;;  %v495_v5 = vrot.slane %v493_v1, 7  ;;  %v5091_v1 = vld [vmem:[%s7155_s3 + $0x60] ss:$8 sps:$4 sm:$0xff]  }
  0x40   : > { %817 = vmatprep.subr.bf16.mxu0 %v4972_v9  ;;  %v506_v11 = vor.u32 %v504_v8, %v5890_v7  ;;  %v512_v12 = vld [vmem:[#allocation3] sm:$0xff]  ;;  %v5105_v8 = vld [vmem:[%s7155_s3 + $0xa4] ss:$8 sps:$4 sm:$0xff]  }
  0x41   : > { %v498_v9 = vor.u32 %v496_v6, %v495_v5  ;;  %v5102_v6 = vld [vmem:[%s7155_s3 + $0x94] ss:$8 sps:$4 sm:$0xff]  }
  0x43   : > { %818 = vmatpush1.bf16.msra.mxu0 %v4974_v10  ;;  %v499_v10 = vrot.slane %v495_v5, 4  ;;  %v5097_v5 = vld [vmem:[%s7155_s3 + $0x80] ss:$8 sps:$4 sm:$0xff]  }
  0x44   : > { %992 = vmatprep.subr.bf16.mxu0 %v4978_v13  ;;  %v5025_v13 = vld [vmem:[%s7154_s2 + $0x200] ss:$8 sps:$4 sm:$0xff]  }
  0x46   : > { %820 = vmatmul.mubr.bf16.vlgmr.msra.gmra.mrb[0].mxu0 %v612_v15  ;;  %v5904_v15 = vsel %vm482_vm4, %v498_v9, %v512_v12  ;;  %v5103_v9 = vld [vmem:[%s7155_s3 + $0xa0] ss:$8 sps:$4 sm:$0xff]   ;;  %v5111_v12 = vld [vmem:[%s7155_s3 + $0xc4] ss:$8 sps:$4 sm:$0xff]  }
  0x47   : > { %993 = vmatpush1.bf16.msra.mxu0 %v4976_v14  ;;  %1024 = vmatprep.mubr.bf16.mxu0 %v4152_v47  ;;  %v5006_v47 = vld [vmem:[%s7154_s2 + $0x94] ss:$8 sps:$4 sm:$0xff]   ;;  %514 = vst [vmem:[#allocation3] sm:$0xff] %v5904_v15 }
  0x48   : > { %994 = vmatprep.subr.bf16.mxu0 %v4982_v16  ;;  %v5030_v14 = vld [vmem:[%s7154_s2 + $0x214] ss:$8 sps:$4 sm:$0xff]   ;;  %v5908_v16 = vsel %vm5690_vm15, %v499_v10, %v506_v11  ;;  %v5106_v11 = vld [vmem:[%s7155_s3 + $0xb0] ss:$8 sps:$4 sm:$0xff]   ;;  %vm6718_vm15 = vmand %vm437_vm9, %vm438_vm10 }
  0x49   : > { %v5108_v10 = vld [vmem:[%s7155_s3 + $0xb4] ss:$8 sps:$4 sm:$0xff]  }
  0x4b   : > { %995 = vmatpush1.bf16.msra.mxu0 %v4980_v18  ;;  %v5028_v18 = vld [vmem:[%s7154_s2 + $0x210] ss:$8 sps:$4 sm:$0xff]  }
  0x4c   : > { %996 = vmatprep.subr.bf16.mxu0 %v4985_v19  ;;  %v5039_v19 = vld [vmem:[%s7154_s2 + $0x244] ss:$8 sps:$4 sm:$0xff]  }
  0x4f   : > { %997 = vmatpush1.bf16.msra.mxu0 %v4983_v22  ;;  %v5042_v22 = vld [vmem:[%s7154_s2 + $0x254] ss:$8 sps:$4 sm:$0xff]  }
  0x50   : > { %998 = vmatprep.subr.bf16.mxu0 %v4988_v28  ;;  %v5046_v28 = vld [vmem:[%s7154_s2 + $0x270] ss:$8 sps:$4 sm:$0xff]  }
  0x53   : > { %999 = vmatpush1.bf16.msra.mxu0 %v4986_v32  ;;  %v5054_v32 = vld [vmem:[%s7154_s2 + $0x294] ss:$8 sps:$4 sm:$0xff]  }
  0x54   : > { %1000 = vmatprep.subr.bf16.mxu0 %v4991_v33  ;;  %v5052_v33 = vld [vmem:[%s7154_s2 + $0x290] ss:$8 sps:$4 sm:$0xff]  }
  0x57   : > { %1001 = vmatpush1.bf16.msra.mxu0 %v4989_v38  ;;  %v5055_v38 = vld [vmem:[%s7154_s2 + $0x2a0] ss:$8 sps:$4 sm:$0xff]  }
  0x58   : > { %1002 = vmatprep.subr.bf16.mxu0 %v4994_v39  ;;  %v5060_v39 = vld [vmem:[%s7154_s2 + $0x2b4] ss:$8 sps:$4 sm:$0xff]  }
  0x5b   : > { %1003 = vmatpush1.bf16.msra.mxu0 %v4992_v40  ;;  %v429_v40 = vld [vmem:[#allocation3 + $0x10] sm:$0x11] }
  0x5c   : > { %1004 = vmatprep.subr.bf16.mxu0 %v4997_v41  ;;  %v430_v41 = vsel %vm422_vm13, 0, %v429_v40  ;;  %v5124_v40 = vld [vmem:[%s7155_s3 + $0x110] ss:$8 sps:$4 sm:$0xff]   ;;  %vm444_vm13 = vcmask 1042433  }
  0x5d   : > { %431 = vst [vmem:[#allocation3 + $0x10] sm:$0x11] %v430_v41  ;;  %v5129_v41 = vld [vmem:[%s7155_s3 + $0x124] ss:$8 sps:$4 sm:$0xff]  }
  0x5f   : > { %1005 = vmatpush1.bf16.msra.mxu0 %v4995_v42  ;;  %v5058_v42 = vld [vmem:[%s7154_s2 + $0x2b0] ss:$8 sps:$4 sm:$0xff]  }
  0x60   : > { %1006 = vmatprep.subr.bf16.mxu0 %v5000_v43  ;;  %v5063_v43 = vld [vmem:[%s7154_s2 + $0x2c4] ss:$8 sps:$4 sm:$0xff]  }
  0x63   : > { %1007 = vmatpush1.bf16.msra.mxu0 %v4998_v44  ;;  %v508_v44 = vrot.slane %v5890_v7, 4  ;;  %v5100_v7 = vld [vmem:[%s7155_s3 + $0x90] ss:$8 sps:$4 sm:$0xff]  }
  0x64   : > { %1008 = vmatprep.subr.bf16.mxu0 %v5003_v45  ;;  %v516_v45 = vld [vmem:[#allocation3 + $0x10] sm:$0x11] }
  0x67   : > { %1009 = vmatpush1.bf16.msra.mxu0 %v5001_v46  ;;  %v517_v46 = vsel %vm5658_vm8, %v508_v44, %v516_v45  ;;  %v5127_v44 = vld [vmem:[%s7155_s3 + $0x120] ss:$8 sps:$4 sm:$0xff]   ;;  %v5228_v45 = vld [vmem:[%s7157_s5 + $0x134] ss:$8 sps:$4 sm:$0xff]   ;;  %vm435_vm8 = vsmask.f32 1280 }
  0x68   : > { %1010 = vmatprep.subr.bf16.mxu0 %v5006_v47  ;;  %v5064_v47 = vld [vmem:[%s7154_s2 + $0x2d0] ss:$8 sps:$4 sm:$0xff]   ;;  %518 = vst [vmem:[#allocation3 + $0x10] sm:$0x11] %v517_v46  ;;  %vm6714_vm11 = vmand %vm434_vm3, %vm435_vm8  ;;  %vm2973_vm3 = vcmask 1047557  }
  0x69   : > { %v5130_v46 = vld [vmem:[%s7155_s3 + $0x130] ss:$8 sps:$4 sm:$0xff]   ;;  %vm440_vm4 = vmor %vm6718_vm15, %vm6714_vm11  ;;  %vm3560_vm11 = vcmask 1044480  }
  0x6a   : > { %vm6757_vm10 = vmand %vm2973_vm3, %vm448_vm0 }
  0x6b   : > { %1011 = vmatpush1.bf16.msra.mxu0 %v5004_v48  ;;  %v5069_v48 = vld [vmem:[%s7154_s2 + $0x2e4] ss:$8 sps:$4 sm:$0xff]  }
  0x6c   : > { %1012 = vmatprep.subr.bf16.mxu0 %v5009_v49  ;;  %v5067_v49 = vld [vmem:[%s7154_s2 + $0x2e0] ss:$8 sps:$4 sm:$0xff]  }
  0x6f   : > { %1013 = vmatpush1.bf16.msra.mxu0 %v5007_v50  ;;  %v5070_v50 = vld [vmem:[%s7154_s2 + $0x2f0] ss:$8 sps:$4 sm:$0xff]  }
  0x70   : > { %1014 = vmatprep.subr.bf16.mxu0 %v5012_v51  ;;  %v5075_v51 = vld [vmem:[%s7155_s3 + $0x4] ss:$8 sps:$4 sm:$0xff]  }
  0x73   : > { %1015 = vmatpush1.bf16.msra.mxu0 %v5010_v52  ;;  %v5073_v52 = vld [vmem:[%s7155_s3] ss:$8 sps:$4 sm:$0xff]  }
  0x74   : > { %1016 = vmatprep.subr.bf16.mxu0 %v5015_v53  ;;  %v6016_v53 = vcombine.high %v5904_v15, %v5908_v16 }
  0x77   : > { %1017 = vmatpush1.bf16.msra.mxu0 %v5013_v54  ;;  %v5078_v54 = vld [vmem:[%s7155_s3 + $0x14] ss:$8 sps:$4 sm:$0xff]  }
  0x78   : > { %1018 = vmatprep.subr.bf16.mxu0 %v5018_v55  ;;  %v5076_v55 = vld [vmem:[%s7155_s3 + $0x10] ss:$8 sps:$4 sm:$0xff]  }
  0x7b   : > { %1019 = vmatpush1.bf16.msra.mxu0 %v5016_v56  ;;  %v5081_v56 = vld [vmem:[%s7155_s3 + $0x24] ss:$8 sps:$4 sm:$0xff]  }
  0x7c   : > { %1020 = vmatprep.subr.bf16.mxu0 %v5021_v57  ;;  %v5079_v57 = vld [vmem:[%s7155_s3 + $0x20] ss:$8 sps:$4 sm:$0xff]  }
  0x7f   : > { %1021 = vmatpush1.bf16.msra.mxu0 %v5019_v60  ;;  %v5085_v60 = vld [vmem:[%s7155_s3 + $0x40] ss:$8 sps:$4 sm:$0xff]  }
  0x80   : > { %1022 = vmatprep.subr.bf16.mxu0 %v5024_v62  ;;  %v5090_v62 = vld [vmem:[%s7155_s3 + $0x54] ss:$8 sps:$4 sm:$0xff]  }
  0x83   : > { %1023 = vmatpush1.bf16.msra.mxu0 %v5022_v3  ;;  %v5094_v3 = vld [vmem:[%s7155_s3 + $0x70] ss:$8 sps:$4 sm:$0xff]  }
  0x84   : > { %1243 = vmatprep.subr.bf16.mxu0 %v5027_v4  ;;  %v5099_v4 = vld [vmem:[%s7155_s3 + $0x84] ss:$8 sps:$4 sm:$0xff]  }
  0x86   : > { %1025 = vmatmul.mubr.bf16.vlgmr.msra.gmra.mrb[0].mxu0 %v5752_v61  ;;  %v5034_v61 = vld [vmem:[%s7154_s2 + $0x230] ss:$8 sps:$4 sm:$0xff]  }
  0x87   : > { %1244 = vmatpush1.bf16.msra.mxu0 %v5025_v13  ;;  %1275 = vmatprep.mubr.bf16.mxu0 %v5806_v34  ;;  %v5057_v34 = vld [vmem:[%s7154_s2 + $0x2a4] ss:$8 sps:$4 sm:$0xff]   ;;  %v5109_v13 = vld [vmem:[%s7155_s3 + $0xc0] ss:$8 sps:$4 sm:$0xff]  }
  0x88   : > { %1245 = vmatprep.subr.bf16.mxu0 %v5030_v14  ;;  %v5114_v14 = vld [vmem:[%s7155_s3 + $0xd4] ss:$8 sps:$4 sm:$0xff]  }
  0x8b   : > { %1246 = vmatpush1.bf16.msra.mxu0 %v5028_v18  ;;  %v6095_v18 = vld [vmem:[#allocation3 + $0x10] sm:$0x11] }
  0x8c   : > { %1247 = vmatprep.subr.bf16.mxu0 %v5033_v35  ;;  %v5112_v35 = vld [vmem:[%s7155_s3 + $0xd0] ss:$8 sps:$4 sm:$0xff]  }
  0x8f   : > { %1248 = vmatpush1.bf16.msra.mxu0 %v5031_v31  ;;  %v5117_v31 = vld [vmem:[%s7155_s3 + $0xe4] ss:$8 sps:$4 sm:$0xff]  }
  0x90   : > { %1249 = vmatprep.subr.bf16.mxu0 %v5036_v37  ;;  %v6105_v37 = vcombine.high %v6095_v18, %v6095_v18 }
  0x93   : > { %1250 = vmatpush1.bf16.msra.mxu0 %v5034_v61  ;;  %v1605_v61 = vshll.u32 %v6016_v53, 16 }
  0x94   : > { %1251 = vmatprep.subr.bf16.mxu0 %v5039_v19  ;;  %v5115_v19 = vld [vmem:[%s7155_s3 + $0xe0] ss:$8 sps:$4 sm:$0xff]  }
  0x97   : > { %1252 = vmatpush1.bf16.msra.mxu0 %v5037_v20  ;;  %v5120_v20 = vld [vmem:[%s7155_s3 + $0xf4] ss:$8 sps:$4 sm:$0xff]  }
  0x98   : > { %1253 = vmatprep.subr.bf16.mxu0 %v5042_v22  ;;  %v1603_v22 = vshrl.u32 %v6016_v53, 16 }
  0x9b   : > { %1254 = vmatpush1.bf16.msra.mxu0 %v5040_v23  ;;  %v1607_v23 = vrot.slane %v1605_v61, 1  ;;  %v5163_v61 = vld [vmem:[%s7155_s3 + $0x1e0] ss:$8 sps:$4 sm:$0xff]  }
  0x9c   : > { %1255 = vmatprep.subr.bf16.mxu0 %v5045_v24  ;;  %v1610_v24 = vshll.u32 %v6105_v37, 16 }
  0x9f   : > { %1256 = vmatpush1.bf16.msra.mxu0 %v5043_v26  ;;  %v5118_v26 = vld [vmem:[%s7155_s3 + $0xf0] ss:$8 sps:$4 sm:$0xff]  }
  0xa0   : > { %1257 = vmatprep.subr.bf16.mxu0 %v5048_v27  ;;  %v5123_v27 = vld [vmem:[%s7155_s3 + $0x104] ss:$8 sps:$4 sm:$0xff]  }
  0xa3   : > { %1258 = vmatpush1.bf16.msra.mxu0 %v5046_v28  ;;  %v1608_v28 = vor.u32 %v1607_v23, %v1603_v22  ;;  %v5168_v22 = vld [vmem:[%s7155_s3 + $0x1f4] ss:$8 sps:$4 sm:$0xff]  }
  0xa4   : > { %1259 = vmatprep.subr.bf16.mxu0 %v5051_v29  ;;  %v1612_v29 = vrot.slane %v1610_v24, 1  ;;  %v5166_v24 = vld [vmem:[%s7155_s3 + $0x1f0] ss:$8 sps:$4 sm:$0xff]  }
  0xa7   : > { %1260 = vmatpush1.bf16.msra.mxu0 %v5049_v30  ;;  %v6124_v30 = vcombine.low %v5904_v15, %v5908_v16  ;;  %v5221_v15 = vld [vmem:[%s7157_s5 + $0x100] ss:$8 sps:$4 sm:$0xff]  }
  0xa8   : > { %1261 = vmatprep.subr.bf16.mxu0 %v5054_v32  ;;  %v5121_v32 = vld [vmem:[%s7155_s3 + $0x100] ss:$8 sps:$4 sm:$0xff]  }
  0xab   : > { %1262 = vmatpush1.bf16.msra.mxu0 %v5052_v33  ;;  %v5126_v33 = vld [vmem:[%s7155_s3 + $0x114] ss:$8 sps:$4 sm:$0xff]  }
  0xac   : > { %1263 = vmatprep.subr.bf16.mxu0 %v5057_v34  ;;  %v1613_v34 = vsel %vm600_vm5, %v1608_v28, %v1612_v29  ;;  %v5172_v28 = vld [vmem:[%s7155_s3 + $0x204] ss:$8 sps:$4 sm:$0xff]  }
  0xaf   : > { %1264 = vmatpush1.bf16.msra.mxu0 %v5055_v38  ;;  %v5219_v38 = vld [vmem:[%s7157_s5 + $0x104] ss:$8 sps:$4 sm:$0xff]  }
  0xb0   : > { %1265 = vmatprep.subr.bf16.mxu0 %v5060_v39  ;;  %v5222_v39 = vld [vmem:[%s7157_s5 + $0x114] ss:$8 sps:$4 sm:$0xff]   ;;  %2386 = vmatprep.subr.bf16.mxu1 %v5219_v38 }
  0xb1   : > { %2387 = vmatpush1.bf16.msra.mxu1 %v5221_v15  ;;  %v5179_v15 = vld [vmem:[%s7155_s3 + $0x224] ss:$8 sps:$4 sm:$0xff]  }
  0xb2   : > { %2388 = vmatprep.subr.bf16.mxu1 %v5222_v39  ;;  %v5177_v39 = vld [vmem:[%s7155_s3 + $0x220] ss:$8 sps:$4 sm:$0xff]  }
  0xb3   : > { %1266 = vmatpush1.bf16.msra.mxu0 %v5058_v42  ;;  %v5224_v42 = vld [vmem:[%s7157_s5 + $0x110] ss:$8 sps:$4 sm:$0xff]  }
  0xb4   : > { %1267 = vmatprep.subr.bf16.mxu0 %v5063_v43  ;;  %v5225_v43 = vld [vmem:[%s7157_s5 + $0x124] ss:$8 sps:$4 sm:$0xff]  }
  0xb5   : > { %2389 = vmatpush1.bf16.msra.mxu1 %v5224_v42  ;;  %v5185_v42 = vld [vmem:[%s7155_s3 + $0x244] ss:$8 sps:$4 sm:$0xff]  }
  0xb6   : > { %2390 = vmatprep.subr.bf16.mxu1 %v5225_v43  ;;  %v5183_v43 = vld [vmem:[%s7155_s3 + $0x240] ss:$8 sps:$4 sm:$0xff]  }
  0xb7   : > { %1268 = vmatpush1.bf16.msra.mxu0 %v5061_v21  ;;  %v5132_v21 = vld [vmem:[%s7155_s3 + $0x134] ss:$8 sps:$4 sm:$0xff]  }
  0xb8   : > { %1269 = vmatprep.subr.bf16.mxu0 %v5066_v25  ;;  %v5227_v25 = vld [vmem:[%s7157_s5 + $0x120] ss:$8 sps:$4 sm:$0xff]  }
  0xb9   : > { %2391 = vmatpush1.bf16.msra.mxu1 %v5227_v25  ;;  %v5191_v25 = vld [vmem:[%s7155_s3 + $0x264] ss:$8 sps:$4 sm:$0xff]  }
  0xba   : > { %2392 = vmatprep.subr.bf16.mxu1 %v5228_v45  ;;  %v5189_v45 = vld [vmem:[%s7155_s3 + $0x260] ss:$8 sps:$4 sm:$0xff]  }
  0xbb   : > { %1270 = vmatpush1.bf16.msra.mxu0 %v5064_v47  ;;  %v5135_v47 = vld [vmem:[%s7155_s3 + $0x144] ss:$8 sps:$4 sm:$0xff]  }
  0xbc   : > { %1271 = vmatprep.subr.bf16.mxu0 %v5069_v48  ;;  %v5230_v48 = vld [vmem:[%s7157_s5 + $0x130] ss:$8 sps:$4 sm:$0xff]  }
  0xbd   : > { %2393 = vmatpush1.bf16.msra.mxu1 %v5230_v48  ;;  %v5197_v48 = vld [vmem:[%s7155_s3 + $0x284] ss:$8 sps:$4 sm:$0xff]  }
  0xbf   : > { %1272 = vmatpush1.bf16.msra.mxu0 %v5067_v49  ;;  %v5231_v49 = vld [vmem:[%s7157_s5 + $0x144] ss:$8 sps:$4 sm:$0xff]  }
  0xc0   : > { %1273 = vmatprep.subr.bf16.mxu0 %v5072_v17  ;;  %v5133_v17 = vld [vmem:[%s7155_s3 + $0x140] ss:$8 sps:$4 sm:$0xff]   ;;  %2394 = vmatprep.subr.bf16.mxu1 %v5231_v49 }
  0xc1   : > { %v5195_v49 = vld [vmem:[%s7155_s3 + $0x280] ss:$8 sps:$4 sm:$0xff]  }
  0xc3   : > { %1274 = vmatpush1.bf16.msra.mxu0 %v5070_v50  ;;  %v5138_v50 = vld [vmem:[%s7155_s3 + $0x154] ss:$8 sps:$4 sm:$0xff]  }
  0xc4   : > { %1494 = vmatprep.subr.bf16.mxu0 %v5075_v51  ;;  %v5233_v51 = vld [vmem:[%s7157_s5 + $0x140] ss:$8 sps:$4 sm:$0xff]  }
  0xc5   : > { %2395 = vmatpush1.bf16.msra.mxu1 %v5233_v51  ;;  %v5203_v51 = vld [vmem:[%s7155_s3 + $0x2a4] ss:$8 sps:$4 sm:$0xff]  }
  0xc6   : > { %1276 = vmatmul.mubr.bf16.vlgmr.msra.gmra.mrb[0].mxu0 %v5809_v36  ;;  %v5084_v36 = vld [vmem:[%s7155_s3 + $0x34] ss:$8 sps:$4 sm:$0xff]  }
  0xc7   : > { %1495 = vmatpush1.bf16.msra.mxu0 %v5073_v52  ;;  %1526 = vmatprep.mubr.bf16.mxu0 %v6016_v53  ;;  %v5234_v52 = vld [vmem:[%s7157_s5 + $0x154] ss:$8 sps:$4 sm:$0xff]   ;;  %v5136_v53 = vld [vmem:[%s7155_s3 + $0x150] ss:$8 sps:$4 sm:$0xff]  }
  0xc8   : > { %1496 = vmatprep.subr.bf16.mxu0 %v5078_v54  ;;  %v5141_v54 = vld [vmem:[%s7155_s3 + $0x164] ss:$8 sps:$4 sm:$0xff]   ;;  %2396 = vmatprep.subr.bf16.mxu1 %v5234_v52  ;;  %v5201_v52 = vld [vmem:[%s7155_s3 + $0x2a0] ss:$8 sps:$4 sm:$0xff]  }
  0xcb   : > { %1497 = vmatpush1.bf16.msra.mxu0 %v5076_v55  ;;  %v5236_v55 = vld [vmem:[%s7157_s5 + $0x150] ss:$8 sps:$4 sm:$0xff]  }
  0xcc   : > { %1498 = vmatprep.subr.bf16.mxu0 %v5081_v56  ;;  %v5237_v56 = vld [vmem:[%s7157_s5 + $0x164] ss:$8 sps:$4 sm:$0xff]   ;;  %2397 = vmatpush1.bf16.msra.mxu1 %v5236_v55 }
  0xcd   : > { %2398 = vmatprep.subr.bf16.mxu1 %v5237_v56  ;;  %v5209_v55 = vld [vmem:[%s7155_s3 + $0x2c4] ss:$8 sps:$4 sm:$0xff]   ;;  %v5207_v56 = vld [vmem:[%s7155_s3 + $0x2c0] ss:$8 sps:$4 sm:$0xff]  }
  0xcf   : > { %1499 = vmatpush1.bf16.msra.mxu0 %v5079_v57  ;;  %v5139_v57 = vld [vmem:[%s7155_s3 + $0x160] ss:$8 sps:$4 sm:$0xff]  }
  0xd0   : > { %1500 = vmatprep.subr.bf16.mxu0 %v5084_v36  ;;  %v5144_v36 = vld [vmem:[%s7155_s3 + $0x174] ss:$8 sps:$4 sm:$0xff]  }
  0xd3   : > { %1501 = vmatpush1.bf16.msra.mxu0 %v5082_v58  ;;  %v5239_v58 = vld [vmem:[%s7157_s5 + $0x160] ss:$8 sps:$4 sm:$0xff]  }
  0xd4   : > { %1502 = vmatprep.subr.bf16.mxu0 %v5087_v59  ;;  %v5240_v59 = vld [vmem:[%s7157_s5 + $0x174] ss:$8 sps:$4 sm:$0xff]   ;;  %2399 = vmatpush1.bf16.msra.mxu1 %v5239_v58  ;;  %v5215_v58 = vld [vmem:[%s7155_s3 + $0x2e4] ss:$8 sps:$4 sm:$0xff]  }
  0xd5   : > { %2400 = vmatprep.subr.bf16.mxu1 %v5240_v59  ;;  %v5213_v59 = vld [vmem:[%s7155_s3 + $0x2e0] ss:$8 sps:$4 sm:$0xff]  }
  0xd7   : > { %1503 = vmatpush1.bf16.msra.mxu0 %v5085_v60  ;;  %v5142_v60 = vld [vmem:[%s7155_s3 + $0x170] ss:$8 sps:$4 sm:$0xff]  }
  0xd8   : > { %1504 = vmatprep.subr.bf16.mxu0 %v5090_v62  ;;  %v5147_v62 = vld [vmem:[%s7155_s3 + $0x184] ss:$8 sps:$4 sm:$0xff]  }
  0xdb   : > { %1505 = vmatpush1.bf16.msra.mxu0 %v5088_v63  ;;  %v5242_v63 = vld [vmem:[%s7157_s5 + $0x170] ss:$8 sps:$4 sm:$0xff]  }
  0xdc   : > { %1506 = vmatprep.subr.bf16.mxu0 %v5093_v0  ;;  %v5243_v0 = vld [vmem:[%s7157_s5 + $0x184] ss:$8 sps:$4 sm:$0xff]   ;;  %2401 = vmatpush1.bf16.msra.mxu1 %v5242_v63  ;;  %v5216_v63 = vld [vmem:[%s7155_s3 + $0x2f0] ss:$8 sps:$4 sm:$0xff]  }
  0xdd   : > { %2402 = vmatprep.subr.bf16.mxu1 %v5243_v0 }
  0xdf   : > { %1507 = vmatpush1.bf16.msra.mxu0 %v5091_v1  ;;  %v5145_v1 = vld [vmem:[%s7155_s3 + $0x180] ss:$8 sps:$4 sm:$0xff]  }
  0xe0   : > { %1508 = vmatprep.subr.bf16.mxu0 %v5096_v2  ;;  %v5150_v2 = vld [vmem:[%s7155_s3 + $0x194] ss:$8 sps:$4 sm:$0xff]  }
  0xe3   : > { %1509 = vmatpush1.bf16.msra.mxu0 %v5094_v3  ;;  %v5245_v3 = vld [vmem:[%s7157_s5 + $0x180] ss:$8 sps:$4 sm:$0xff]  }
  0xe4   : > { %1510 = vmatprep.subr.bf16.mxu0 %v5099_v4  ;;  %v5148_v4 = vld [vmem:[%s7155_s3 + $0x190] ss:$8 sps:$4 sm:$0xff]   ;;  %2403 = vmatpush1.bf16.msra.mxu1 %v5245_v3 }
  0xe5   : > { %v5248_v3 = vld [vmem:[%s7157_s5 + $0x190] ss:$8 sps:$4 sm:$0xff]  }
  0xe7   : > { %1511 = vmatpush1.bf16.msra.mxu0 %v5097_v5  ;;  %v5153_v5 = vld [vmem:[%s7155_s3 + $0x1a4] ss:$8 sps:$4 sm:$0xff]  }
  0xe8   : > { %1512 = vmatprep.subr.bf16.mxu0 %v5102_v6  ;;  %v5151_v6 = vld [vmem:[%s7155_s3 + $0x1a0] ss:$8 sps:$4 sm:$0xff]  }
  0xeb   : > { %1513 = vmatpush1.bf16.msra.mxu0 %v5100_v7  ;;  %v5156_v7 = vld [vmem:[%s7155_s3 + $0x1b4] ss:$8 sps:$4 sm:$0xff]  }
  0xec   : > { %1514 = vmatprep.subr.bf16.mxu0 %v5105_v8  ;;  %v5154_v8 = vld [vmem:[%s7155_s3 + $0x1b0] ss:$8 sps:$4 sm:$0xff]  }
  0xef   : > { %1515 = vmatpush1.bf16.msra.mxu0 %v5103_v9  ;;  %v5159_v9 = vld [vmem:[%s7155_s3 + $0x1c4] ss:$8 sps:$4 sm:$0xff]  }
  0xf0   : > { %1516 = vmatprep.subr.bf16.mxu0 %v5108_v10  ;;  %v5157_v10 = vld [vmem:[%s7155_s3 + $0x1c0] ss:$8 sps:$4 sm:$0xff]  }
  0xf3   : > { %1517 = vmatpush1.bf16.msra.mxu0 %v5106_v11  ;;  %v5162_v11 = vld [vmem:[%s7155_s3 + $0x1d4] ss:$8 sps:$4 sm:$0xff]  }
  0xf4   : > { %1518 = vmatprep.subr.bf16.mxu0 %v5111_v12  ;;  %v5160_v12 = vld [vmem:[%s7155_s3 + $0x1d0] ss:$8 sps:$4 sm:$0xff]  }
  0xf7   : > { %1519 = vmatpush1.bf16.msra.mxu0 %v5109_v13  ;;  %v6265_v13 = vcombine.low %v6095_v18, %v6095_v18 }
  0xf8   : > { %1520 = vmatprep.subr.bf16.mxu0 %v5114_v14  ;;  %v1593_v14 = vshll.u32 %v6124_v30, 16 }
  0xf9   : > { %v1598_v18 = vshll.u32 %v6265_v13, 16 }
  0xfb   : > { %1521 = vmatpush1.bf16.msra.mxu0 %v5112_v35  ;;  %v5165_v35 = vld [vmem:[%s7155_s3 + $0x1e4] ss:$8 sps:$4 sm:$0xff]  }
  0xfc   : > { %1522 = vmatprep.subr.bf16.mxu0 %v5117_v31  ;;  %v6271_v31 = vld [vmem:[#allocation3] sm:$0xee] }
  0xfd   : > { %v4420_v23 = vcombine.high %v6271_v31, %v5908_v16 }
  0xff   : > { %1523 = vmatpush1.bf16.msra.mxu0 %v5115_v19  ;;  %v1591_v19 = vshrl.u32 %v6124_v30, 16  ;;  %v1865_v29 = vrot.slane %v4420_v23, 1 }
 0x100   : > { %1524 = vmatprep.subr.bf16.mxu0 %v5120_v20  ;;  %v1595_v20 = vrot.slane %v1593_v14, 1  ;;  %v5263_v14 = vld [vmem:[%s7157_s5 + $0x1e0] ss:$8 sps:$4 sm:$0xff]  }
 0x103   : > { %1525 = vmatpush1.bf16.msra.mxu0 %v5118_v26  ;;  %v1596_v26 = vor.u32 %v1595_v20, %v1591_v19  ;;  %v2079_v19 = vlaneseq }
 0x104   : > { %1776 = vmatprep.subr.bf16.mxu0 %v5123_v27  ;;  %v1600_v27 = vrot.slane %v1598_v18, 1 }
 0x105   : > { %v2080_v20 = vshrl.u32 %v2079_v19, 7  ;;  %v5298_v19 = vld [vmem:[%s7157_s5 + $0x94] ss:$8 sps:$4 sm:$0xff]  }
 0x106   : > { %1527 = vmatmul.mubr.bf16.vlgmr.msra.gmra.mrb[0].mxu0 %v6124_v30  ;;  %v1866_v30 = vrot.slane %v6105_v37, 1  ;;  %v5174_v37 = vld [vmem:[%s7155_s3 + $0x210] ss:$8 sps:$4 sm:$0xff]  }
 0x107   : > { %1777 = vmatpush1.bf16.msra.mxu0 %v5121_v32  ;;  %1808 = vmatprep.mubr.bf16.mxu0 %v1613_v34  ;;  %v5170_v32 = vld [vmem:[%s7155_s3 + $0x200] ss:$8 sps:$4 sm:$0xff]   ;;  %v5176_v34 = vld [vmem:[%s7155_s3 + $0x214] ss:$8 sps:$4 sm:$0xff]   ;;  %v6434_v18 = vsub.s32 0, %v2080_v20  ;;  %v6439_v23 = vsub.s32 1, %v2080_v20 }
 0x108   : > { %1778 = vmatprep.subr.bf16.mxu0 %v5126_v33  ;;  %v1601_v33 = vsel %vm600_vm5, %v1596_v26, %v1600_v27  ;;  %v1867_v38 = vsel %vm1074_vm6, %v1865_v29, %v1866_v30  ;;  %v5296_v20 = vld [vmem:[%s7157_s5 + $0x90] ss:$8 sps:$4 sm:$0xff]   ;;  %vm446_vm5 = vmand %vm444_vm13, %vm445_vm14 }
 0x10b   : > { %1779 = vmatpush1.bf16.msra.mxu0 %v5124_v40  ;;  %v5182_v40 = vld [vmem:[%s7155_s3 + $0x234] ss:$8 sps:$4 sm:$0xff]  }
 0x10c   : > { %1780 = vmatprep.subr.bf16.mxu0 %v5129_v41  ;;  %v5180_v41 = vld [vmem:[%s7155_s3 + $0x230] ss:$8 sps:$4 sm:$0xff]  }
 0x10f   : > { %1781 = vmatpush1.bf16.msra.mxu0 %v5127_v44  ;;  %v5188_v44 = vld [vmem:[%s7155_s3 + $0x254] ss:$8 sps:$4 sm:$0xff]  }
 0x110   : > { %1782 = vmatprep.subr.bf16.mxu0 %v5132_v21  ;;  %v5186_v21 = vld [vmem:[%s7155_s3 + $0x250] ss:$8 sps:$4 sm:$0xff]  }
 0x113   : > { %1783 = vmatpush1.bf16.msra.mxu0 %v5130_v46  ;;  %v5194_v46 = vld [vmem:[%s7155_s3 + $0x274] ss:$8 sps:$4 sm:$0xff]  }
 0x114   : > { %1784 = vmatprep.subr.bf16.mxu0 %v5135_v47  ;;  %v5192_v47 = vld [vmem:[%s7155_s3 + $0x270] ss:$8 sps:$4 sm:$0xff]  }
 0x117   : > { %1785 = vmatpush1.bf16.msra.mxu0 %v5133_v17  ;;  %v5200_v17 = vld [vmem:[%s7155_s3 + $0x294] ss:$8 sps:$4 sm:$0xff]  }
 0x118   : > { %1786 = vmatprep.subr.bf16.mxu0 %v5138_v50  ;;  %v5198_v50 = vld [vmem:[%s7155_s3 + $0x290] ss:$8 sps:$4 sm:$0xff]  }
 0x11b   : > { %1787 = vmatpush1.bf16.msra.mxu0 %v5136_v53  ;;  %v5206_v53 = vld [vmem:[%s7155_s3 + $0x2b4] ss:$8 sps:$4 sm:$0xff]  }
 0x11c   : > { %1788 = vmatprep.subr.bf16.mxu0 %v5141_v54  ;;  %v5204_v54 = vld [vmem:[%s7155_s3 + $0x2b0] ss:$8 sps:$4 sm:$0xff]  }
 0x11f   : > { %1789 = vmatpush1.bf16.msra.mxu0 %v5139_v57  ;;  %v5212_v57 = vld [vmem:[%s7155_s3 + $0x2d4] ss:$8 sps:$4 sm:$0xff]  }
 0x120   : > { %1790 = vmatprep.subr.bf16.mxu0 %v5144_v36  ;;  %v5210_v36 = vld [vmem:[%s7155_s3 + $0x2d0] ss:$8 sps:$4 sm:$0xff]  }
 0x123   : > { %1791 = vmatpush1.bf16.msra.mxu0 %v5142_v60  ;;  %v4419_v60 = vcombine.low %v6271_v31, %v5908_v16  ;;  %v5246_v16 = vld [vmem:[%s7157_s5 + $0x194] ss:$8 sps:$4 sm:$0xff]   ;;  %v5266_v31 = vld [vmem:[%s7157_s5 + $0x1f0] ss:$8 sps:$4 sm:$0xff]  }
 0x124   : > { %1792 = vmatprep.subr.bf16.mxu0 %v5147_v62  ;;  %v5218_v62 = vld [vmem:[%s7155_s3 + $0x2f4] ss:$8 sps:$4 sm:$0xff]   ;;  %2404 = vmatprep.subr.bf16.mxu1 %v5246_v16 }
 0x125   : > { %v1862_v0 = vrot.slane %v4419_v60, 1  ;;  %2405 = vmatpush1.bf16.msra.mxu1 %v5248_v3  ;;  %v5272_v3 = vld [vmem:[%s7157_s5 + $0x10] ss:$8 sps:$4 sm:$0xff]  }
 0x127   : > { %1793 = vmatpush1.bf16.msra.mxu0 %v5145_v1  ;;  %v1863_v1 = vrot.slane %v6265_v13, 1  ;;  %v5261_v13 = vld [vmem:[%s7157_s5 + $0x1e4] ss:$8 sps:$4 sm:$0xff]  }
 0x128   : > { %1794 = vmatprep.subr.bf16.mxu0 %v5150_v2 }
 0x129   : > { %v1864_v2 = vsel %vm1074_vm6, %v1862_v0, %v1863_v1 }
 0x12b   : > { %1795 = vmatpush1.bf16.msra.mxu0 %v5148_v4  ;;  %v5249_v4 = vld [vmem:[%s7157_s5 + $0x1a4] ss:$8 sps:$4 sm:$0xff]  }
 0x12c   : > { %1796 = vmatprep.subr.bf16.mxu0 %v5153_v5  ;;  %v5251_v5 = vld [vmem:[%s7157_s5 + $0x1a0] ss:$8 sps:$4 sm:$0xff]   ;;  %2406 = vmatprep.subr.bf16.mxu1 %v5249_v4  ;;  %v5277_v4 = vld [vmem:[%s7157_s5 + $0x24] ss:$8 sps:$4 sm:$0xff]  }
 0x12d   : > { %2407 = vmatpush1.bf16.msra.mxu1 %v5251_v5  ;;  %v5275_v5 = vld [vmem:[%s7157_s5 + $0x20] ss:$8 sps:$4 sm:$0xff]  }
 0x12f   : > { %1797 = vmatpush1.bf16.msra.mxu0 %v5151_v6  ;;  %v5252_v6 = vld [vmem:[%s7157_s5 + $0x1b4] ss:$8 sps:$4 sm:$0xff]  }
 0x130   : > { %1798 = vmatprep.subr.bf16.mxu0 %v5156_v7  ;;  %v5254_v7 = vld [vmem:[%s7157_s5 + $0x1b0] ss:$8 sps:$4 sm:$0xff]   ;;  %2408 = vmatprep.subr.bf16.mxu1 %v5252_v6  ;;  %v5280_v6 = vld [vmem:[%s7157_s5 + $0x34] ss:$8 sps:$4 sm:$0xff]  }
 0x131   : > { %2409 = vmatpush1.bf16.msra.mxu1 %v5254_v7  ;;  %v5278_v7 = vld [vmem:[%s7157_s5 + $0x30] ss:$8 sps:$4 sm:$0xff]  }
 0x133   : > { %1799 = vmatpush1.bf16.msra.mxu0 %v5154_v8  ;;  %v5255_v8 = vld [vmem:[%s7157_s5 + $0x1c4] ss:$8 sps:$4 sm:$0xff]  }
 0x134   : > { %1800 = vmatprep.subr.bf16.mxu0 %v5159_v9  ;;  %v5257_v9 = vld [vmem:[%s7157_s5 + $0x1c0] ss:$8 sps:$4 sm:$0xff]   ;;  %2410 = vmatprep.subr.bf16.mxu1 %v5255_v8  ;;  %v5283_v8 = vld [vmem:[%s7157_s5 + $0x44] ss:$8 sps:$4 sm:$0xff]  }
 0x135   : > { %2411 = vmatpush1.bf16.msra.mxu1 %v5257_v9  ;;  %v5281_v9 = vld [vmem:[%s7157_s5 + $0x40] ss:$8 sps:$4 sm:$0xff]  }
 0x137   : > { %1801 = vmatpush1.bf16.msra.mxu0 %v5157_v10  ;;  %v5532_v10 = vmov 0  }
 0x138   : > { %1802 = vmatprep.subr.bf16.mxu0 %v5162_v11  ;;  %432 = vst [vmem:[#allocation4] sm:$0x11] %v5532_v10  ;;  %433 = vst [vmem:[#allocation4 + $0x10] sm:$0x22] %v5532_v10  ;;  %v5258_v11 = vld [vmem:[%s7157_s5 + $0x1d4] ss:$8 sps:$4 sm:$0xff]  }
 0x139   : > { %2412 = vmatprep.subr.bf16.mxu1 %v5258_v11  ;;  %v5286_v10 = vld [vmem:[%s7157_s5 + $0x54] ss:$8 sps:$4 sm:$0xff]   ;;  %v5284_v11 = vld [vmem:[%s7157_s5 + $0x50] ss:$8 sps:$4 sm:$0xff]  }
 0x13b   : > { %1803 = vmatpush1.bf16.msra.mxu0 %v5160_v12  ;;  %v5260_v12 = vld [vmem:[%s7157_s5 + $0x1d0] ss:$8 sps:$4 sm:$0xff]  }
 0x13c   : > { %1804 = vmatprep.subr.bf16.mxu0 %v5165_v35  ;;  %2413 = vmatpush1.bf16.msra.mxu1 %v5260_v12  ;;  %v5264_v35 = vld [vmem:[%s7157_s5 + $0x1f4] ss:$8 sps:$4 sm:$0xff]   ;;  %v5289_v12 = vld [vmem:[%s7157_s5 + $0x64] ss:$8 sps:$4 sm:$0xff]  }
 0x13d   : > { %2414 = vmatprep.subr.bf16.mxu1 %v5261_v13  ;;  %v5287_v13 = vld [vmem:[%s7157_s5 + $0x60] ss:$8 sps:$4 sm:$0xff]  }
 0x13f   : > { %1805 = vmatpush1.bf16.msra.mxu0 %v5163_v61  ;;  %v5270_v61 = vld [vmem:[%s7157_s5 + $0x4] ss:$8 sps:$4 sm:$0xff]  }
 0x140   : > { %1806 = vmatprep.subr.bf16.mxu0 %v5168_v22  ;;  %2415 = vmatpush1.bf16.msra.mxu1 %v5263_v14  ;;  %v2077_v22 = vld [vmem:[%s7156_s4] ss:$2 sm:$0x3]  ;;  %v5292_v14 = vld [vmem:[%s7157_s5 + $0x74] ss:$8 sps:$4 sm:$0xff]  }
 0x141   : > { %2416 = vmatprep.subr.bf16.mxu1 %v5264_v35  ;;  %v2082_v26 = vrot.slane %v2077_v22, %v6434_v18  ;;  %v2086_v27 = vrot.slane %v2077_v22, %v6439_v23  ;;  %v5290_v35 = vld [vmem:[%s7157_s5 + $0x70] ss:$8 sps:$4 sm:$0xff]   ;;  %v5301_v22 = vld [vmem:[%s7157_s5 + $0xa4] ss:$8 sps:$4 sm:$0xff]  }
 0x143   : > { %1807 = vmatpush1.bf16.msra.mxu0 %v5166_v24  ;;  %v4453_v24 = vld [vmem:[%s7156_s4 + $0x1] ss:$2 sm:$0x3] }
 0x144   : > { %2030 = vmatprep.subr.bf16.mxu0 %v5172_v28  ;;  %2417 = vmatpush1.bf16.msra.mxu1 %v5266_v31  ;;  %v2099_v28 = vrot.slane %v4453_v24, %v6434_v18  ;;  %v2103_v30 = vrot.slane %v4453_v24, %v6439_v23  ;;  %v5295_v31 = vld [vmem:[%s7157_s5 + $0x84] ss:$8 sps:$4 sm:$0xff]   ;;  %v5299_v24 = vld [vmem:[%s7157_s5 + $0xa0] ss:$8 sps:$4 sm:$0xff]  }
 0x145   : > { %2596 = vmatprep.subr.bf16.mxu1 %v5270_v61  ;;  %v5293_v61 = vld [vmem:[%s7157_s5 + $0x80] ss:$8 sps:$4 sm:$0xff]  }
 0x146   : > { %1809 = vmatmul.mubr.bf16.vlgmr.msra.gmra.mrb[0].mxu0 %v1601_v33 }
 0x147   : > { %2031 = vmatpush1.bf16.msra.mxu0 %v5170_v32  ;;  %2062 = vmatprep.mubr.bf16.mxu0 %v1867_v38 }
 0x148   : > { %2032 = vmatprep.subr.bf16.mxu0 %v5176_v34 }
 0x14b   : > { %2033 = vmatpush1.bf16.msra.mxu0 %v5174_v37 }
 0x14c   : > { %2034 = vmatprep.subr.bf16.mxu0 %v5179_v15 }
 0x14f   : > { %2035 = vmatpush1.bf16.msra.mxu0 %v5177_v39 }
 0x150   : > { %2036 = vmatprep.subr.bf16.mxu0 %v5182_v40 }
 0x153   : > { %2037 = vmatpush1.bf16.msra.mxu0 %v5180_v41 }
 0x154   : > { %2038 = vmatprep.subr.bf16.mxu0 %v5185_v42 }
 0x157   : > { %2039 = vmatpush1.bf16.msra.mxu0 %v5183_v43 }
 0x158   : > { %2040 = vmatprep.subr.bf16.mxu0 %v5188_v44 }
 0x15b   : > { %2041 = vmatpush1.bf16.msra.mxu0 %v5186_v21 }
 0x15c   : > { %2042 = vmatprep.subr.bf16.mxu0 %v5191_v25 }
 0x15f   : > { %2043 = vmatpush1.bf16.msra.mxu0 %v5189_v45 }
 0x160   : > { %2044 = vmatprep.subr.bf16.mxu0 %v5194_v46 }
 0x163   : > { %2045 = vmatpush1.bf16.msra.mxu0 %v5192_v47 }
 0x164   : > { %2046 = vmatprep.subr.bf16.mxu0 %v5197_v48 }
 0x167   : > { %2047 = vmatpush1.bf16.msra.mxu0 %v5195_v49 }
 0x168   : > { %2048 = vmatprep.subr.bf16.mxu0 %v5200_v17 }
 0x16b   : > { %2049 = vmatpush1.bf16.msra.mxu0 %v5198_v50 }
 0x16c   : > { %2050 = vmatprep.subr.bf16.mxu0 %v5203_v51 }
 0x16f   : > { %2051 = vmatpush1.bf16.msra.mxu0 %v5201_v52 }
 0x170   : > { %2052 = vmatprep.subr.bf16.mxu0 %v5206_v53 }
 0x173   : > { %2053 = vmatpush1.bf16.msra.mxu0 %v5204_v54 }
 0x174   : > { %2054 = vmatprep.subr.bf16.mxu0 %v5209_v55 }
 0x177   : > { %2055 = vmatpush1.bf16.msra.mxu0 %v5207_v56 }
 0x178   : > { %2056 = vmatprep.subr.bf16.mxu0 %v5212_v57 }
 0x17b   : > { %2057 = vmatpush1.bf16.msra.mxu0 %v5210_v36 }
 0x17c   : > { %2058 = vmatprep.subr.bf16.mxu0 %v5215_v58 }
 0x17f   : > { %2059 = vmatpush1.bf16.msra.mxu0 %v5213_v59 }
 0x180   : > { %2060 = vmatprep.subr.bf16.mxu0 %v5218_v62 }
 0x183   : > { %2061 = vmatpush1.bf16.msra.mxu0 %v5216_v63  ;;  %v5268_v63 = vld [vmem:[%s7157_s5] ss:$8 sps:$4 sm:$0xff]  }
 0x186   : > { %2063 = vmatmul.mubr.bf16.vlgmr.msra.gmra.mrb[0].mxu0 %v1864_v2  ;;  %v5274_v2 = vld [vmem:[%s7157_s5 + $0x14] ss:$8 sps:$4 sm:$0xff]  }
 0x259   : > { %v2064_v29 = vpop.f32.mrb[0].mxu0 }
 0x25a   : > { %v2089_v32 = vmul.f32 %v2082_v26, %v2064_v29  ;;  %v2066_v33 = vpop.f32.mrb[1].mxu0  ;;  %v5305_v29 = vld [vmem:[%s7157_s5 + $0xc0] ss:$8 sps:$4 sm:$0xff]  }
 0x25b   : > { %v2090_v34 = vmul.f32 %v2086_v27, %v2066_v33  ;;  %v2068_v38 = vpop.f32.mrb[2].mxu0  ;;  %v5313_v33 = vld [vmem:[%s7157_s5 + $0xe4] ss:$8 sps:$4 sm:$0xff]  }
 0x25c   : > { %v2106_v37 = vadd.f32 %v2099_v28, %v2089_v32  ;;  %v2091_v15 = vmul.f32 %v2082_v26, %v2068_v38  ;;  %v2070_v39 = vpop.f32.mrb[3].mxu0  ;;  %v5304_v26 = vld [vmem:[%s7157_s5 + $0xb4] ss:$8 sps:$4 sm:$0xff]   ;;  %v5308_v32 = vld [vmem:[%s7157_s5 + $0xd0] ss:$8 sps:$4 sm:$0xff]  }
 0x25d   : > { %v2107_v40 = vadd.f32 %v2103_v30, %v2090_v34  ;;  %v2092_v41 = vmul.f32 %v2086_v27, %v2070_v39  ;;  %v5302_v27 = vld [vmem:[%s7157_s5 + $0xb0] ss:$8 sps:$4 sm:$0xff]   ;;  %v5311_v34 = vld [vmem:[%s7157_s5 + $0xe0] ss:$8 sps:$4 sm:$0xff]  }
 0x25e   : > { %v2110_v42 = vmax.f32 %v2106_v37, 0.0  ;;  %v2108_v43 = vadd.f32 %v2099_v28, %v2091_v15  ;;  %v5307_v28 = vld [vmem:[%s7157_s5 + $0xc4] ss:$8 sps:$4 sm:$0xff]   ;;  %v5316_v37 = vld [vmem:[%s7157_s5 + $0xf4] ss:$8 sps:$4 sm:$0xff]  }
 0x25f   : > { %v2111_v44 = vmax.f32 %v2107_v40, 0.0  ;;  %v2109_v21 = vadd.f32 %v2103_v30, %v2092_v41  ;;  %v5310_v30 = vld [vmem:[%s7157_s5 + $0xd4] ss:$8 sps:$4 sm:$0xff]   ;;  %v5314_v40 = vld [vmem:[%s7157_s5 + $0xf0] ss:$8 sps:$4 sm:$0xff]  }
 0x260   : > { %v2112_v25 = vmax.f32 %v2108_v43, 0.0  ;;  %v5319_v41 = vld [vmem:[%s7157_s5 + $0x204] ss:$8 sps:$4 sm:$0xff]  }
 0x261   : > { %v4810_v45 = vpack.c.bf16 %v2111_v44, %v2110_v42  ;;  %v2113_v46 = vmax.f32 %v2109_v21, 0.0  ;;  %v5317_v44 = vld [vmem:[%s7157_s5 + $0x200] ss:$8 sps:$4 sm:$0xff]  }
 0x263   : > { %v2125_v47 = vrot.slane %v4810_v45, 7  ;;  %v4811_v48 = vpack.c.bf16 %v2113_v46, %v2112_v25  ;;  %v5323_v45 = vld [vmem:[%s7157_s5 + $0x214] ss:$8 sps:$4 sm:$0xff]  }
 0x265   : > { %v2126_v49 = vrot.slane %v2125_v47, 4  ;;  %2133 = vst [vmem:[#allocation4] sm:$0xee] %v2125_v47  ;;  %v2127_v17 = vrot.slane %v4811_v48, 7  ;;  %v5321_v47 = vld [vmem:[%s7157_s5 + $0x210] ss:$8 sps:$4 sm:$0xff]  }
 0x266   : > { %v5326_v48 = vld [vmem:[%s7157_s5 + $0x224] ss:$8 sps:$4 sm:$0xff]  }
 0x267   : > { %v6450_v50 = vsel %vm2124_vm7, %v2126_v49, %v2127_v17  ;;  %v2129_v51 = vrot.slane %v2127_v17, 4  ;;  %v5324_v49 = vld [vmem:[%s7157_s5 + $0x220] ss:$8 sps:$4 sm:$0xff]   ;;  %v5329_v17 = vld [vmem:[%s7157_s5 + $0x234] ss:$8 sps:$4 sm:$0xff]  }
 0x269   : > { %2135 = vst [vmem:[#allocation4 + $0x10] sm:$0x11] %v2129_v51  ;;  %v5327_v51 = vld [vmem:[%s7157_s5 + $0x230] ss:$8 sps:$4 sm:$0xff]  }
 0x26c   : > { %v2170_v52 = vld [vmem:[#allocation4] sm:$0xee] }
 0x26d   : > { %v4489_v53 = vcombine.high %v2170_v52, %v6450_v50  ;;  %v4488_v54 = vcombine.low %v2170_v52, %v6450_v50  ;;  %v6454_v62 = vld [vmem:[#allocation4] sm:$0xff]  ;;  %v5332_v52 = vld [vmem:[%s7157_s5 + $0x244] ss:$8 sps:$4 sm:$0xff]  }
 0x26e   : > { %v4525_v16 = vcombine.high %v6454_v62, %v6450_v50  ;;  %v6552_v15 = vld [vmem:[#allocation4] sm:$0xcc]  ;;  %v4524_v21 = vcombine.low %v6454_v62, %v6450_v50 }
 0x26f   : > { %v2221_v36 = vrot.slane %v4489_v53, 1  ;;  %v2218_v59 = vrot.slane %v4488_v54, 1  ;;  %v4591_v42 = vcombine.high %v6552_v15, %v6450_v50  ;;  %v5330_v53 = vld [vmem:[%s7157_s5 + $0x240] ss:$8 sps:$4 sm:$0xff]   ;;  %v5335_v54 = vld [vmem:[%s7157_s5 + $0x254] ss:$8 sps:$4 sm:$0xff]  }
 0x270   : > { %v2171_v55 = vld [vmem:[#allocation4 + $0x10] sm:$0x11]  ;;  %v5347_v62 = vld [vmem:[%s7157_s5 + $0x294] ss:$8 sps:$4 sm:$0xff]  }
 0x271   : > { %v4491_v56 = vcombine.high %v2171_v55, %v2171_v55  ;;  %v4490_v57 = vcombine.low %v2171_v55, %v2171_v55  ;;  %v6547_v38 = vld [vmem:[#allocation4 + $0x10] sm:$0x33]  ;;  %v2688_v25 = vrot.slane %v4591_v42, 2  ;;  %v5333_v55 = vld [vmem:[%s7157_s5 + $0x250] ss:$8 sps:$4 sm:$0xff]  }
 0x272   : > { %v4593_v39 = vcombine.high %v6547_v38, %v6547_v38 }
 0x273   : > { %v2222_v58 = vrot.slane %v4491_v56, 1  ;;  %v2219_v60 = vrot.slane %v4490_v57, 1  ;;  %v5338_v56 = vld [vmem:[%s7157_s5 + $0x264] ss:$8 sps:$4 sm:$0xff]   ;;  %v5336_v57 = vld [vmem:[%s7157_s5 + $0x260] ss:$8 sps:$4 sm:$0xff]  }
 0x274   : > { %v2689_v43 = vrot.slane %v4593_v39, 2 }
 0x275   : > { %v2223_v0 = vsel %vm1074_vm6, %v2221_v36, %v2222_v58  ;;  %v2220_v1 = vsel %vm1074_vm6, %v2218_v59, %v2219_v60  ;;  %v5341_v36 = vld [vmem:[%s7157_s5 + $0x274] ss:$8 sps:$4 sm:$0xff]   ;;  %v5339_v58 = vld [vmem:[%s7157_s5 + $0x270] ss:$8 sps:$4 sm:$0xff]   ;;  %v5344_v59 = vld [vmem:[%s7157_s5 + $0x284] ss:$8 sps:$4 sm:$0xff]  }
 0x276   : > { %2418 = vmatprep.mubr.bf16.mxu1 %v2223_v0  ;;  %v2690_v46 = vsel %vm2684_vm2, %v2688_v25, %v2689_v43  ;;  %v5342_v60 = vld [vmem:[%s7157_s5 + $0x280] ss:$8 sps:$4 sm:$0xff]   ;;  %v5350_v0 = vld [vmem:[%s7157_s5 + $0x2a4] ss:$8 sps:$4 sm:$0xff]   ;;  %v451_v43 = vld [vmem:[#allocation5 + $0x10] sm:$0x66] }
 0x277   : > { %2419 = vmatmul.mubr.bf16.vlgmr.msra.gmra.mrb[0].mxu1 %v2220_v1  ;;  %v5348_v1 = vld [vmem:[%s7157_s5 + $0x2a0] ss:$8 sps:$4 sm:$0xff]   ;;  %vm449_vm6 = vmand %vm447_vm1, %vm448_vm0 }
 0x278   : > { %2597 = vmatpush1.bf16.msra.mxu1 %v5268_v63  ;;  %2628 = vmatprep.mubr.bf16.mxu1 %v4525_v16  ;;  %v5345_v63 = vld [vmem:[%s7157_s5 + $0x290] ss:$8 sps:$4 sm:$0xff]   ;;  %vm450_vm7 = vmor %vm449_vm6, %vm446_vm5 }
 0x279   : > { %2598 = vmatprep.subr.bf16.mxu1 %v5274_v2  ;;  %v5353_v2 = vld [vmem:[%s7157_s5 + $0x2b4] ss:$8 sps:$4 sm:$0xff]   ;;  %v5351_v16 = vld [vmem:[%s7157_s5 + $0x2b0] ss:$8 sps:$4 sm:$0xff]   ;;  %v452_v25 = vsel %vm450_vm7, 0, %v451_v43 }
 0x27a   : > { %453 = vst [vmem:[#allocation5 + $0x10] sm:$0x66] %v452_v25 }
 0x27c   : > { %2599 = vmatpush1.bf16.msra.mxu1 %v5272_v3  ;;  %v5356_v3 = vld [vmem:[%s7157_s5 + $0x2c4] ss:$8 sps:$4 sm:$0xff]  }
 0x27d   : > { %2600 = vmatprep.subr.bf16.mxu1 %v5277_v4  ;;  %v5354_v4 = vld [vmem:[%s7157_s5 + $0x2c0] ss:$8 sps:$4 sm:$0xff]  }
 0x280   : > { %2601 = vmatpush1.bf16.msra.mxu1 %v5275_v5  ;;  %v5359_v5 = vld [vmem:[%s7157_s5 + $0x2d4] ss:$8 sps:$4 sm:$0xff]  }
 0x281   : > { %2602 = vmatprep.subr.bf16.mxu1 %v5280_v6  ;;  %v5357_v6 = vld [vmem:[%s7157_s5 + $0x2d0] ss:$8 sps:$4 sm:$0xff]  }
 0x284   : > { %2603 = vmatpush1.bf16.msra.mxu1 %v5278_v7  ;;  %v5362_v7 = vld [vmem:[%s7157_s5 + $0x2e4] ss:$8 sps:$4 sm:$0xff]  }
 0x285   : > { %2604 = vmatprep.subr.bf16.mxu1 %v5283_v8  ;;  %v5360_v8 = vld [vmem:[%s7157_s5 + $0x2e0] ss:$8 sps:$4 sm:$0xff]  }
 0x288   : > { %2605 = vmatpush1.bf16.msra.mxu1 %v5281_v9  ;;  %v5365_v9 = vld [vmem:[%s7157_s5 + $0x2f4] ss:$8 sps:$4 sm:$0xff]  }
 0x289   : > { %2606 = vmatprep.subr.bf16.mxu1 %v5286_v10  ;;  %v4592_v10 = vcombine.low %v6547_v38, %v6547_v38  ;;  %v5388_v38 = vld [vmem:[%s7159_s7 + $0x170] ss:$8 sps:$4 sm:$0xff]  }
 0x28c   : > { %2607 = vmatpush1.bf16.msra.mxu1 %v5284_v11  ;;  %v5363_v11 = vld [vmem:[%s7157_s5 + $0x2f0] ss:$8 sps:$4 sm:$0xff]  }
 0x28d   : > { %2608 = vmatprep.subr.bf16.mxu1 %v5289_v12  ;;  %v4590_v12 = vcombine.low %v6552_v15, %v6450_v50  ;;  %v5370_v50 = vld [vmem:[%s7159_s7 + $0x110] ss:$8 sps:$4 sm:$0xff]   ;;  %v441_v15 = vld [vmem:[#allocation5] sm:$0x33] }
 0x28e   : > { %v442_v42 = vsel %vm440_vm4, 0, %v441_v15  ;;  %v2980_v15 = vld [vmem:[#allocation5 + $0x10] sm:$0x33] }
 0x28f   : > { %443 = vst [vmem:[#allocation5] sm:$0x33] %v442_v42 }
 0x290   : > { %2609 = vmatpush1.bf16.msra.mxu1 %v5287_v13  ;;  %v5369_v13 = vld [vmem:[%s7159_s7 + $0x104] ss:$8 sps:$4 sm:$0xff]  }
 0x291   : > { %2610 = vmatprep.subr.bf16.mxu1 %v5292_v14  ;;  %v2686_v14 = vrot.slane %v4592_v10, 2 }
 0x294   : > { %2611 = vmatpush1.bf16.msra.mxu1 %v5290_v35  ;;  %v2685_v35 = vrot.slane %v4590_v12, 2 }
 0x295   : > { %2612 = vmatprep.subr.bf16.mxu1 %v5295_v31  ;;  %v5367_v31 = vld [vmem:[%s7159_s7 + $0x100] ss:$8 sps:$4 sm:$0xff]  }
 0x298   : > { %2613 = vmatpush1.bf16.msra.mxu1 %v5293_v61  ;;  %v5372_v61 = vld [vmem:[%s7159_s7 + $0x114] ss:$8 sps:$4 sm:$0xff]  }
 0x299   : > { %2614 = vmatprep.subr.bf16.mxu1 %v5298_v19  ;;  %v2687_v19 = vsel %vm2684_vm2, %v2685_v35, %v2686_v14  ;;  %vm2971_vm2 = vcmask 1043457  }
 0x29a   : > { %vm6749_vm9 = vmand %vm2971_vm2, %vm445_vm14  ;;  %vm2947_vm14 = vsmask.f32 5392 }
 0x29b   : > { %vm2975_vm13 = vmor %vm6757_vm10, %vm6749_vm9 }
 0x29c   : > { %2615 = vmatpush1.bf16.msra.mxu1 %v5296_v20  ;;  %v5375_v20 = vld [vmem:[%s7159_s7 + $0x124] ss:$8 sps:$4 sm:$0xff]   ;;  %vm2948_vm1 = vmor %vm435_vm8, %vm2947_vm14  ;;  %vm3065_vm8 = vsmask.f32 6400 }
 0x29d   : > { %2616 = vmatprep.subr.bf16.mxu1 %v5301_v22  ;;  %v5373_v22 = vld [vmem:[%s7159_s7 + $0x120] ss:$8 sps:$4 sm:$0xff]  }
 0x2a0   : > { %2617 = vmatpush1.bf16.msra.mxu1 %v5299_v24  ;;  %v5378_v24 = vld [vmem:[%s7159_s7 + $0x134] ss:$8 sps:$4 sm:$0xff]  }
 0x2a1   : > { %2618 = vmatprep.subr.bf16.mxu1 %v5304_v26  ;;  %v5376_v26 = vld [vmem:[%s7159_s7 + $0x130] ss:$8 sps:$4 sm:$0xff]  }
 0x2a4   : > { %2619 = vmatpush1.bf16.msra.mxu1 %v5302_v27  ;;  %v5381_v27 = vld [vmem:[%s7159_s7 + $0x144] ss:$8 sps:$4 sm:$0xff]  }
 0x2a5   : > { %2620 = vmatprep.subr.bf16.mxu1 %v5307_v28  ;;  %v5379_v28 = vld [vmem:[%s7159_s7 + $0x140] ss:$8 sps:$4 sm:$0xff]  }
 0x2a8   : > { %2621 = vmatpush1.bf16.msra.mxu1 %v5305_v29  ;;  %v5384_v29 = vld [vmem:[%s7159_s7 + $0x154] ss:$8 sps:$4 sm:$0xff]  }
 0x2a9   : > { %2622 = vmatprep.subr.bf16.mxu1 %v5310_v30  ;;  %v5382_v30 = vld [vmem:[%s7159_s7 + $0x150] ss:$8 sps:$4 sm:$0xff]  }
 0x2ac   : > { %2623 = vmatpush1.bf16.msra.mxu1 %v5308_v32  ;;  %v5387_v32 = vld [vmem:[%s7159_s7 + $0x164] ss:$8 sps:$4 sm:$0xff]  }
 0x2ad   : > { %2624 = vmatprep.subr.bf16.mxu1 %v5313_v33  ;;  %v5385_v33 = vld [vmem:[%s7159_s7 + $0x160] ss:$8 sps:$4 sm:$0xff]  }
 0x2b0   : > { %2625 = vmatpush1.bf16.msra.mxu1 %v5311_v34  ;;  %v5390_v34 = vld [vmem:[%s7159_s7 + $0x174] ss:$8 sps:$4 sm:$0xff]  }
 0x2b1   : > { %2626 = vmatprep.subr.bf16.mxu1 %v5316_v37 }
 0x2b4   : > { %2627 = vmatpush1.bf16.msra.mxu1 %v5314_v40  ;;  %v5391_v40 = vld [vmem:[%s7159_s7 + $0x180] ss:$8 sps:$4 sm:$0xff]  }
 0x2b5   : > { %2853 = vmatprep.subr.bf16.mxu1 %v5319_v41  ;;  %v5393_v41 = vld [vmem:[%s7159_s7 + $0x184] ss:$8 sps:$4 sm:$0xff]  }
 0x2b7   : > { %2629 = vmatmul.mubr.bf16.vlgmr.msra.gmra.mrb[0].mxu1 %v4524_v21  ;;  %v5394_v21 = vld [vmem:[%s7159_s7 + $0x190] ss:$8 sps:$4 sm:$0xff]  }
 0x2b8   : > { %2854 = vmatpush1.bf16.msra.mxu1 %v5317_v44  ;;  %2885 = vmatprep.mubr.bf16.mxu1 %v2690_v46  ;;  %v5396_v44 = vld [vmem:[%s7159_s7 + $0x194] ss:$8 sps:$4 sm:$0xff]  }
 0x2b9   : > { %2855 = vmatprep.subr.bf16.mxu1 %v5323_v45  ;;  %v5399_v45 = vld [vmem:[%s7159_s7 + $0x1a4] ss:$8 sps:$4 sm:$0xff]  }
 0x2bc   : > { %2856 = vmatpush1.bf16.msra.mxu1 %v5321_v47  ;;  %v5397_v47 = vld [vmem:[%s7159_s7 + $0x1a0] ss:$8 sps:$4 sm:$0xff]  }
 0x2bd   : > { %2857 = vmatprep.subr.bf16.mxu1 %v5326_v48 }
 0x2c0   : > { %2858 = vmatpush1.bf16.msra.mxu1 %v5324_v49  ;;  %v5402_v49 = vld [vmem:[%s7159_s7 + $0x1b4] ss:$8 sps:$4 sm:$0xff]  }
 0x2c1   : > { %2859 = vmatprep.subr.bf16.mxu1 %v5329_v17  ;;  %v5400_v17 = vld [vmem:[%s7159_s7 + $0x1b0] ss:$8 sps:$4 sm:$0xff]  }
 0x2c4   : > { %2860 = vmatpush1.bf16.msra.mxu1 %v5327_v51  ;;  %v5405_v51 = vld [vmem:[%s7159_s7 + $0x1c4] ss:$8 sps:$4 sm:$0xff]  }
 0x2c5   : > { %2861 = vmatprep.subr.bf16.mxu1 %v5332_v52  ;;  %v5403_v52 = vld [vmem:[%s7159_s7 + $0x1c0] ss:$8 sps:$4 sm:$0xff]  }
 0x2c8   : > { %2862 = vmatpush1.bf16.msra.mxu1 %v5330_v53  ;;  %v5408_v53 = vld [vmem:[%s7159_s7 + $0x1d4] ss:$8 sps:$4 sm:$0xff]  }
 0x2c9   : > { %2863 = vmatprep.subr.bf16.mxu1 %v5335_v54  ;;  %v5406_v54 = vld [vmem:[%s7159_s7 + $0x1d0] ss:$8 sps:$4 sm:$0xff]  }
 0x2cc   : > { %2864 = vmatpush1.bf16.msra.mxu1 %v5333_v55  ;;  %v5411_v55 = vld [vmem:[%s7159_s7 + $0x1e4] ss:$8 sps:$4 sm:$0xff]  }
 0x2cd   : > { %2865 = vmatprep.subr.bf16.mxu1 %v5338_v56  ;;  %v5409_v56 = vld [vmem:[%s7159_s7 + $0x1e0] ss:$8 sps:$4 sm:$0xff]  }
 0x2d0   : > { %2866 = vmatpush1.bf16.msra.mxu1 %v5336_v57  ;;  %v5414_v57 = vld [vmem:[%s7159_s7 + $0x1f4] ss:$8 sps:$4 sm:$0xff]  }
 0x2d1   : > { %2867 = vmatprep.subr.bf16.mxu1 %v5341_v36  ;;  %v5412_v36 = vld [vmem:[%s7159_s7 + $0x1f0] ss:$8 sps:$4 sm:$0xff]  }
 0x2d4   : > { %2868 = vmatpush1.bf16.msra.mxu1 %v5339_v58  ;;  %v5418_v58 = vld [vmem:[%s7159_s7 + $0x4] ss:$8 sps:$4 sm:$0xff]  }
 0x2d5   : > { %2869 = vmatprep.subr.bf16.mxu1 %v5344_v59  ;;  %v2900_v59 = vld [vmem:[%s7158_s6] ss:$2 sm:$0x3] }
 0x2d8   : > { %2870 = vmatpush1.bf16.msra.mxu1 %v5342_v60  ;;  %v4626_v60 = vld [vmem:[%s7158_s6 + $0x1] ss:$2 sm:$0x3] }
 0x2d9   : > { %2871 = vmatprep.subr.bf16.mxu1 %v5347_v62  ;;  %v2905_v62 = vrot.slane %v2900_v59, %v6434_v18 }
 0x2dc   : > { %2872 = vmatpush1.bf16.msra.mxu1 %v5345_v63  ;;  %v2909_v63 = vrot.slane %v2900_v59, %v6439_v23 }
 0x2dd   : > { %2873 = vmatprep.subr.bf16.mxu1 %v5350_v0  ;;  %v2922_v0 = vrot.slane %v4626_v60, %v6434_v18 }
 0x2e0   : > { %2874 = vmatpush1.bf16.msra.mxu1 %v5348_v1 }
 0x2e1   : > { %2875 = vmatprep.subr.bf16.mxu1 %v5353_v2  ;;  %v2926_v2 = vrot.slane %v4626_v60, %v6439_v23 }
 0x2e4   : > { %2876 = vmatpush1.bf16.msra.mxu1 %v5351_v16 }
 0x2e5   : > { %2877 = vmatprep.subr.bf16.mxu1 %v5356_v3 }
 0x2e8   : > { %2878 = vmatpush1.bf16.msra.mxu1 %v5354_v4 }
 0x2e9   : > { %2879 = vmatprep.subr.bf16.mxu1 %v5359_v5 }
 0x2ec   : > { %2880 = vmatpush1.bf16.msra.mxu1 %v5357_v6 }
 0x2ed   : > { %2881 = vmatprep.subr.bf16.mxu1 %v5362_v7 }
 0x2f0   : > { %2882 = vmatpush1.bf16.msra.mxu1 %v5360_v8 }
 0x2f1   : > { %2883 = vmatprep.subr.bf16.mxu1 %v5365_v9 }
 0x2f4   : > { %2884 = vmatpush1.bf16.msra.mxu1 %v5363_v11 }
 0x2f5   : > { %3262 = vmatprep.subr.bf16.mxu1 %v5369_v13 }
 0x2f7   : > { %2886 = vmatmul.mubr.bf16.vlgmr.msra.gmra.mrb[0].mxu1 %v2687_v19 }
 0x2f8   : > { %3263 = vmatpush1.bf16.msra.mxu1 %v5367_v31 }
 0x2f9   : > { %3264 = vmatprep.subr.bf16.mxu1 %v5372_v61 }
 0x2fc   : > { %3265 = vmatpush1.bf16.msra.mxu1 %v5370_v50 }
 0x2fd   : > { %3266 = vmatprep.subr.bf16.mxu1 %v5375_v20 }
 0x300   : > { %3267 = vmatpush1.bf16.msra.mxu1 %v5373_v22 }
 0x301   : > { %3268 = vmatprep.subr.bf16.mxu1 %v5378_v24 }
 0x304   : > { %3269 = vmatpush1.bf16.msra.mxu1 %v5376_v26 }
 0x305   : > { %3270 = vmatprep.subr.bf16.mxu1 %v5381_v27 }
 0x308   : > { %3271 = vmatpush1.bf16.msra.mxu1 %v5379_v28  ;;  %v2976_v28 = vld [vmem:[#allocation5] sm:$0xee] }
 0x309   : > { %3272 = vmatprep.subr.bf16.mxu1 %v5384_v29 }
 0x30c   : > { %3273 = vmatpush1.bf16.msra.mxu1 %v5382_v30 }
 0x30d   : > { %3274 = vmatprep.subr.bf16.mxu1 %v5387_v32 }
 0x310   : > { %3275 = vmatpush1.bf16.msra.mxu1 %v5385_v33 }
 0x311   : > { %3276 = vmatprep.subr.bf16.mxu1 %v5390_v34 }
 0x314   : > { %3277 = vmatpush1.bf16.msra.mxu1 %v5388_v38 }
 0x315   : > { %3278 = vmatprep.subr.bf16.mxu1 %v5393_v41 }
 0x318   : > { %3279 = vmatpush1.bf16.msra.mxu1 %v5391_v40 }
 0x319   : > { %3280 = vmatprep.subr.bf16.mxu1 %v5396_v44 }
 0x31c   : > { %3281 = vmatpush1.bf16.msra.mxu1 %v5394_v21 }
 0x31d   : > { %3282 = vmatprep.subr.bf16.mxu1 %v5399_v45 }
 0x320   : > { %3283 = vmatpush1.bf16.msra.mxu1 %v5397_v47 }
 0x321   : > { %3284 = vmatprep.subr.bf16.mxu1 %v5402_v49 }
 0x324   : > { %3285 = vmatpush1.bf16.msra.mxu1 %v5400_v17 }
 0x325   : > { %3286 = vmatprep.subr.bf16.mxu1 %v5405_v51 }
 0x328   : > { %3287 = vmatpush1.bf16.msra.mxu1 %v5403_v52 }
 0x329   : > { %3288 = vmatprep.subr.bf16.mxu1 %v5408_v53 }
 0x32c   : > { %3289 = vmatpush1.bf16.msra.mxu1 %v5406_v54 }
 0x32d   : > { %3290 = vmatprep.subr.bf16.mxu1 %v5411_v55 }
 0x330   : > { %3291 = vmatpush1.bf16.msra.mxu1 %v5409_v56 }
 0x331   : > { %3292 = vmatprep.subr.bf16.mxu1 %v5414_v57 }
 0x334   : > { %3293 = vmatpush1.bf16.msra.mxu1 %v5412_v36 }
 0x335   : > { %3472 = vmatprep.subr.bf16.mxu1 %v5418_v58 }
 0x3ca   : > { %v2887_v1 = vpop.f32.mrb[0].mxu1 }
 0x3cb   : > { %v2912_v16 = vmul.f32 %v2905_v62, %v2887_v1  ;;  %v2889_v3 = vpop.f32.mrb[1].mxu1 }
 0x3cc   : > { %v2913_v4 = vmul.f32 %v2909_v63, %v2889_v3  ;;  %v2891_v5 = vpop.f32.mrb[2].mxu1  ;;  %v5422_v3 = vld [vmem:[%s7159_s7 + $0x14] ss:$8 sps:$4 sm:$0xff]  }
 0x3cd   : > { %v2929_v6 = vadd.f32 %v2922_v0, %v2912_v16  ;;  %v2914_v7 = vmul.f32 %v2905_v62, %v2891_v5  ;;  %v2893_v8 = vpop.f32.mrb[3].mxu1 }
 0x3ce   : > { %v2930_v9 = vadd.f32 %v2926_v2, %v2913_v4  ;;  %v2915_v10 = vmul.f32 %v2909_v63, %v2893_v8  ;;  %v3844_v8 = vld [vmem:[%s7161_s9 + $0x88] sm:$0xff] }
 0x3cf   : > { %v2933_v11 = vmax.f32 %v2929_v6, 0.0  ;;  %v2931_v12 = vadd.f32 %v2922_v0, %v2914_v7  ;;  %v5416_v0 = vld [vmem:[%s7159_s7] ss:$8 sps:$4 sm:$0xff]   ;;  %v5420_v6 = vld [vmem:[%s7159_s7 + $0x10] ss:$8 sps:$4 sm:$0xff]  }
 0x3d0   : > { %v2934_v13 = vmax.f32 %v2930_v9, 0.0  ;;  %v2932_v14 = vadd.f32 %v2926_v2, %v2915_v10  ;;  %v3843_v7 = vld [vmem:[%s7161_s9 + $0x80] sm:$0xff] }
 0x3d1   : > { %v2935_v35 = vmax.f32 %v2931_v12, 0.0  ;;  %v3827_v9 = vld [vmem:[%s7161_s9] sm:$0xff]  ;;  %v4849_v10 = vpack.c.bf16 %v3844_v8, %v3843_v7  ;;  %v3845_v12 = vld [vmem:[%s7161_s9 + $0x90] sm:$0xff] }
 0x3d2   : > { %v4812_v31 = vpack.c.bf16 %v2934_v13, %v2933_v11  ;;  %v2936_v61 = vmax.f32 %v2932_v14, 0.0  ;;  %v3828_v11 = vld [vmem:[%s7161_s9 + $0x8] sm:$0xff]  ;;  %v3846_v13 = vld [vmem:[%s7161_s9 + $0x98] sm:$0xff] }
 0x3d3   : > { %v5425_v14 = vld [vmem:[%s7159_s7 + $0x24] ss:$8 sps:$4 sm:$0xff]   ;;  %4850 = vmatprep.subr.bf16.mxu0 %v4849_v10  ;;  %v5484_v7 = vld [vmem:[%s7159_s7 + $0x260] ss:$8 sps:$4 sm:$0xff]   ;;  %v5489_v8 = vld [vmem:[%s7159_s7 + $0x274] ss:$8 sps:$4 sm:$0xff]  }
 0x3d4   : > { %v2950_v19 = vshrl.u32 %v4812_v31, 16  ;;  %v2953_v50 = vshll.u32 %v4812_v31, 16  ;;  %v4813_v20 = vpack.c.bf16 %v2936_v61, %v2935_v35  ;;  %v4851_v35 = vpack.c.bf16 %v3828_v11, %v3827_v9  ;;  %v3829_v61 = vld [vmem:[%s7161_s9 + $0x10] sm:$0xff]  ;;  %v5492_v10 = vld [vmem:[%s7159_s7 + $0x284] ss:$8 sps:$4 sm:$0xff]  }
 0x3d5   : > { %v4853_v31 = vpack.c.bf16 %v3846_v13, %v3845_v12  ;;  %v5487_v9 = vld [vmem:[%s7159_s7 + $0x270] ss:$8 sps:$4 sm:$0xff]   ;;  %v5490_v11 = vld [vmem:[%s7159_s7 + $0x280] ss:$8 sps:$4 sm:$0xff]   ;;  %v5495_v12 = vld [vmem:[%s7159_s7 + $0x294] ss:$8 sps:$4 sm:$0xff]  }
 0x3d6   : > { %v2952_v22 = vrot.slane %v2950_v19, 6  ;;  %v2955_v24 = vrot.slane %v2953_v50, 7  ;;  %v2959_v26 = vshrl.u32 %v4813_v20, 16  ;;  %v2962_v27 = vshll.u32 %v4813_v20, 16  ;;  %v3830_v19 = vld [vmem:[%s7161_s9 + $0x18] sm:$0xff]  ;;  %4852 = vmatpush3.bf16.msra.mxu0 %v4851_v35 }
 0x3d7   : > { %v4855_v50 = vpack.c.bf16 %v3830_v19, %v3829_v61  ;;  %v5423_v20 = vld [vmem:[%s7159_s7 + $0x20] ss:$8 sps:$4 sm:$0xff]   ;;  %4854 = vmatprep.subr.bf16.mxu0 %v4853_v31  ;;  %v5493_v13 = vld [vmem:[%s7159_s7 + $0x290] ss:$8 sps:$4 sm:$0xff]   ;;  %v5501_v31 = vld [vmem:[%s7159_s7 + $0x2b4] ss:$8 sps:$4 sm:$0xff]  }
 0x3d8   : > { %v2956_v29 = vor.u32 %v2955_v24, %v2952_v22  ;;  %v2961_v30 = vrot.slane %v2959_v26, 6  ;;  %v2964_v32 = vrot.slane %v2962_v27, 7  ;;  %v5428_v22 = vld [vmem:[%s7159_s7 + $0x34] ss:$8 sps:$4 sm:$0xff]   ;;  %v5426_v24 = vld [vmem:[%s7159_s7 + $0x30] ss:$8 sps:$4 sm:$0xff]  }
 0x3d9   : > { %v5431_v26 = vld [vmem:[%s7159_s7 + $0x44] ss:$8 sps:$4 sm:$0xff]   ;;  %v5429_v27 = vld [vmem:[%s7159_s7 + $0x40] ss:$8 sps:$4 sm:$0xff]   ;;  %v5499_v61 = vld [vmem:[%s7159_s7 + $0x2b0] ss:$8 sps:$4 sm:$0xff]  }
 0x3da   : > { %v2957_v33 = vrot.slane %v2956_v29, 4  ;;  %v2977_v34 = vsel %vm2975_vm13, %v2956_v29, %v2976_v28  ;;  %v2965_v38 = vor.u32 %v2964_v32, %v2961_v30  ;;  %4856 = vmatpush3.bf16.msra.mxu0 %v4855_v50  ;;  %v5434_v28 = vld [vmem:[%s7159_s7 + $0x54] ss:$8 sps:$4 sm:$0xff]   ;;  %v5432_v29 = vld [vmem:[%s7159_s7 + $0x50] ss:$8 sps:$4 sm:$0xff]  }
 0x3db   : > { %2978 = vst [vmem:[#allocation5] sm:$0xee] %v2977_v34  ;;  %v5437_v30 = vld [vmem:[%s7159_s7 + $0x64] ss:$8 sps:$4 sm:$0xff]   ;;  %v5435_v32 = vld [vmem:[%s7159_s7 + $0x60] ss:$8 sps:$4 sm:$0xff]  }
 0x3dc   : > { %v6814_v40 = vsel %vm2948_vm1, %v2957_v33, %v2965_v38  ;;  %v2967_v41 = vrot.slane %v2965_v38, 4  ;;  %v5440_v33 = vld [vmem:[%s7159_s7 + $0x74] ss:$8 sps:$4 sm:$0xff]   ;;  %v5438_v34 = vld [vmem:[%s7159_s7 + $0x70] ss:$8 sps:$4 sm:$0xff]  }
 0x3dd   : > { %v5443_v38 = vld [vmem:[%s7159_s7 + $0x84] ss:$8 sps:$4 sm:$0xff]   ;;  %v5496_v35 = vld [vmem:[%s7159_s7 + $0x2a0] ss:$8 sps:$4 sm:$0xff]  }
 0x3de   : > { %v2981_v42 = vsel %vm440_vm4, %v2967_v41, %v2980_v15  ;;  %v5441_v15 = vld [vmem:[%s7159_s7 + $0x80] ss:$8 sps:$4 sm:$0xff]   ;;  %v5446_v41 = vld [vmem:[%s7159_s7 + $0x94] ss:$8 sps:$4 sm:$0xff]   ;;  %v5504_v19 = vld [vmem:[%s7159_s7 + $0x2c4] ss:$8 sps:$4 sm:$0xff]  }
 0x3df   : > { %2982 = vst [vmem:[#allocation5 + $0x10] sm:$0x33] %v2981_v42  ;;  %v5444_v42 = vld [vmem:[%s7159_s7 + $0x90] ss:$8 sps:$4 sm:$0xff]   ;;  %v5502_v50 = vld [vmem:[%s7159_s7 + $0x2c0] ss:$8 sps:$4 sm:$0xff]  }
 0x3e2   : > { %v3017_v43 = vld [vmem:[#allocation5] sm:$0xee] }
 0x3e3   : > { %v4662_v44 = vcombine.high %v3017_v43, %v6814_v40  ;;  %v4661_v21 = vcombine.low %v3017_v43, %v6814_v40  ;;  %v6823_v63 = vld [vmem:[#allocation5] sm:$0xff] }
 0x3e4   : > { %v4698_v5 = vcombine.high %v6823_v63, %v6814_v40  ;;  %v5449_v43 = vld [vmem:[%s7159_s7 + $0xa4] ss:$8 sps:$4 sm:$0xff]  }
 0x3e5   : > { %v3084_v25 = vshrl.u32 %v4662_v44, 16  ;;  %v3087_v45 = vshll.u32 %v4662_v44, 16  ;;  %v3067_v47 = vshrl.u32 %v4661_v21, 16  ;;  %v3070_v48 = vshll.u32 %v4661_v21, 16  ;;  %v5447_v44 = vld [vmem:[%s7159_s7 + $0xa0] ss:$8 sps:$4 sm:$0xff]  }
 0x3e6   : > { %v3018_v46 = vld [vmem:[#allocation5 + $0x10] sm:$0x33] }
 0x3e7   : > { %v4664_v49 = vcombine.high %v3018_v46, %v3018_v46  ;;  %v4663_v17 = vcombine.low %v3018_v46, %v3018_v46  ;;  %v3086_v51 = vrot.slane %v3084_v25, 1  ;;  %v3089_v52 = vrot.slane %v3087_v45, 2  ;;  %v5452_v21 = vld [vmem:[%s7159_s7 + $0xb4] ss:$8 sps:$4 sm:$0xff]   ;;  %v5450_v25 = vld [vmem:[%s7159_s7 + $0xb0] ss:$8 sps:$4 sm:$0xff]  }
 0x3e8   : > { %v3069_v54 = vrot.slane %v3067_v47, 1  ;;  %v3072_v55 = vrot.slane %v3070_v48, 2  ;;  %v5455_v45 = vld [vmem:[%s7159_s7 + $0xc4] ss:$8 sps:$4 sm:$0xff]   ;;  %v5453_v46 = vld [vmem:[%s7159_s7 + $0xc0] ss:$8 sps:$4 sm:$0xff]  }
 0x3e9   : > { %v3092_v39 = vshrl.u32 %v4664_v49, 16  ;;  %v3095_v53 = vshll.u32 %v4664_v49, 16  ;;  %v3075_v37 = vshrl.u32 %v4663_v17, 16  ;;  %v3078_v56 = vshll.u32 %v4663_v17, 16  ;;  %v5458_v47 = vld [vmem:[%s7159_s7 + $0xd4] ss:$8 sps:$4 sm:$0xff]  }
 0x3ea   : > { %v3090_v60 = vor.u32 %v3089_v52, %v3086_v51  ;;  %v3073_v1 = vor.u32 %v3072_v55, %v3069_v54  ;;  %v5456_v48 = vld [vmem:[%s7159_s7 + $0xd0] ss:$8 sps:$4 sm:$0xff]   ;;  %v5461_v49 = vld [vmem:[%s7159_s7 + $0xe4] ss:$8 sps:$4 sm:$0xff]   ;;  %v5459_v17 = vld [vmem:[%s7159_s7 + $0xe0] ss:$8 sps:$4 sm:$0xff]  }
 0x3eb   : > { %v3094_v57 = vrot.slane %v3092_v39, 1  ;;  %v3097_v36 = vrot.slane %v3095_v53, 2  ;;  %v3077_v58 = vrot.slane %v3075_v37, 1  ;;  %v3080_v59 = vrot.slane %v3078_v56, 2  ;;  %v6938_v51 = vld [vmem:[#allocation5 + $0x10] sm:$0x77] }
 0x3ec   : > { %v5464_v52 = vld [vmem:[%s7159_s7 + $0xf4] ss:$8 sps:$4 sm:$0xff]   ;;  %v6943_v39 = vld [vmem:[#allocation5] sm:$0x88]  ;;  %v4766_v53 = vcombine.high %v6938_v51, %v6938_v51  ;;  %v5462_v37 = vld [vmem:[%s7159_s7 + $0xf0] ss:$8 sps:$4 sm:$0xff]  }
 0x3ed   : > { %v3098_v62 = vor.u32 %v3097_v36, %v3094_v57  ;;  %v3081_v2 = vor.u32 %v3080_v59, %v3077_v58  ;;  %v5467_v54 = vld [vmem:[%s7159_s7 + $0x204] ss:$8 sps:$4 sm:$0xff]   ;;  %v4764_v55 = vcombine.high %v6943_v39, %v6814_v40  ;;  %v5465_v57 = vld [vmem:[%s7159_s7 + $0x200] ss:$8 sps:$4 sm:$0xff]   ;;  %v4697_v36 = vcombine.low %v6823_v63, %v6814_v40  ;;  %v5471_v59 = vld [vmem:[%s7159_s7 + $0x214] ss:$8 sps:$4 sm:$0xff]  }
 0x3ee   : > { %v3565_v56 = vrot.slane %v4766_v53, 3  ;;  %v5474_v63 = vld [vmem:[%s7159_s7 + $0x224] ss:$8 sps:$4 sm:$0xff]   ;;  %v3853_v53 = vld [vmem:[%s7161_s9 + $0xd0] sm:$0xff] }
 0x3ef   : > { %v3099_v16 = vsel %vm3065_vm8, %v3090_v60, %v3098_v62  ;;  %v3082_v4 = vsel %vm3065_vm8, %v3073_v1, %v3081_v2  ;;  %v3564_v58 = vrot.slane %v4764_v55, 3  ;;  %v5469_v62 = vld [vmem:[%s7159_s7 + $0x210] ss:$8 sps:$4 sm:$0xff]   ;;  %v5477_v1 = vld [vmem:[%s7159_s7 + $0x234] ss:$8 sps:$4 sm:$0xff]  }
 0x3f0   : > { %3294 = vmatprep.mubr.bf16.mxu1 %v3099_v16  ;;  %v5475_v2 = vld [vmem:[%s7159_s7 + $0x230] ss:$8 sps:$4 sm:$0xff]   ;;  %v5480_v16 = vld [vmem:[%s7159_s7 + $0x244] ss:$8 sps:$4 sm:$0xff]  }
 0x3f1   : > { %3295 = vmatmul.mubr.bf16.vlgmr.msra.gmra.mrb[4].mxu1 %v3082_v4  ;;  %v3566_v60 = vsel %vm3560_vm11, %v3564_v58, %v3565_v56  ;;  %v5483_v4 = vld [vmem:[%s7159_s7 + $0x254] ss:$8 sps:$4 sm:$0xff]   ;;  %v3856_v58 = vld [vmem:[%s7161_s9 + $0xe8] sm:$0xff] }
 0x3f2   : > { %3473 = vmatpush1.bf16.msra.mxu1 %v5416_v0  ;;  %3504 = vmatprep.mubr.bf16.mxu1 %v4698_v5  ;;  %v5472_v0 = vld [vmem:[%s7159_s7 + $0x220] ss:$8 sps:$4 sm:$0xff]   ;;  %v5481_v5 = vld [vmem:[%s7159_s7 + $0x250] ss:$8 sps:$4 sm:$0xff]  }
 0x3f3   : > { %3474 = vmatprep.subr.bf16.mxu1 %v5422_v3  ;;  %v5478_v3 = vld [vmem:[%s7159_s7 + $0x240] ss:$8 sps:$4 sm:$0xff]   ;;  %v3837_v55 = vld [vmem:[%s7161_s9 + $0x50] sm:$0xff]  ;;  %v3838_v56 = vld [vmem:[%s7161_s9 + $0x58] sm:$0xff] }
 0x3f6   : > { %3475 = vmatpush1.bf16.msra.mxu1 %v5420_v6  ;;  %v5486_v6 = vld [vmem:[%s7159_s7 + $0x264] ss:$8 sps:$4 sm:$0xff]  }
 0x3f7   : > { %3476 = vmatprep.subr.bf16.mxu1 %v5425_v14  ;;  %v5498_v14 = vld [vmem:[%s7159_s7 + $0x2a4] ss:$8 sps:$4 sm:$0xff]  }
 0x3fa   : > { %3477 = vmatpush1.bf16.msra.mxu1 %v5423_v20  ;;  %v5507_v20 = vld [vmem:[%s7159_s7 + $0x2d4] ss:$8 sps:$4 sm:$0xff]  }
 0x3fb   : > { %3478 = vmatprep.subr.bf16.mxu1 %v5428_v22  ;;  %v5505_v22 = vld [vmem:[%s7159_s7 + $0x2d0] ss:$8 sps:$4 sm:$0xff]  }
 0x3fe   : > { %3479 = vmatpush1.bf16.msra.mxu1 %v5426_v24  ;;  %v5510_v24 = vld [vmem:[%s7159_s7 + $0x2e4] ss:$8 sps:$4 sm:$0xff]  }
 0x3ff   : > { %3480 = vmatprep.subr.bf16.mxu1 %v5431_v26  ;;  %v5508_v26 = vld [vmem:[%s7159_s7 + $0x2e0] ss:$8 sps:$4 sm:$0xff]  }
 0x402   : > { %3481 = vmatpush1.bf16.msra.mxu1 %v5429_v27  ;;  %v5513_v27 = vld [vmem:[%s7159_s7 + $0x2f4] ss:$8 sps:$4 sm:$0xff]  }
 0x403   : > { %3482 = vmatprep.subr.bf16.mxu1 %v5434_v28  ;;  %v4765_v28 = vcombine.low %v6938_v51, %v6938_v51  ;;  %v3835_v51 = vld [vmem:[%s7161_s9 + $0x40] sm:$0xff] }
 0x406   : > { %3483 = vmatpush1.bf16.msra.mxu1 %v5432_v29  ;;  %v5511_v29 = vld [vmem:[%s7159_s7 + $0x2f0] ss:$8 sps:$4 sm:$0xff]  }
 0x407   : > { %3484 = vmatprep.subr.bf16.mxu1 %v5437_v30  ;;  %v4763_v30 = vcombine.low %v6943_v39, %v6814_v40  ;;  %v3831_v40 = vld [vmem:[%s7161_s9 + $0x20] sm:$0xff] }
 0x40a   : > { %3485 = vmatpush1.bf16.msra.mxu1 %v5435_v32  ;;  %v3562_v32 = vrot.slane %v4765_v28, 3 }
 0x40b   : > { %3486 = vmatprep.subr.bf16.mxu1 %v5440_v33  ;;  %v3561_v33 = vrot.slane %v4763_v30, 3 }
 0x40e   : > { %3487 = vmatpush1.bf16.msra.mxu1 %v5438_v34  ;;  %v3563_v34 = vsel %vm3560_vm11, %v3561_v33, %v3562_v32 }
 0x40f   : > { %3488 = vmatprep.subr.bf16.mxu1 %v5443_v38  ;;  %v3847_v38 = vld [vmem:[%s7161_s9 + $0xa0] sm:$0xff] }
 0x412   : > { %3489 = vmatpush1.bf16.msra.mxu1 %v5441_v15  ;;  %v3848_v15 = vld [vmem:[%s7161_s9 + $0xa8] sm:$0xff] }
 0x413   : > { %3490 = vmatprep.subr.bf16.mxu1 %v5446_v41  ;;  %v4857_v41 = vpack.c.bf16 %v3848_v15, %v3847_v38 }
 0x415   : > { %4858 = vmatprep.subr.bf16.mxu0 %v4857_v41 }
 0x416   : > { %3491 = vmatpush1.bf16.msra.mxu1 %v5444_v42  ;;  %v3832_v42 = vld [vmem:[%s7161_s9 + $0x28] sm:$0xff] }
 0x417   : > { %3492 = vmatprep.subr.bf16.mxu1 %v5449_v43  ;;  %v4859_v43 = vpack.c.bf16 %v3832_v42, %v3831_v40 }
 0x419   : > { %4860 = vmatpush3.bf16.msra.mxu0 %v4859_v43 }
 0x41a   : > { %3493 = vmatpush1.bf16.msra.mxu1 %v5447_v44  ;;  %v3849_v44 = vld [vmem:[%s7161_s9 + $0xb0] sm:$0xff] }
 0x41b   : > { %3494 = vmatprep.subr.bf16.mxu1 %v5452_v21  ;;  %v3850_v21 = vld [vmem:[%s7161_s9 + $0xb8] sm:$0xff] }
 0x41e   : > { %3495 = vmatpush1.bf16.msra.mxu1 %v5450_v25  ;;  %v4861_v25 = vpack.c.bf16 %v3850_v21, %v3849_v44 }
 0x41f   : > { %3496 = vmatprep.subr.bf16.mxu1 %v5455_v45  ;;  %v3833_v45 = vld [vmem:[%s7161_s9 + $0x30] sm:$0xff] }
 0x420   : > { %4862 = vmatprep.subr.bf16.mxu0 %v4861_v25 }
 0x422   : > { %3497 = vmatpush1.bf16.msra.mxu1 %v5453_v46  ;;  %v3834_v46 = vld [vmem:[%s7161_s9 + $0x38] sm:$0xff] }
 0x423   : > { %3498 = vmatprep.subr.bf16.mxu1 %v5458_v47  ;;  %v4863_v47 = vpack.c.bf16 %v3834_v46, %v3833_v45 }
 0x425   : > { %4864 = vmatpush3.bf16.msra.mxu0 %v4863_v47  ;;  %v5533_v47 = vmov 0.0  }
 0x426   : > { %3499 = vmatpush1.bf16.msra.mxu1 %v5456_v48  ;;  %v3851_v48 = vld [vmem:[%s7161_s9 + $0xc0] sm:$0xff] }
 0x427   : > { %3500 = vmatprep.subr.bf16.mxu1 %v5461_v49  ;;  %v3852_v49 = vld [vmem:[%s7161_s9 + $0xc8] sm:$0xff] }
 0x42a   : > { %3501 = vmatpush1.bf16.msra.mxu1 %v5459_v17  ;;  %v4865_v17 = vpack.c.bf16 %v3852_v49, %v3851_v48 }
 0x42b   : > { %3502 = vmatprep.subr.bf16.mxu1 %v5464_v52  ;;  %v3836_v52 = vld [vmem:[%s7161_s9 + $0x48] sm:$0xff] }
 0x42c   : > { %v4867_v39 = vpack.c.bf16 %v3836_v52, %v3835_v51  ;;  %4866 = vmatprep.subr.bf16.mxu0 %v4865_v17 }
 0x42e   : > { %3503 = vmatpush1.bf16.msra.mxu1 %v5462_v37  ;;  %4868 = vmatpush3.bf16.msra.mxu0 %v4867_v39  ;;  %v3854_v37 = vld [vmem:[%s7161_s9 + $0xd8] sm:$0xff] }
 0x42f   : > { %3729 = vmatprep.subr.bf16.mxu1 %v5467_v54  ;;  %v4869_v54 = vpack.c.bf16 %v3854_v37, %v3853_v53 }
 0x431   : > { %3505 = vmatmul.mubr.bf16.vlgmr.msra.gmra.mrb[4].mxu1 %v4697_v36  ;;  %4870 = vmatprep.subr.bf16.mxu0 %v4869_v54  ;;  %v3855_v36 = vld [vmem:[%s7161_s9 + $0xe0] sm:$0xff] }
 0x432   : > { %3730 = vmatpush1.bf16.msra.mxu1 %v5465_v57  ;;  %3761 = vmatprep.mubr.bf16.mxu1 %v3566_v60  ;;  %v4871_v57 = vpack.c.bf16 %v3838_v56, %v3837_v55  ;;  %v3839_v60 = vld [vmem:[%s7161_s9 + $0x60] sm:$0xff] }
 0x433   : > { %3731 = vmatprep.subr.bf16.mxu1 %v5471_v59  ;;  %v4873_v59 = vpack.c.bf16 %v3856_v58, %v3855_v36 }
 0x434   : > { %4872 = vmatpush3.bf16.msra.mxu0 %v4871_v57 }
 0x435   : > { %4874 = vmatprep.subr.bf16.mxu0 %v4873_v59 }
 0x436   : > { %3732 = vmatpush1.bf16.msra.mxu1 %v5469_v62  ;;  %v3840_v62 = vld [vmem:[%s7161_s9 + $0x68] sm:$0xff] }
 0x437   : > { %3733 = vmatprep.subr.bf16.mxu1 %v5474_v63  ;;  %v4875_v63 = vpack.c.bf16 %v3840_v62, %v3839_v60 }
 0x439   : > { %4876 = vmatpush3.bf16.msra.mxu0 %v4875_v63 }
 0x43a   : > { %3734 = vmatpush1.bf16.msra.mxu1 %v5472_v0  ;;  %v3857_v0 = vld [vmem:[%s7161_s9 + $0xf0] sm:$0xff] }
 0x43b   : > { %3735 = vmatprep.subr.bf16.mxu1 %v5477_v1  ;;  %v3858_v1 = vld [vmem:[%s7161_s9 + $0xf8] sm:$0xff] }
 0x43e   : > { %3736 = vmatpush1.bf16.msra.mxu1 %v5475_v2  ;;  %v3841_v2 = vld [vmem:[%s7161_s9 + $0x70] sm:$0xff] }
 0x43f   : > { %3737 = vmatprep.subr.bf16.mxu1 %v5480_v16  ;;  %v4877_v16 = vpack.c.bf16 %v3858_v1, %v3857_v0 }
 0x441   : > { %4878 = vmatprep.subr.bf16.mxu0 %v4877_v16 }
 0x442   : > { %3738 = vmatpush1.bf16.msra.mxu1 %v5478_v3  ;;  %v3842_v3 = vld [vmem:[%s7161_s9 + $0x78] sm:$0xff] }
 0x443   : > { %3739 = vmatprep.subr.bf16.mxu1 %v5483_v4  ;;  %v4879_v4 = vpack.c.bf16 %v3842_v3, %v3841_v2 }
 0x445   : > { %4880 = vmatpush3.bf16.msra.mxu0 %v4879_v4 }
 0x446   : > { %3740 = vmatpush1.bf16.msra.mxu1 %v5481_v5  ;;  %v3930_v5 = vld [vmem:[%s7162_s10] sm:$0xff] }
 0x447   : > { %3741 = vmatprep.subr.bf16.mxu1 %v5486_v6  ;;  %v3932_v6 = vcombine.high %v3930_v5, %v3930_v5 }
 0x44a   : > { %3742 = vmatpush1.bf16.msra.mxu1 %v5484_v7  ;;  %v3776_v7 = vld [vmem:[%s7160_s8] ss:$2 sm:$0x3] }
 0x44b   : > { %3743 = vmatprep.subr.bf16.mxu1 %v5489_v8  ;;  %v4799_v8 = vld [vmem:[%s7160_s8 + $0x1] ss:$2 sm:$0x3] }
 0x44e   : > { %3744 = vmatpush1.bf16.msra.mxu1 %v5487_v9  ;;  %v3781_v9 = vrot.slane %v3776_v7, %v6434_v18 }
 0x44f   : > { %3745 = vmatprep.subr.bf16.mxu1 %v5492_v10  ;;  %v3785_v10 = vrot.slane %v3776_v7, %v6439_v23 }
 0x452   : > { %3746 = vmatpush1.bf16.msra.mxu1 %v5490_v11  ;;  %v3798_v11 = vrot.slane %v4799_v8, %v6434_v18 }
 0x453   : > { %3747 = vmatprep.subr.bf16.mxu1 %v5495_v12 }
 0x456   : > { %3748 = vmatpush1.bf16.msra.mxu1 %v5493_v13  ;;  %v3802_v13 = vrot.slane %v4799_v8, %v6439_v23 }
 0x457   : > { %3749 = vmatprep.subr.bf16.mxu1 %v5498_v14 }
 0x45a   : > { %3750 = vmatpush1.bf16.msra.mxu1 %v5496_v35 }
 0x45b   : > { %3751 = vmatprep.subr.bf16.mxu1 %v5501_v31 }
 0x45e   : > { %3752 = vmatpush1.bf16.msra.mxu1 %v5499_v61 }
 0x45f   : > { %3753 = vmatprep.subr.bf16.mxu1 %v5504_v19 }
 0x462   : > { %3754 = vmatpush1.bf16.msra.mxu1 %v5502_v50 }
 0x463   : > { %3755 = vmatprep.subr.bf16.mxu1 %v5507_v20 }
 0x466   : > { %3756 = vmatpush1.bf16.msra.mxu1 %v5505_v22 }
 0x467   : > { %3757 = vmatprep.subr.bf16.mxu1 %v5510_v24 }
 0x46a   : > { %3758 = vmatpush1.bf16.msra.mxu1 %v5508_v26 }
 0x46b   : > { %3759 = vmatprep.subr.bf16.mxu1 %v5513_v27 }
 0x46e   : > { %3760 = vmatpush1.bf16.msra.mxu1 %v5511_v29 }
 0x46f   : > { %4800 = vmatprep.subr.msk.mxu1 %vm478_vm12, %v3932_v6 }
 0x471   : > { %3762 = vmatmul.mubr.bf16.vlgmr.msra.gmra.mrb[4].mxu1 %v3563_v34 }
 0x472   : > { %4801 = vmatpush1.msk.msra.mxu1 %vm478_vm12, %v3930_v5  ;;  %4006 = vmatprep.mubr.f32.mxu1 %v5533_v47  ;;  %vm3933_vm12 = vcmask 31744  }
 0x544   : > { %v3763_v12 = vpop.f32.mrb[4].mxu1 }
 0x545   : > { %v3788_v14 = vmul.f32 %v3781_v9, %v3763_v12  ;;  %v3765_v35 = vpop.f32.mrb[5].mxu1 }
 0x546   : > { %v3789_v31 = vmul.f32 %v3785_v10, %v3765_v35  ;;  %v3767_v61 = vpop.f32.mrb[6].mxu1 }
 0x547   : > { %v3805_v19 = vadd.f32 %v3798_v11, %v3788_v14  ;;  %v3790_v50 = vmul.f32 %v3781_v9, %v3767_v61  ;;  %v3769_v20 = vpop.f32.mrb[7].mxu1 }
 0x548   : > { %v3806_v22 = vadd.f32 %v3802_v13, %v3789_v31  ;;  %v3791_v24 = vmul.f32 %v3785_v10, %v3769_v20 }
 0x549   : > { %v3807_v26 = vadd.f32 %v3798_v11, %v3790_v50  ;;  %v3809_v28 = vmax.f32 %v3805_v19, 0.0 }
 0x54a   : > { %v3808_v27 = vadd.f32 %v3802_v13, %v3791_v24  ;;  %v3810_v30 = vmax.f32 %v3806_v22, 0.0 }
 0x54b   : > { %v3811_v29 = vmax.f32 %v3807_v26, 0.0 }
 0x54c   : > { %v3812_v32 = vmax.f32 %v3808_v27, 0.0 }
 0x54d   : > { %v3813_v33 = vadd.f32 %v3811_v29, %v3809_v28 }
 0x54e   : > { %v3820_v34 = vadd.f32 %v3812_v32, %v3810_v30 }
 0x54f   : > { %v3814_v38 = vrot.slane %v3813_v33, 4 }
 0x550   : > { %v3821_v15 = vrot.slane %v3820_v34, 4 }
 0x551   : > { %v3815_v23 = vadd.f32 %v3814_v38, %v3813_v33 }
 0x552   : > { %v3822_v41 = vadd.f32 %v3821_v15, %v3820_v34 }
 0x553   : > { %v3816_v40 = vrot.slane %v3815_v23, 2 }
 0x554   : > { %v3823_v42 = vrot.slane %v3822_v41, 2 }
 0x555   : > { %v3817_v43 = vadd.f32 %v3816_v40, %v3815_v23 }
 0x556   : > { %v3824_v44 = vadd.f32 %v3823_v42, %v3822_v41 }
 0x557   : > { %v3818_v21 = vrot.slane %v3817_v43, 1 }
 0x558   : > { %v3825_v25 = vrot.slane %v3824_v44, 1 }
 0x559   : > { %v3819_v46 = vadd.f32 %v3818_v21, %v3817_v43 }
 0x55a   : > { %v3826_v45 = vadd.f32 %v3825_v25, %v3824_v44 }
 0x55c   : > { %3923 = vmatprep.mubr.f32.mxu0 %v3826_v45 }
 0x55d   : > { %3924 = vmatmul.mubr.f32.vlgmr.msra.gmra.mrb[4].mxu0 %v3819_v46 }
 0x630   : > { %v4846_v48 = vpop.f32.mrb[4].mxu0 }
 0x631   : > { %v4847_v49 = vpop.f32.mrb[5].mxu0 }
 0x632   : > { %v4848_v17 = vadd.f32 %v4847_v49, %v4846_v48 }
 0x634   : > { %v3929_v51 = vmax.f32 %v4848_v17, 0.0 }
 0x636   : > { %4802 = vmatmul.mubr.msk.f32.vlgmr.msra.gmra.mrb[8].mxu1 %vm3933_vm12, %v3929_v51 }
 0x709   : > { %v4008_v52 = vpop.f32.mrb[8].mxu1 }
 0x70a   : > { %v4803_v39 = vmul.f32 -1.442695, %v4008_v52  ;;  %v4010_v53 = vpop.f32.mrb[9].mxu1 }
 0x70b   : > { %v4804_v37 = vmul.f32 -1.442695, %v4010_v53 }
 0x70c   : > { %5516 = vpow2.f32 %v4803_v39 }
 0x70d   : > { %5518 = vpow2.f32 %v4804_v37 }
 0x716   : > { %v5517_v54 = vpop.eup %5516 }
 0x717   : > { %v5519_v55 = vpop.eup %5518  ;;  %v4019_v56 = vadd.f32 1.0, %v5517_v54 }
 0x718   : > { %v4020_v57 = vadd.f32 1.0, %v5519_v55 }
 0x719   : > { %5520 = vrcp.f32 %v4019_v56 }
 0x71a   : > { %5522 = vrcp.f32 %v4020_v57 }
 0x723   : > { %v5521_v36 = vpop.eup %5520 }
 0x724   : > { %v5523_v58 = vpop.eup %5522  ;;  %v4028_v59 = vrot.slane %v5521_v36, %v6434_v18 }
 0x725   : > { %v4032_v60 = vrot.slane %v5523_v58, %v6434_v18 }
 0x726   : > { %v4033_v62 = vmul.f32 %v4028_v59, %v3809_v28  ;;  %v4035_v63 = vmul.f32 %v4028_v59, %v3811_v29 }
 0x727   : > { %v4034_v0 = vmul.f32 %v4032_v60, %v3810_v30  ;;  %v4036_v1 = vmul.f32 %v4032_v60, %v3812_v32 }
 0x728   : > { %4037 = vst [vmem:[%s406_s12] sm:$0xff] %v4033_v62  ;;  %4039 = vst [vmem:[%s406_s12 + $0x10] sm:$0xff] %v4035_v63 }
 0x729   : > { %4038 = vst [vmem:[%s406_s12 + $0x8] sm:$0xff] %v4034_v0  ;;  %4040 = vst [vmem:[%s406_s12 + $0x18] sm:$0xff] %v4036_v1 }
 0x72a PF: > { %s21_s17 = sadd.s32 1, %s5530_s17  }
 0x72b   : > { %p18_p4 = scmp.ge.s32.totalorder %s21_s17, 4  }
 0x72d   :  { %20 = sbr.rel (!%p18_p4) target bundleno = 1 (0x1), region = 108 }

</bundles_post_ra>
